<compile_context>
chip_gen: v7x
topology: tpu7x:2x2x1
jax: 0.10.0
libtpu: 0.0.40
codegen_flags: <defaults>
</compile_context>

<pallas_src>
import functools
import math

import jax
import jax.numpy as jnp
from jax import lax
from jax.experimental import pallas as pl
from jax.experimental.pallas import tpu as pltpu


# ---------------------------------------------------------------------------
# conv1: 3x3, stride 1, pad 1 -- W-pair-packed 128-lane output + BN-stat
# epilogue.  Input is the zero-padded image in W-pair-merged layout.
# ---------------------------------------------------------------------------
def _conv1_kernel(x_ref, w_ref, y_ref, stats_ref, acc_ref):
    """x_ref:(1,H+2,W/2+1,2C) bf16  w_ref:(3,4C,2F) bf16
    y_ref:(1,TH,W/2,2F) bf16  stats_ref:(1,1,2,2F) f32  acc_ref:(TH*W/2,2F) f32"""
    _, TH, Wm, _ = y_ref.shape
    KH, K, _ = w_ref.shape
    row0 = pl.multiple_of(pl.program_id(1) * TH, TH)
    for ky in range(KH):
        rows = x_ref[0, pl.ds(row0 + ky, TH), :, :]            # (TH, Wm+1, 2C)
        # merged-column window (j, j+1) -> padded cols {2j..2j+3}: K = 4*Cin
        lhs = jnp.concatenate([rows[:, 0:Wm, :], rows[:, 1:Wm + 1, :]],
                              axis=-1).reshape(TH * Wm, K)
        prod = jnp.dot(lhs, w_ref[ky], preferred_element_type=jnp.float32)
        if ky == 0:
            acc_ref[...] = prod
        else:
            acc_ref[...] += prod
    acc = acc_ref[...]
    y_ref[0] = acc.reshape(TH, Wm, acc.shape[-1]).astype(y_ref.dtype)
    # BN1 batch-stat partials from the f32 accumulator (final tiny C-sized
    # reduction happens in glue).
    stats_ref[0, 0, 0:1, :] = jnp.sum(acc, axis=0, keepdims=True)
    stats_ref[0, 0, 1:2, :] = jnp.sum(acc * acc, axis=0, keepdims=True)


# ---------------------------------------------------------------------------
# conv2: fused [BN1-apply + LeakyReLU + zero-pad] -> 4x4, stride 2, pad 1.
# Input is conv1's raw (pre-BN) output in pair-merged layout, grouped into
# (even, odd) row pairs by a free glue reshape.
# ---------------------------------------------------------------------------
def _conv2_kernel(x_ref, sc_ref, sh_ref, w_ref, y_ref, stats_ref, acc_ref, *,
                  slope):
    """x_ref:(1,H/2,2,W/2,2F) bf16  sc/sh:(1,2F) f32  w_ref:(4,4F,F2) bf16
    y_ref:(1,H/2,W/2,F2) f32  stats_ref:(1,2,F2) f32  acc_ref:(H/2*W/2,F2) f32"""
    _, H2, _, Wm, C2 = x_ref.shape
    C = C2 // 2
    sc = sc_ref[...]
    sh = sh_ref[...]

    def act(v):                      # BN1 + LeakyReLU (f32 math, bf16 result)
        t = v.astype(jnp.float32) * sc + sh
        return jnp.where(t >= 0, t, slope * t).astype(jnp.bfloat16)

    r_ev = act(x_ref[0, :, 0, :, :])         # a1 rows 0,2,...  (H2, Wm, 2C)
    r_od = act(x_ref[0, :, 1, :, :])         # a1 rows 1,3,...

    def make_lhs(src):
        # lanes [0:C] = even a1 cols, [C:2C] = odd a1 cols.  Output wo needs
        # a1 cols (2wo-1, 2wo, 2wo+1, 2wo+2) = (odd[wo-1], even[wo], odd[wo],
        # even[wo+1]); the column boundaries are the zero pad of the ACTIVATED
        # input (conv2 has padding=1), handled by the zero blocks below.
        R = src.shape[0]
        e = src[:, :, 0:C]
        o = src[:, :, C:]
        z = jnp.zeros((R, 1, C), src.dtype)
        o_sr = jnp.concatenate([z, o[:, 0:Wm - 1, :]], axis=1)   # odd[wo-1]
        e_sl = jnp.concatenate([e[:, 1:Wm, :], z], axis=1)       # even[wo+1]
        return jnp.concatenate([o_sr, e, o, e_sl],
                               axis=-1).reshape(R * Wm, 4 * C)

    f32 = jnp.float32
    # ky=1: a1 row 2ho   -> even rows[ho]
    acc_ref[...] = jnp.dot(make_lhs(r_ev), w_ref[1], preferred_element_type=f32)
    # ky=2: a1 row 2ho+1 -> odd rows[ho]
    acc_ref[...] += jnp.dot(make_lhs(r_od), w_ref[2], preferred_element_type=f32)
    # ky=0: a1 row 2ho-1 -> odd rows[ho-1]; output row 0 sees the top zero pad,
    # so only output rows 1..H2-1 accumulate (shifted acc range, no row copy).
    acc_ref[Wm:H2 * Wm, :] += jnp.dot(make_lhs(r_od[0:H2 - 1, :, :]), w_ref[0],
                                      preferred_element_type=f32)
    # ky=3: a1 row 2ho+2 -> even rows[ho+1]; last output row sees the bottom pad.
    acc_ref[0:(H2 - 1) * Wm, :] += jnp.dot(make_lhs(r_ev[1:H2, :, :]), w_ref[3],
                                           preferred_element_type=f32)

    acc = acc_ref[...]
    y_ref[0] = acc.reshape(H2, Wm, acc.shape[-1]).astype(y_ref.dtype)
    stats_ref[0, 0:1, :] = jnp.sum(acc, axis=0, keepdims=True)
    stats_ref[0, 1:2, :] = jnp.sum(acc * acc, axis=0, keepdims=True)


# ---------------------------------------------------------------------------
# Final BN2(train-mode) + affine + LeakyReLU, lane-dense (2*F2 = 128 lanes),
# full image per grid step.
# ---------------------------------------------------------------------------
def _bn_lrelu_kernel(y_ref, sc_ref, sh_ref, o_ref, *, slope):
    t = y_ref[...].astype(jnp.float32) * sc_ref[...] + sh_ref[...]
    o_ref[...] = jnp.where(t >= 0, t, slope * t).astype(o_ref.dtype)


# ---------------------------------------------------------------------------
# Weight prep (PyTorch OIHW -> kernel rhs layouts), bf16 for the MXU.
# ---------------------------------------------------------------------------
def _conv1_paired_rhs(w, dtype=jnp.bfloat16):
    """(F, C, 3, 3) -> (3, 4*C, 2*F): row block d multiplies padded col 2j+d of
    the merged window (j, j+1); cols [0:F] = even output (2j, kx=d),
    cols [F:2F] = odd output (2j+1, kx=d-1)."""
    F, C, KH, KW = w.shape
    wt = jnp.transpose(w, (2, 3, 1, 0))                     # (KH, KW, C, F)
    z = jnp.zeros((C, F), w.dtype)
    out = []
    for ky in range(KH):
        rows = []
        for d in range(4):
            even = wt[ky, d] if d <= KW - 1 else z
            odd = wt[ky, d - 1] if d >= 1 else z
            rows.append(jnp.concatenate([even, odd], axis=1))
        out.append(jnp.concatenate(rows, axis=0))
    return jnp.stack(out, axis=0).astype(dtype)


def _conv2_rowk_rhs(w, dtype=jnp.bfloat16):
    """(F2, F1, 4, 4) -> (4, 4*F1, F2); row index = kx*F1 + cin."""
    F2, F1, KH, KW = w.shape
    return jnp.transpose(w, (2, 3, 1, 0)).reshape(KH, KW * F1, F2).astype(dtype)


def _scale_shift(s, sq, count, gamma, beta, eps):
    mean = s / count
    var = jnp.maximum(sq / count - mean * mean, 0.0)   # biased var (train BN)
    scale = gamma * lax.rsqrt(var + eps)
    shift = beta - mean * scale
    return scale, shift


def _pick_tile_h(Ho, Wm, lanes, budget_bytes=1 << 20):
    """Largest divisor of Ho whose f32 accumulator stays under the budget."""
    best = 1
    for t in range(1, Ho + 1):
        if Ho % t == 0 and t * Wm * lanes * 4 <= budget_bytes:
            best = t
    return best


# ---------------------------------------------------------------------------
# DisBlock forward (NHWC in / NHWC out).  Conv biases are intentionally not
# taken: training-mode BN subtracts the batch mean, so a per-channel bias
# added before BN cancels exactly.
# ---------------------------------------------------------------------------
def dis_block_forward(x_nhwc, w1, g1, be1, w2, g2, be2, eps=1e-5, slope=0.1):
    N, H, W, C = x_nhwc.shape
    assert H % 4 == 0 and W % 4 == 0, "kernel assumes H, W multiples of 4"
    assert w1.shape[1] == C and w2.shape[1] == w1.shape[0]
    F1, F2 = w1.shape[0], w2.shape[0]
    Wm = W // 2
    H2, Wo2 = H // 2, W // 2

    # ----- conv1: 3x3 s1 p1, W-pair-packed 128-lane output -----
    xp = jnp.pad(x_nhwc, ((0, 0), (1, 1), (1, 1), (0, 0))).astype(jnp.bfloat16)
    xpm = xp.reshape(N, H + 2, (W + 2) // 2, 2 * C)         # free reshape
    w1_rhs = _conv1_paired_rhs(w1)
    tile_h = _pick_tile_h(H, Wm, 2 * F1)
    R = H // tile_h
    y1, st1 = pl.pallas_call(
        _conv1_kernel,
        out_shape=(jax.ShapeDtypeStruct((N, H, Wm, 2 * F1), jnp.bfloat16),
                   jax.ShapeDtypeStruct((N, R, 2, 2 * F1), jnp.float32)),
        grid=(N, R),
        in_specs=[
            pl.BlockSpec((1, H + 2, Wm + 1, 2 * C), lambda n, r: (n, 0, 0, 0)),
            pl.BlockSpec(w1_rhs.shape, lambda n, r: (0, 0, 0)),
        ],
        out_specs=(
            pl.BlockSpec((1, tile_h, Wm, 2 * F1), lambda n, r: (n, r, 0, 0)),
            pl.BlockSpec((1, 1, 2, 2 * F1), lambda n, r: (n, r, 0, 0)),
        ),
        scratch_shapes=[pltpu.VMEM((tile_h * Wm, 2 * F1), jnp.float32)],
        compiler_params=pltpu.CompilerParams(
            dimension_semantics=("parallel", "parallel")),
    )(xpm, w1_rhs)

    st1s = jnp.sum(st1, axis=(0, 1))                        # (2, 2*F1)
    s1 = st1s[0, :F1] + st1s[0, F1:]
    q1 = st1s[1, :F1] + st1s[1, F1:]
    sc1, sh1 = _scale_shift(s1, q1, N * H * W, g1, be1, eps)
    sc1_t = jnp.tile(sc1, 2)[None].astype(jnp.float32)      # (1, 2*F1)
    sh1_t = jnp.tile(sh1, 2)[None].astype(jnp.float32)

    # ----- conv2: fused BN1-apply + LReLU + pad, 4x4 s2 p1 -----
    y1m = y1.reshape(N, H2, 2, Wm, 2 * F1)                  # free reshape
    w2_rhs = _conv2_rowk_rhs(w2)
    y2, st2 = pl.pallas_call(
        functools.partial(_conv2_kernel, slope=slope),
        out_shape=(jax.ShapeDtypeStruct((N, H2, Wo2, F2), jnp.float32),
                   jax.ShapeDtypeStruct((N, 2, F2), jnp.float32)),
        grid=(N,),
        in_specs=[
            pl.BlockSpec((1, H2, 2, Wm, 2 * F1), lambda n: (n, 0, 0, 0, 0)),
            pl.BlockSpec((1, 2 * F1), lambda n: (0, 0)),
            pl.BlockSpec((1, 2 * F1), lambda n: (0, 0)),
            pl.BlockSpec(w2_rhs.shape, lambda n: (0, 0, 0)),
        ],
        out_specs=(
            pl.BlockSpec((1, H2, Wo2, F2), lambda n: (n, 0, 0, 0)),
            pl.BlockSpec((1, 2, F2), lambda n: (n, 0, 0)),
        ),
        scratch_shapes=[pltpu.VMEM((H2 * Wo2, F2), jnp.float32)],
        compiler_params=pltpu.CompilerParams(
            dimension_semantics=("parallel",)),
    )(y1m, sc1_t, sh1_t, w2_rhs)

    st2s = jnp.sum(st2, axis=0)                             # (2, F2)
    sc2, sh2 = _scale_shift(st2s[0], st2s[1], N * H2 * Wo2, g2, be2, eps)
    sc2_t = jnp.tile(sc2, 2)[None].astype(jnp.float32)
    sh2_t = jnp.tile(sh2, 2)[None].astype(jnp.float32)

    # ----- final BN2 + LeakyReLU, lane-dense, full image per step -----
    y2m = y2.reshape(N, H2, Wo2 // 2, 2 * F2)               # free reshape
    out = pl.pallas_call(
        functools.partial(_bn_lrelu_kernel, slope=slope),
        out_shape=jax.ShapeDtypeStruct((N, H2, Wo2 // 2, 2 * F2), jnp.float32),
        grid=(N,),
        in_specs=[
            pl.BlockSpec((1, H2, Wo2 // 2, 2 * F2), lambda n: (n, 0, 0, 0)),
            pl.BlockSpec((1, 2 * F2), lambda n: (0, 0)),
            pl.BlockSpec((1, 2 * F2), lambda n: (0, 0)),
        ],
        out_specs=pl.BlockSpec((1, H2, Wo2 // 2, 2 * F2),
                               lambda n: (n, 0, 0, 0)),
        compiler_params=pltpu.CompilerParams(
            dimension_semantics=("parallel",)),
    )(y2m, sc2_t, sh2_t)
    return out.reshape(N, H2, Wo2, F2)


# ---------------------------------------------------------------------------
# Pure-JAX reference (NCHW, mirrors the PyTorch module; keeps the conv biases
# to demonstrate that dropping them before train-mode BN is exact).
# ---------------------------------------------------------------------------
def ref_forward(x_nchw, w1, b1, g1, be1, w2, b2, g2, be2):
    def conv(x, w, b, stride, pad):
        y = lax.conv_general_dilated(
            x, w, (stride, stride), ((pad, pad), (pad, pad)),
            dimension_numbers=("NCHW", "OIHW", "NCHW"))
        return y + b[None, :, None, None]

    def bn_lrelu(x, g, be):
        mean = jnp.mean(x, axis=(0, 2, 3), keepdims=True)
        var = jnp.mean((x - mean) ** 2, axis=(0, 2, 3), keepdims=True)
        y = (x - mean) * lax.rsqrt(var + 1e-5)
        y = y * g[None, :, None, None] + be[None, :, None, None]
        return jnp.where(y >= 0, y, 0.1 * y)

    x = bn_lrelu(conv(x_nchw, w1, b1, 1, 1), g1, be1)
    x = bn_lrelu(conv(x, w2, b2, 2, 1), g2, be2)
    return x


if __name__ == "__main__":
    key = jax.random.PRNGKey(0)
    N, C, H, W = 2, 64, 16, 16            # module default channels = 64
    k0, k1, k2, k3, k4 = jax.random.split(key, 5)

    x_nchw = jax.random.normal(k0, (N, C, H, W), jnp.float32)

    # kaiming_normal_(fan_in, a=0) * 0.1 for the convs; BN gamma=1 / beta=0.
    w1 = jax.random.normal(k1, (C, C, 3, 3), jnp.float32) * (math.sqrt(2.0 / (C * 9)) * 0.1)
    w2 = jax.random.normal(k2, (C, C, 4, 4), jnp.float32) * (math.sqrt(2.0 / (C * 16)) * 0.1)
    # Nonzero biases only for the reference: they cancel under training-mode BN.
    b1 = jax.random.normal(k3, (C,), jnp.float32) * 0.05
    b2 = jax.random.normal(k4, (C,), jnp.float32) * 0.05
    g1 = jnp.ones((C,), jnp.float32)
    be1 = jnp.zeros((C,), jnp.float32)
    g2 = jnp.ones((C,), jnp.float32)
    be2 = jnp.zeros((C,), jnp.float32)

    x_nhwc = jnp.transpose(x_nchw, (0, 2, 3, 1))
    fwd = jax.jit(dis_block_forward)
    out_nhwc = fwd(x_nhwc, w1, g1, be1, w2, g2, be2)
    jax.block_until_ready(out_nhwc)
    out = jnp.transpose(out_nhwc, (0, 3, 1, 2))             # back to NCHW

    assert out.shape == (N, C, H // 2, W // 2), out.shape

    ref = ref_forward(x_nchw, w1, b1, g1, be1, w2, b2, g2, be2)
    err = float(jnp.max(jnp.abs(out - ref)))
    # bf16 matmul operands and the bf16 y1 intermediate introduce ~1e-3-level
    # relative errors that BN normalization amplifies a few-fold; 2.5e-2 bounds
    # that comfortably (typical observed error is a few 1e-3).
    if not (err < 2.5e-2):
        raise AssertionError(f"mismatch vs reference, max abs err = {err}")

    print("KERNEL_OK")
</pallas_src>

<mosaic_0001>
module attributes {stable_mosaic.version = 11 : i64} {
  func.func @_conv1_kernel(%arg0: i32, %arg1: i32, %arg2: memref<1x18x9x128xbf16, #tpu.memory_space<vmem>>, %arg3: memref<3x256x128xbf16, #tpu.memory_space<vmem>>, %arg4: memref<1x16x8x128xbf16, #tpu.memory_space<vmem>>, %arg5: memref<1x1x2x128xf32, #tpu.memory_space<vmem>>, %arg6: memref<128x128xf32, #tpu.memory_space<vmem>>) attributes {dimension_semantics = [#tpu.dimension_semantics<parallel>, #tpu.dimension_semantics<parallel>], iteration_bounds = array<i64: 2, 1>, scalar_prefetch = 0 : i64, scratch_operands = 1 : i64, tpu.core_type = #tpu.core_type<tc>, window_params = [{transform_indices = @transform_0, window_bounds = array<i64: 1, 18, 9, 128>}, {pipeline_mode = #tpu.pipeline_mode<synchronous>, transform_indices = @transform_1, window_bounds = array<i64: 3, 256, 128>}, {transform_indices = @transform_2, window_bounds = array<i64: 1, 16, 8, 128>}, {transform_indices = @transform_3, window_bounds = array<i64: 1, 1, 2, 128>}]} {
    %c16_i32 = arith.constant 16 : i32
    %0 = arith.muli %arg1, %c16_i32 : i32
    %1 = tpu.assume_multiple %0, 16 : i32
    %c0_i32 = arith.constant 0 : i32
    %2 = arith.addi %1, %c0_i32 : i32
    %c0 = arith.constant 0 : index
    %3 = arith.index_cast %2 : i32 to index
    %c0_0 = arith.constant 0 : index
    %c0_1 = arith.constant 0 : index
    %4 = vector.load %arg2[%c0, %3, %c0_0, %c0_1] : memref<1x18x9x128xbf16, #tpu.memory_space<vmem>>, vector<1x16x9x128xbf16>
    %5 = vector.shape_cast %4 : vector<1x16x9x128xbf16> to vector<16x9x128xbf16>
    %6 = vector.extract_strided_slice %5 {offsets = [0, 0, 0], sizes = [16, 8, 128], strides = [1, 1, 1]} : vector<16x9x128xbf16> to vector<16x8x128xbf16>
    %7 = vector.extract_strided_slice %5 {offsets = [0, 1, 0], sizes = [16, 8, 128], strides = [1, 1, 1]} : vector<16x9x128xbf16> to vector<16x8x128xbf16>
    %8 = tpu.concatenate %6, %7 in 2 : vector<16x8x128xbf16>, vector<16x8x128xbf16> -> vector<16x8x256xbf16>
    %9 = vector.shape_cast %8 : vector<16x8x256xbf16> to vector<128x256xbf16>
    %c0_2 = arith.constant 0 : index
    %c0_3 = arith.constant 0 : index
    %c0_4 = arith.constant 0 : index
    %10 = vector.load %arg3[%c0_2, %c0_3, %c0_4] : memref<3x256x128xbf16, #tpu.memory_space<vmem>>, vector<1x256x128xbf16>
    %11 = vector.shape_cast %10 : vector<1x256x128xbf16> to vector<256x128xbf16>
    %cst = arith.constant dense<0.000000e+00> : vector<128x128xf32>
    %12 = tpu.matmul %9, %11, %cst {dimension_numbers = #tpu.dot_dimension_numbers<[1], [0], [0], [1], [0, 0, 1, 1], [], []>} : vector<128x256xbf16>, vector<256x128xbf16>, vector<128x128xf32> -> vector<128x128xf32>
    %c0_5 = arith.constant 0 : index
    %c0_6 = arith.constant 0 : index
    %13 = vector.load %arg6[%c0_5, %c0_6] : memref<128x128xf32, #tpu.memory_space<vmem>>, vector<128x128xf32>
    tpu.vector_store %arg6[%c0_5, %c0_6], %12 {strides = array<i32>} : memref<128x128xf32, #tpu.memory_space<vmem>>, vector<128x128xf32>,
    %c1_i32 = arith.constant 1 : i32
    %14 = arith.addi %1, %c1_i32 : i32
    %c0_7 = arith.constant 0 : index
    %15 = arith.index_cast %14 : i32 to index
    %c0_8 = arith.constant 0 : index
    %c0_9 = arith.constant 0 : index
    %16 = vector.load %arg2[%c0_7, %15, %c0_8, %c0_9] : memref<1x18x9x128xbf16, #tpu.memory_space<vmem>>, vector<1x16x9x128xbf16>
    %17 = vector.shape_cast %16 : vector<1x16x9x128xbf16> to vector<16x9x128xbf16>
    %18 = vector.extract_strided_slice %17 {offsets = [0, 0, 0], sizes = [16, 8, 128], strides = [1, 1, 1]} : vector<16x9x128xbf16> to vector<16x8x128xbf16>
    %19 = vector.extract_strided_slice %17 {offsets = [0, 1, 0], sizes = [16, 8, 128], strides = [1, 1, 1]} : vector<16x9x128xbf16> to vector<16x8x128xbf16>
    %20 = tpu.concatenate %18, %19 in 2 : vector<16x8x128xbf16>, vector<16x8x128xbf16> -> vector<16x8x256xbf16>
    %21 = vector.shape_cast %20 : vector<16x8x256xbf16> to vector<128x256xbf16>
    %c1 = arith.constant 1 : index
    %c0_10 = arith.constant 0 : index
    %c0_11 = arith.constant 0 : index
    %22 = vector.load %arg3[%c1, %c0_10, %c0_11] : memref<3x256x128xbf16, #tpu.memory_space<vmem>>, vector<1x256x128xbf16>
    %23 = vector.shape_cast %22 : vector<1x256x128xbf16> to vector<256x128xbf16>
    %cst_12 = arith.constant dense<0.000000e+00> : vector<128x128xf32>
    %24 = tpu.matmul %21, %23, %cst_12 {dimension_numbers = #tpu.dot_dimension_numbers<[1], [0], [0], [1], [0, 0, 1, 1], [], []>} : vector<128x256xbf16>, vector<256x128xbf16>, vector<128x128xf32> -> vector<128x128xf32>
    %c0_13 = arith.constant 0 : index
    %c0_14 = arith.constant 0 : index
    %25 = vector.load %arg6[%c0_13, %c0_14] : memref<128x128xf32, #tpu.memory_space<vmem>>, vector<128x128xf32>
    %26 = arith.addf %25, %24 : vector<128x128xf32>
    %c0_15 = arith.constant 0 : index
    %c0_16 = arith.constant 0 : index
    %27 = vector.load %arg6[%c0_15, %c0_16] : memref<128x128xf32, #tpu.memory_space<vmem>>, vector<128x128xf32>
    tpu.vector_store %arg6[%c0_15, %c0_16], %26 {strides = array<i32>} : memref<128x128xf32, #tpu.memory_space<vmem>>, vector<128x128xf32>,
    %c2_i32 = arith.constant 2 : i32
    %28 = arith.addi %1, %c2_i32 : i32
    %c0_17 = arith.constant 0 : index
    %29 = arith.index_cast %28 : i32 to index
    %c0_18 = arith.constant 0 : index
    %c0_19 = arith.constant 0 : index
    %30 = vector.load %arg2[%c0_17, %29, %c0_18, %c0_19] : memref<1x18x9x128xbf16, #tpu.memory_space<vmem>>, vector<1x16x9x128xbf16>
    %31 = vector.shape_cast %30 : vector<1x16x9x128xbf16> to vector<16x9x128xbf16>
    %32 = vector.extract_strided_slice %31 {offsets = [0, 0, 0], sizes = [16, 8, 128], strides = [1, 1, 1]} : vector<16x9x128xbf16> to vector<16x8x128xbf16>
    %33 = vector.extract_strided_slice %31 {offsets = [0, 1, 0], sizes = [16, 8, 128], strides = [1, 1, 1]} : vector<16x9x128xbf16> to vector<16x8x128xbf16>
    %34 = tpu.concatenate %32, %33 in 2 : vector<16x8x128xbf16>, vector<16x8x128xbf16> -> vector<16x8x256xbf16>
    %35 = vector.shape_cast %34 : vector<16x8x256xbf16> to vector<128x256xbf16>
    %c2 = arith.constant 2 : index
    %c0_20 = arith.constant 0 : index
    %c0_21 = arith.constant 0 : index
    %36 = vector.load %arg3[%c2, %c0_20, %c0_21] : memref<3x256x128xbf16, #tpu.memory_space<vmem>>, vector<1x256x128xbf16>
    %37 = vector.shape_cast %36 : vector<1x256x128xbf16> to vector<256x128xbf16>
    %cst_22 = arith.constant dense<0.000000e+00> : vector<128x128xf32>
    %38 = tpu.matmul %35, %37, %cst_22 {dimension_numbers = #tpu.dot_dimension_numbers<[1], [0], [0], [1], [0, 0, 1, 1], [], []>} : vector<128x256xbf16>, vector<256x128xbf16>, vector<128x128xf32> -> vector<128x128xf32>
    %c0_23 = arith.constant 0 : index
    %c0_24 = arith.constant 0 : index
    %39 = vector.load %arg6[%c0_23, %c0_24] : memref<128x128xf32, #tpu.memory_space<vmem>>, vector<128x128xf32>
    %40 = arith.addf %39, %38 : vector<128x128xf32>
    %c0_25 = arith.constant 0 : index
    %c0_26 = arith.constant 0 : index
    %41 = vector.load %arg6[%c0_25, %c0_26] : memref<128x128xf32, #tpu.memory_space<vmem>>, vector<128x128xf32>
    tpu.vector_store %arg6[%c0_25, %c0_26], %40 {strides = array<i32>} : memref<128x128xf32, #tpu.memory_space<vmem>>, vector<128x128xf32>,
    %c0_27 = arith.constant 0 : index
    %c0_28 = arith.constant 0 : index
    %42 = vector.load %arg6[%c0_27, %c0_28] : memref<128x128xf32, #tpu.memory_space<vmem>>, vector<128x128xf32>
    %43 = vector.shape_cast %42 : vector<128x128xf32> to vector<16x8x128xf32>
    %44 = arith.truncf %43 : vector<16x8x128xf32> to vector<16x8x128xbf16>
    %c0_29 = arith.constant 0 : index
    %c0_30 = arith.constant 0 : index
    %c0_31 = arith.constant 0 : index
    %c0_32 = arith.constant 0 : index
    %45 = vector.load %arg4[%c0_29, %c0_30, %c0_31, %c0_32] : memref<1x16x8x128xbf16, #tpu.memory_space<vmem>>, vector<1x16x8x128xbf16>
    %46 = vector.shape_cast %45 : vector<1x16x8x128xbf16> to vector<16x8x128xbf16>
    %47 = vector.shape_cast %44 : vector<16x8x128xbf16> to vector<1x16x8x128xbf16>
    tpu.vector_store %arg4[%c0_29, %c0_30, %c0_31, %c0_32], %47 {strides = array<i32>} : memref<1x16x8x128xbf16, #tpu.memory_space<vmem>>, vector<1x16x8x128xbf16>,
    %cst_33 = arith.constant dense<0.000000e+00> : vector<128xf32>
    %48 = vector.multi_reduction <add>, %42, %cst_33 [0] : vector<128x128xf32> to vector<128xf32>
    %49 = vector.shape_cast %48 : vector<128xf32> to vector<1x128xf32>
    %c0_34 = arith.constant 0 : index
    %c0_35 = arith.constant 0 : index
    %c0_36 = arith.constant 0 : index
    %c0_37 = arith.constant 0 : index
    %50 = vector.load %arg5[%c0_34, %c0_35, %c0_36, %c0_37] : memref<1x1x2x128xf32, #tpu.memory_space<vmem>>, vector<1x1x1x128xf32>
    %51 = vector.shape_cast %50 : vector<1x1x1x128xf32> to vector<1x128xf32>
    %52 = vector.shape_cast %49 : vector<1x128xf32> to vector<1x1x1x128xf32>
    tpu.vector_store %arg5[%c0_34, %c0_35, %c0_36, %c0_37], %52 {strides = array<i32>} : memref<1x1x2x128xf32, #tpu.memory_space<vmem>>, vector<1x1x1x128xf32>,
    %53 = arith.mulf %42, %42 : vector<128x128xf32>
    %cst_38 = arith.constant dense<0.000000e+00> : vector<128xf32>
    %54 = vector.multi_reduction <add>, %53, %cst_38 [0] : vector<128x128xf32> to vector<128xf32>
    %55 = vector.shape_cast %54 : vector<128xf32> to vector<1x128xf32>
    %c0_39 = arith.constant 0 : index
    %c0_40 = arith.constant 0 : index
    %c1_41 = arith.constant 1 : index
    %c0_42 = arith.constant 0 : index
    %56 = vector.load %arg5[%c0_39, %c0_40, %c1_41, %c0_42] : memref<1x1x2x128xf32, #tpu.memory_space<vmem>>, vector<1x1x1x128xf32>
    %57 = vector.shape_cast %56 : vector<1x1x1x128xf32> to vector<1x128xf32>
    %58 = vector.shape_cast %55 : vector<1x128xf32> to vector<1x1x1x128xf32>
    tpu.vector_store %arg5[%c0_39, %c0_40, %c1_41, %c0_42], %58 {strides = array<i32>} : memref<1x1x2x128xf32, #tpu.memory_space<vmem>>, vector<1x1x1x128xf32>,
    return
  }
  func.func @transform_0(%arg0: i32, %arg1: i32) -> (i32, i32, i32, i32) {
    %c0_i32 = arith.constant 0 : i32
    %c0_i32_0 = arith.constant 0 : i32
    %c0_i32_1 = arith.constant 0 : i32
    %c0_i32_2 = arith.constant 0 : i32
    return %arg0, %c0_i32, %c0_i32_0, %c0_i32_1 : i32, i32, i32, i32
  }
  func.func @transform_1(%arg0: i32, %arg1: i32) -> (i32, i32, i32) {
    %c0_i32 = arith.constant 0 : i32
    %c0_i32_0 = arith.constant 0 : i32
    %c0_i32_1 = arith.constant 0 : i32
    %c0_i32_2 = arith.constant 0 : i32
    return %c0_i32, %c0_i32_0, %c0_i32_1 : i32, i32, i32
  }
  func.func @transform_2(%arg0: i32, %arg1: i32) -> (i32, i32, i32, i32) {
    %c0_i32 = arith.constant 0 : i32
    %c0_i32_0 = arith.constant 0 : i32
    %c0_i32_1 = arith.constant 0 : i32
    return %arg0, %arg1, %c0_i32, %c0_i32_0 : i32, i32, i32, i32
  }
  func.func @transform_3(%arg0: i32, %arg1: i32) -> (i32, i32, i32, i32) {
    %c0_i32 = arith.constant 0 : i32
    %c0_i32_0 = arith.constant 0 : i32
    %c0_i32_1 = arith.constant 0 : i32
    return %arg0, %arg1, %c0_i32, %c0_i32_0 : i32, i32, i32, i32
  }
}

module attributes {stable_mosaic.version = 11 : i64} {
  func.func @_conv2_kernel(%arg0: i32, %arg1: memref<1x8x2x8x128xbf16, #tpu.memory_space<vmem>>, %arg2: memref<1x128xf32, #tpu.memory_space<vmem>>, %arg3: memref<1x128xf32, #tpu.memory_space<vmem>>, %arg4: memref<4x256x64xbf16, #tpu.memory_space<vmem>>, %arg5: memref<1x8x8x64xf32, #tpu.memory_space<vmem>>, %arg6: memref<1x2x64xf32, #tpu.memory_space<vmem>>, %arg7: memref<64x64xf32, #tpu.memory_space<vmem>>) attributes {dimension_semantics = [#tpu.dimension_semantics<parallel>], iteration_bounds = array<i64: 2>, scalar_prefetch = 0 : i64, scratch_operands = 1 : i64, tpu.core_type = #tpu.core_type<tc>, window_params = [{transform_indices = @transform_0, window_bounds = array<i64: 1, 8, 2, 8, 128>}, {pipeline_mode = #tpu.pipeline_mode<synchronous>, transform_indices = @transform_1, window_bounds = array<i64: 1, 128>}, {pipeline_mode = #tpu.pipeline_mode<synchronous>, transform_indices = @transform_2, window_bounds = array<i64: 1, 128>}, {pipeline_mode = #tpu.pipeline_mode<synchronous>, transform_indices = @transform_3, window_bounds = array<i64: 4, 256, 64>}, {transform_indices = @transform_4, window_bounds = array<i64: 1, 8, 8, 64>}, {transform_indices = @transform_5, window_bounds = array<i64: 1, 2, 64>}]} {
    %c0 = arith.constant 0 : index
    %c0_0 = arith.constant 0 : index
    %0 = vector.load %arg2[%c0, %c0_0] : memref<1x128xf32, #tpu.memory_space<vmem>>, vector<1x128xf32>
    %c0_1 = arith.constant 0 : index
    %c0_2 = arith.constant 0 : index
    %1 = vector.load %arg3[%c0_1, %c0_2] : memref<1x128xf32, #tpu.memory_space<vmem>>, vector<1x128xf32>
    %c0_3 = arith.constant 0 : index
    %c0_4 = arith.constant 0 : index
    %c0_5 = arith.constant 0 : index
    %c0_6 = arith.constant 0 : index
    %c0_7 = arith.constant 0 : index
    %2 = vector.load %arg1[%c0_3, %c0_4, %c0_5, %c0_6, %c0_7] : memref<1x8x2x8x128xbf16, #tpu.memory_space<vmem>>, vector<1x8x1x8x128xbf16>
    %3 = vector.shape_cast %2 : vector<1x8x1x8x128xbf16> to vector<8x8x128xbf16>
    %4 = arith.extf %3 : vector<8x8x128xbf16> to vector<8x8x128xf32>
    %5 = vector.shape_cast %0 : vector<1x128xf32> to vector<1x1x128xf32>
    %6 = vector.broadcast %5 : vector<1x1x128xf32> to vector<8x8x128xf32>
    %7 = arith.mulf %4, %6 : vector<8x8x128xf32>
    %8 = vector.shape_cast %1 : vector<1x128xf32> to vector<1x1x128xf32>
    %9 = vector.broadcast %8 : vector<1x1x128xf32> to vector<8x8x128xf32>
    %10 = arith.addf %7, %9 : vector<8x8x128xf32>
    %cst = arith.constant 0.000000e+00 : f32
    %11 = vector.broadcast %cst : f32 to vector<8x8x128xf32>
    %12 = arith.cmpf oge, %10, %11 : vector<8x8x128xf32>
    %cst_8 = arith.constant 1.000000e-01 : f32
    %13 = vector.broadcast %cst_8 : f32 to vector<8x8x128xf32>
    %14 = arith.mulf %13, %10 : vector<8x8x128xf32>
    %15 = arith.select %12, %10, %14 : vector<8x8x128xi1>, vector<8x8x128xf32>
    %16 = arith.truncf %15 : vector<8x8x128xf32> to vector<8x8x128xbf16>
    %c0_9 = arith.constant 0 : index
    %c0_10 = arith.constant 0 : index
    %c1 = arith.constant 1 : index
    %c0_11 = arith.constant 0 : index
    %c0_12 = arith.constant 0 : index
    %17 = vector.load %arg1[%c0_9, %c0_10, %c1, %c0_11, %c0_12] : memref<1x8x2x8x128xbf16, #tpu.memory_space<vmem>>, vector<1x8x1x8x128xbf16>
    %18 = vector.shape_cast %17 : vector<1x8x1x8x128xbf16> to vector<8x8x128xbf16>
    %19 = arith.extf %18 : vector<8x8x128xbf16> to vector<8x8x128xf32>
    %20 = vector.shape_cast %0 : vector<1x128xf32> to vector<1x1x128xf32>
    %21 = vector.broadcast %20 : vector<1x1x128xf32> to vector<8x8x128xf32>
    %22 = arith.mulf %19, %21 : vector<8x8x128xf32>
    %23 = vector.shape_cast %1 : vector<1x128xf32> to vector<1x1x128xf32>
    %24 = vector.broadcast %23 : vector<1x1x128xf32> to vector<8x8x128xf32>
    %25 = arith.addf %22, %24 : vector<8x8x128xf32>
    %cst_13 = arith.constant 0.000000e+00 : f32
    %26 = vector.broadcast %cst_13 : f32 to vector<8x8x128xf32>
    %27 = arith.cmpf oge, %25, %26 : vector<8x8x128xf32>
    %cst_14 = arith.constant 1.000000e-01 : f32
    %28 = vector.broadcast %cst_14 : f32 to vector<8x8x128xf32>
    %29 = arith.mulf %28, %25 : vector<8x8x128xf32>
    %30 = arith.select %27, %25, %29 : vector<8x8x128xi1>, vector<8x8x128xf32>
    %31 = arith.truncf %30 : vector<8x8x128xf32> to vector<8x8x128xbf16>
    %32 = vector.extract_strided_slice %16 {offsets = [0, 0, 0], sizes = [8, 8, 64], strides = [1, 1, 1]} : vector<8x8x128xbf16> to vector<8x8x64xbf16>
    %33 = vector.extract_strided_slice %16 {offsets = [0, 0, 64], sizes = [8, 8, 64], strides = [1, 1, 1]} : vector<8x8x128xbf16> to vector<8x8x64xbf16>
    %cst_15 = arith.constant 0.000000e+00 : bf16
    %34 = vector.broadcast %cst_15 : bf16 to vector<8x1x64xbf16>
    %35 = vector.extract_strided_slice %33 {offsets = [0, 0, 0], sizes = [8, 7, 64], strides = [1, 1, 1]} : vector<8x8x64xbf16> to vector<8x7x64xbf16>
    %36 = tpu.concatenate %34, %35 in 1 : vector<8x1x64xbf16>, vector<8x7x64xbf16> -> vector<8x8x64xbf16>
    %37 = vector.extract_strided_slice %32 {offsets = [0, 1, 0], sizes = [8, 7, 64], strides = [1, 1, 1]} : vector<8x8x64xbf16> to vector<8x7x64xbf16>
    %38 = tpu.concatenate %37, %34 in 1 : vector<8x7x64xbf16>, vector<8x1x64xbf16> -> vector<8x8x64xbf16>
    %39 = tpu.concatenate %36, %32, %33, %38 in 2 : vector<8x8x64xbf16>, vector<8x8x64xbf16>, vector<8x8x64xbf16>, vector<8x8x64xbf16> -> vector<8x8x256xbf16>
    %40 = vector.shape_cast %39 : vector<8x8x256xbf16> to vector<64x256xbf16>
    %c1_16 = arith.constant 1 : index
    %c0_17 = arith.constant 0 : index
    %c0_18 = arith.constant 0 : index
    %41 = vector.load %arg4[%c1_16, %c0_17, %c0_18] : memref<4x256x64xbf16, #tpu.memory_space<vmem>>, vector<1x256x64xbf16>
    %42 = vector.shape_cast %41 : vector<1x256x64xbf16> to vector<256x64xbf16>
    %cst_19 = arith.constant dense<0.000000e+00> : vector<64x64xf32>
    %43 = tpu.matmul %40, %42, %cst_19 {dimension_numbers = #tpu.dot_dimension_numbers<[1], [0], [0], [1], [0, 0, 1, 1], [], []>} : vector<64x256xbf16>, vector<256x64xbf16>, vector<64x64xf32> -> vector<64x64xf32>
    %c0_20 = arith.constant 0 : index
    %c0_21 = arith.constant 0 : index
    %44 = vector.load %arg7[%c0_20, %c0_21] : memref<64x64xf32, #tpu.memory_space<vmem>>, vector<64x64xf32>
    tpu.vector_store %arg7[%c0_20, %c0_21], %43 {strides = array<i32>} : memref<64x64xf32, #tpu.memory_space<vmem>>, vector<64x64xf32>,
    %c0_22 = arith.constant 0 : index
    %c0_23 = arith.constant 0 : index
    %45 = vector.load %arg7[%c0_22, %c0_23] : memref<64x64xf32, #tpu.memory_space<vmem>>, vector<64x64xf32>
    %46 = vector.extract_strided_slice %31 {offsets = [0, 0, 0], sizes = [8, 8, 64], strides = [1, 1, 1]} : vector<8x8x128xbf16> to vector<8x8x64xbf16>
    %47 = vector.extract_strided_slice %31 {offsets = [0, 0, 64], sizes = [8, 8, 64], strides = [1, 1, 1]} : vector<8x8x128xbf16> to vector<8x8x64xbf16>
    %cst_24 = arith.constant 0.000000e+00 : bf16
    %48 = vector.broadcast %cst_24 : bf16 to vector<8x1x64xbf16>
    %49 = vector.extract_strided_slice %47 {offsets = [0, 0, 0], sizes = [8, 7, 64], strides = [1, 1, 1]} : vector<8x8x64xbf16> to vector<8x7x64xbf16>
    %50 = tpu.concatenate %48, %49 in 1 : vector<8x1x64xbf16>, vector<8x7x64xbf16> -> vector<8x8x64xbf16>
    %51 = vector.extract_strided_slice %46 {offsets = [0, 1, 0], sizes = [8, 7, 64], strides = [1, 1, 1]} : vector<8x8x64xbf16> to vector<8x7x64xbf16>
    %52 = tpu.concatenate %51, %48 in 1 : vector<8x7x64xbf16>, vector<8x1x64xbf16> -> vector<8x8x64xbf16>
    %53 = tpu.concatenate %50, %46, %47, %52 in 2 : vector<8x8x64xbf16>, vector<8x8x64xbf16>, vector<8x8x64xbf16>, vector<8x8x64xbf16> -> vector<8x8x256xbf16>
    %54 = vector.shape_cast %53 : vector<8x8x256xbf16> to vector<64x256xbf16>
    %c2 = arith.constant 2 : index
    %c0_25 = arith.constant 0 : index
    %c0_26 = arith.constant 0 : index
    %55 = vector.load %arg4[%c2, %c0_25, %c0_26] : memref<4x256x64xbf16, #tpu.memory_space<vmem>>, vector<1x256x64xbf16>
    %56 = vector.shape_cast %55 : vector<1x256x64xbf16> to vector<256x64xbf16>
    %cst_27 = arith.constant dense<0.000000e+00> : vector<64x64xf32>
    %57 = tpu.matmul %54, %56, %cst_27 {dimension_numbers = #tpu.dot_dimension_numbers<[1], [0], [0], [1], [0, 0, 1, 1], [], []>} : vector<64x256xbf16>, vector<256x64xbf16>, vector<64x64xf32> -> vector<64x64xf32>
    %58 = arith.addf %45, %57 : vector<64x64xf32>
    %c0_28 = arith.constant 0 : index
    %c0_29 = arith.constant 0 : index
    %59 = vector.load %arg7[%c0_28, %c0_29] : memref<64x64xf32, #tpu.memory_space<vmem>>, vector<64x64xf32>
    tpu.vector_store %arg7[%c0_28, %c0_29], %58 {strides = array<i32>} : memref<64x64xf32, #tpu.memory_space<vmem>>, vector<64x64xf32>,
    %c8 = arith.constant 8 : index
    %c0_30 = arith.constant 0 : index
    %60 = vector.load %arg7[%c8, %c0_30] : memref<64x64xf32, #tpu.memory_space<vmem>>, vector<56x64xf32>
    %61 = vector.extract_strided_slice %31 {offsets = [0, 0, 0], sizes = [7, 8, 128], strides = [1, 1, 1]} : vector<8x8x128xbf16> to vector<7x8x128xbf16>
    %62 = vector.extract_strided_slice %61 {offsets = [0, 0, 0], sizes = [7, 8, 64], strides = [1, 1, 1]} : vector<7x8x128xbf16> to vector<7x8x64xbf16>
    %63 = vector.extract_strided_slice %61 {offsets = [0, 0, 64], sizes = [7, 8, 64], strides = [1, 1, 1]} : vector<7x8x128xbf16> to vector<7x8x64xbf16>
    %cst_31 = arith.constant 0.000000e+00 : bf16
    %64 = vector.broadcast %cst_31 : bf16 to vector<7x1x64xbf16>
    %65 = vector.extract_strided_slice %63 {offsets = [0, 0, 0], sizes = [7, 7, 64], strides = [1, 1, 1]} : vector<7x8x64xbf16> to vector<7x7x64xbf16>
    %66 = tpu.concatenate %64, %65 in 1 : vector<7x1x64xbf16>, vector<7x7x64xbf16> -> vector<7x8x64xbf16>
    %67 = vector.extract_strided_slice %62 {offsets = [0, 1, 0], sizes = [7, 7, 64], strides = [1, 1, 1]} : vector<7x8x64xbf16> to vector<7x7x64xbf16>
    %68 = tpu.concatenate %67, %64 in 1 : vector<7x7x64xbf16>, vector<7x1x64xbf16> -> vector<7x8x64xbf16>
    %69 = tpu.concatenate %66, %62, %63, %68 in 2 : vector<7x8x64xbf16>, vector<7x8x64xbf16>, vector<7x8x64xbf16>, vector<7x8x64xbf16> -> vector<7x8x256xbf16>
    %70 = vector.shape_cast %69 : vector<7x8x256xbf16> to vector<56x256xbf16>
    %c0_32 = arith.constant 0 : index
    %c0_33 = arith.constant 0 : index
    %c0_34 = arith.constant 0 : index
    %71 = vector.load %arg4[%c0_32, %c0_33, %c0_34] : memref<4x256x64xbf16, #tpu.memory_space<vmem>>, vector<1x256x64xbf16>
    %72 = vector.shape_cast %71 : vector<1x256x64xbf16> to vector<256x64xbf16>
    %cst_35 = arith.constant dense<0.000000e+00> : vector<56x64xf32>
    %73 = tpu.matmul %70, %72, %cst_35 {dimension_numbers = #tpu.dot_dimension_numbers<[1], [0], [0], [1], [0, 0, 1, 1], [], []>} : vector<56x256xbf16>, vector<256x64xbf16>, vector<56x64xf32> -> vector<56x64xf32>
    %74 = arith.addf %60, %73 : vector<56x64xf32>
    %c8_36 = arith.constant 8 : index
    %c0_37 = arith.constant 0 : index
    %75 = vector.load %arg7[%c8_36, %c0_37] : memref<64x64xf32, #tpu.memory_space<vmem>>, vector<56x64xf32>
    tpu.vector_store %arg7[%c8_36, %c0_37], %74 {strides = array<i32>} : memref<64x64xf32, #tpu.memory_space<vmem>>, vector<56x64xf32>,
    %c0_38 = arith.constant 0 : index
    %c0_39 = arith.constant 0 : index
    %76 = vector.load %arg7[%c0_38, %c0_39] : memref<64x64xf32, #tpu.memory_space<vmem>>, vector<56x64xf32>
    %77 = vector.extract_strided_slice %16 {offsets = [1, 0, 0], sizes = [7, 8, 128], strides = [1, 1, 1]} : vector<8x8x128xbf16> to vector<7x8x128xbf16>
    %78 = vector.extract_strided_slice %77 {offsets = [0, 0, 0], sizes = [7, 8, 64], strides = [1, 1, 1]} : vector<7x8x128xbf16> to vector<7x8x64xbf16>
    %79 = vector.extract_strided_slice %77 {offsets = [0, 0, 64], sizes = [7, 8, 64], strides = [1, 1, 1]} : vector<7x8x128xbf16> to vector<7x8x64xbf16>
    %cst_40 = arith.constant 0.000000e+00 : bf16
    %80 = vector.broadcast %cst_40 : bf16 to vector<7x1x64xbf16>
    %81 = vector.extract_strided_slice %79 {offsets = [0, 0, 0], sizes = [7, 7, 64], strides = [1, 1, 1]} : vector<7x8x64xbf16> to vector<7x7x64xbf16>
    %82 = tpu.concatenate %80, %81 in 1 : vector<7x1x64xbf16>, vector<7x7x64xbf16> -> vector<7x8x64xbf16>
    %83 = vector.extract_strided_slice %78 {offsets = [0, 1, 0], sizes = [7, 7, 64], strides = [1, 1, 1]} : vector<7x8x64xbf16> to vector<7x7x64xbf16>
    %84 = tpu.concatenate %83, %80 in 1 : vector<7x7x64xbf16>, vector<7x1x64xbf16> -> vector<7x8x64xbf16>
    %85 = tpu.concatenate %82, %78, %79, %84 in 2 : vector<7x8x64xbf16>, vector<7x8x64xbf16>, vector<7x8x64xbf16>, vector<7x8x64xbf16> -> vector<7x8x256xbf16>
    %86 = vector.shape_cast %85 : vector<7x8x256xbf16> to vector<56x256xbf16>
    %c3 = arith.constant 3 : index
    %c0_41 = arith.constant 0 : index
    %c0_42 = arith.constant 0 : index
    %87 = vector.load %arg4[%c3, %c0_41, %c0_42] : memref<4x256x64xbf16, #tpu.memory_space<vmem>>, vector<1x256x64xbf16>
    %88 = vector.shape_cast %87 : vector<1x256x64xbf16> to vector<256x64xbf16>
    %cst_43 = arith.constant dense<0.000000e+00> : vector<56x64xf32>
    %89 = tpu.matmul %86, %88, %cst_43 {dimension_numbers = #tpu.dot_dimension_numbers<[1], [0], [0], [1], [0, 0, 1, 1], [], []>} : vector<56x256xbf16>, vector<256x64xbf16>, vector<56x64xf32> -> vector<56x64xf32>
    %90 = arith.addf %76, %89 : vector<56x64xf32>
    %c0_44 = arith.constant 0 : index
    %c0_45 = arith.constant 0 : index
    %91 = vector.load %arg7[%c0_44, %c0_45] : memref<64x64xf32, #tpu.memory_space<vmem>>, vector<56x64xf32>
    tpu.vector_store %arg7[%c0_44, %c0_45], %90 {strides = array<i32>} : memref<64x64xf32, #tpu.memory_space<vmem>>, vector<56x64xf32>,
    %c0_46 = arith.constant 0 : index
    %c0_47 = arith.constant 0 : index
    %92 = vector.load %arg7[%c0_46, %c0_47] : memref<64x64xf32, #tpu.memory_space<vmem>>, vector<64x64xf32>
    %93 = vector.shape_cast %92 : vector<64x64xf32> to vector<8x8x64xf32>
    %c0_48 = arith.constant 0 : index
    %c0_49 = arith.constant 0 : index
    %c0_50 = arith.constant 0 : index
    %c0_51 = arith.constant 0 : index
    %94 = vector.load %arg5[%c0_48, %c0_49, %c0_50, %c0_51] : memref<1x8x8x64xf32, #tpu.memory_space<vmem>>, vector<1x8x8x64xf32>
    %95 = vector.shape_cast %94 : vector<1x8x8x64xf32> to vector<8x8x64xf32>
    %96 = vector.shape_cast %93 : vector<8x8x64xf32> to vector<1x8x8x64xf32>
    tpu.vector_store %arg5[%c0_48, %c0_49, %c0_50, %c0_51], %96 {strides = array<i32>} : memref<1x8x8x64xf32, #tpu.memory_space<vmem>>, vector<1x8x8x64xf32>,
    %cst_52 = arith.constant dense<0.000000e+00> : vector<64xf32>
    %97 = vector.multi_reduction <add>, %92, %cst_52 [0] : vector<64x64xf32> to vector<64xf32>
    %98 = vector.shape_cast %97 : vector<64xf32> to vector<1x64xf32>
    %c0_53 = arith.constant 0 : index
    %c0_54 = arith.constant 0 : index
    %c0_55 = arith.constant 0 : index
    %99 = vector.load %arg6[%c0_53, %c0_54, %c0_55] : memref<1x2x64xf32, #tpu.memory_space<vmem>>, vector<1x1x64xf32>
    %100 = vector.shape_cast %99 : vector<1x1x64xf32> to vector<1x64xf32>
    %101 = vector.shape_cast %98 : vector<1x64xf32> to vector<1x1x64xf32>
    tpu.vector_store %arg6[%c0_53, %c0_54, %c0_55], %101 {strides = array<i32>} : memref<1x2x64xf32, #tpu.memory_space<vmem>>, vector<1x1x64xf32>,
    %102 = arith.mulf %92, %92 : vector<64x64xf32>
    %cst_56 = arith.constant dense<0.000000e+00> : vector<64xf32>
    %103 = vector.multi_reduction <add>, %102, %cst_56 [0] : vector<64x64xf32> to vector<64xf32>
    %104 = vector.shape_cast %103 : vector<64xf32> to vector<1x64xf32>
    %c0_57 = arith.constant 0 : index
    %c1_58 = arith.constant 1 : index
    %c0_59 = arith.constant 0 : index
    %105 = vector.load %arg6[%c0_57, %c1_58, %c0_59] : memref<1x2x64xf32, #tpu.memory_space<vmem>>, vector<1x1x64xf32>
    %106 = vector.shape_cast %105 : vector<1x1x64xf32> to vector<1x64xf32>
    %107 = vector.shape_cast %104 : vector<1x64xf32> to vector<1x1x64xf32>
    tpu.vector_store %arg6[%c0_57, %c1_58, %c0_59], %107 {strides = array<i32>} : memref<1x2x64xf32, #tpu.memory_space<vmem>>, vector<1x1x64xf32>,
    return
  }
  func.func @transform_0(%arg0: i32) -> (i32, i32, i32, i32, i32) {
    %c0_i32 = arith.constant 0 : i32
    %c0_i32_0 = arith.constant 0 : i32
    %c0_i32_1 = arith.constant 0 : i32
    %c0_i32_2 = arith.constant 0 : i32
    %c0_i32_3 = arith.constant 0 : i32
    return %arg0, %c0_i32, %c0_i32_0, %c0_i32_1, %c0_i32_2 : i32, i32, i32, i32, i32
  }
  func.func @transform_1(%arg0: i32) -> (i32, i32) {
    %c0_i32 = arith.constant 0 : i32
    %c0_i32_0 = arith.constant 0 : i32
    %c0_i32_1 = arith.constant 0 : i32
    return %c0_i32, %c0_i32_0 : i32, i32
  }
  func.func @transform_2(%arg0: i32) -> (i32, i32) {
    %c0_i32 = arith.constant 0 : i32
    %c0_i32_0 = arith.constant 0 : i32
    %c0_i32_1 = arith.constant 0 : i32
    return %c0_i32, %c0_i32_0 : i32, i32
  }
  func.func @transform_3(%arg0: i32) -> (i32, i32, i32) {
    %c0_i32 = arith.constant 0 : i32
    %c0_i32_0 = arith.constant 0 : i32
    %c0_i32_1 = arith.constant 0 : i32
    %c0_i32_2 = arith.constant 0 : i32
    return %c0_i32, %c0_i32_0, %c0_i32_1 : i32, i32, i32
  }
  func.func @transform_4(%arg0: i32) -> (i32, i32, i32, i32) {
    %c0_i32 = arith.constant 0 : i32
    %c0_i32_0 = arith.constant 0 : i32
    %c0_i32_1 = arith.constant 0 : i32
    %c0_i32_2 = arith.constant 0 : i32
    return %arg0, %c0_i32, %c0_i32_0, %c0_i32_1 : i32, i32, i32, i32
  }
  func.func @transform_5(%arg0: i32) -> (i32, i32, i32) {
    %c0_i32 = arith.constant 0 : i32
    %c0_i32_0 = arith.constant 0 : i32
    %c0_i32_1 = arith.constant 0 : i32
    return %arg0, %c0_i32, %c0_i32_0 : i32, i32, i32
  }
}

module attributes {stable_mosaic.version = 11 : i64} {
  func.func @_bn_lrelu_kernel(%arg0: i32, %arg1: memref<1x8x4x128xf32, #tpu.memory_space<vmem>>, %arg2: memref<1x128xf32, #tpu.memory_space<vmem>>, %arg3: memref<1x128xf32, #tpu.memory_space<vmem>>, %arg4: memref<1x8x4x128xf32, #tpu.memory_space<vmem>>) attributes {dimension_semantics = [#tpu.dimension_semantics<parallel>], iteration_bounds = array<i64: 2>, scalar_prefetch = 0 : i64, scratch_operands = 0 : i64, tpu.core_type = #tpu.core_type<tc>, window_params = [{transform_indices = @transform_0, window_bounds = array<i64: 1, 8, 4, 128>}, {pipeline_mode = #tpu.pipeline_mode<synchronous>, transform_indices = @transform_1, window_bounds = array<i64: 1, 128>}, {pipeline_mode = #tpu.pipeline_mode<synchronous>, transform_indices = @transform_2, window_bounds = array<i64: 1, 128>}, {transform_indices = @transform_3, window_bounds = array<i64: 1, 8, 4, 128>}]} {
    %c0 = arith.constant 0 : index
    %c0_0 = arith.constant 0 : index
    %c0_1 = arith.constant 0 : index
    %c0_2 = arith.constant 0 : index
    %0 = vector.load %arg1[%c0, %c0_0, %c0_1, %c0_2] : memref<1x8x4x128xf32, #tpu.memory_space<vmem>>, vector<1x8x4x128xf32>
    %c0_3 = arith.constant 0 : index
    %c0_4 = arith.constant 0 : index
    %1 = vector.load %arg2[%c0_3, %c0_4] : memref<1x128xf32, #tpu.memory_space<vmem>>, vector<1x128xf32>
    %2 = vector.shape_cast %1 : vector<1x128xf32> to vector<1x1x1x128xf32>
    %3 = vector.broadcast %2 : vector<1x1x1x128xf32> to vector<1x8x4x128xf32>
    %4 = arith.mulf %0, %3 : vector<1x8x4x128xf32>
    %c0_5 = arith.constant 0 : index
    %c0_6 = arith.constant 0 : index
    %5 = vector.load %arg3[%c0_5, %c0_6] : memref<1x128xf32, #tpu.memory_space<vmem>>, vector<1x128xf32>
    %6 = vector.shape_cast %5 : vector<1x128xf32> to vector<1x1x1x128xf32>
    %7 = vector.broadcast %6 : vector<1x1x1x128xf32> to vector<1x8x4x128xf32>
    %8 = arith.addf %4, %7 : vector<1x8x4x128xf32>
    %cst = arith.constant 0.000000e+00 : f32
    %9 = vector.broadcast %cst : f32 to vector<1x8x4x128xf32>
    %10 = arith.cmpf oge, %8, %9 : vector<1x8x4x128xf32>
    %cst_7 = arith.constant 1.000000e-01 : f32
    %11 = vector.broadcast %cst_7 : f32 to vector<1x8x4x128xf32>
    %12 = arith.mulf %11, %8 : vector<1x8x4x128xf32>
    %13 = arith.select %10, %8, %12 : vector<1x8x4x128xi1>, vector<1x8x4x128xf32>
    %c0_8 = arith.constant 0 : index
    %c0_9 = arith.constant 0 : index
    %c0_10 = arith.constant 0 : index
    %c0_11 = arith.constant 0 : index
    %14 = vector.load %arg4[%c0_8, %c0_9, %c0_10, %c0_11] : memref<1x8x4x128xf32, #tpu.memory_space<vmem>>, vector<1x8x4x128xf32>
    tpu.vector_store %arg4[%c0_8, %c0_9, %c0_10, %c0_11], %13 {strides = array<i32>} : memref<1x8x4x128xf32, #tpu.memory_space<vmem>>, vector<1x8x4x128xf32>,
    return
  }
  func.func @transform_0(%arg0: i32) -> (i32, i32, i32, i32) {
    %c0_i32 = arith.constant 0 : i32
    %c0_i32_0 = arith.constant 0 : i32
    %c0_i32_1 = arith.constant 0 : i32
    %c0_i32_2 = arith.constant 0 : i32
    return %arg0, %c0_i32, %c0_i32_0, %c0_i32_1 : i32, i32, i32, i32
  }
  func.func @transform_1(%arg0: i32) -> (i32, i32) {
    %c0_i32 = arith.constant 0 : i32
    %c0_i32_0 = arith.constant 0 : i32
    %c0_i32_1 = arith.constant 0 : i32
    return %c0_i32, %c0_i32_0 : i32, i32
  }
  func.func @transform_2(%arg0: i32) -> (i32, i32) {
    %c0_i32 = arith.constant 0 : i32
    %c0_i32_0 = arith.constant 0 : i32
    %c0_i32_1 = arith.constant 0 : i32
    return %c0_i32, %c0_i32_0 : i32, i32
  }
  func.func @transform_3(%arg0: i32) -> (i32, i32, i32, i32) {
    %c0_i32 = arith.constant 0 : i32
    %c0_i32_0 = arith.constant 0 : i32
    %c0_i32_1 = arith.constant 0 : i32
    %c0_i32_2 = arith.constant 0 : i32
    return %arg0, %c0_i32, %c0_i32_0, %c0_i32_1 : i32, i32, i32, i32
  }
}

</mosaic_0001>

<bundles_post_ra>
// kernel: tile.28
= control target key start
LH: loop header
LB: loop body
LE: loop exit
PB: predicated region body
PF: predicated region fallthrough
CT: control target
= control target key end

     0   :  { %s22_s0 = inlined_call_operand.vmem [shape: f32[64], index: 0, kind: input, shape index: {}]   ;;  %s23_s1 = inlined_call_operand.vmem [shape: f32[2,64], index: 1, kind: output, shape index: {}]  }
   0x1   :  { %v4_v0 = vld [vmem:[%s22_s0] ss:$0 sm:$0xff] }
   0x2   :  { %5 = vst [vmem:[%s23_s1] sm:$0x3] %v4_v0 }

// kernel: tile.29
= control target key start
LH: loop header
LB: loop body
LE: loop exit
PB: predicated region body
PF: predicated region fallthrough
CT: control target
= control target key end

     0   :  { %vm7_vm0 = vcmask 523264   ;;  %vm13_vm1 = vcmask 1048064   ;;  %s39_s0 = inlined_call_operand.vmem [shape: f32[2,64], index: 0, kind: input, shape index: {}]   ;;  %s40_s1 = inlined_call_operand.vmem [shape: f32[1,128], index: 1, kind: output, shape index: {}]  }
   0x1   :  { %v4_v0 = vld [vmem:[%s39_s0] sm:$0x3]  ;;  %s22_s0 = smov 64  }
   0x2   :  { %5 = vst [vmem:[#allocation1] sm:$0x3] %v4_v0 }
   0x9   :  { %v10_v1 = vld [vmem:[#allocation1 + $0x1] sm:$0x1]   ;;  %v6_v2 = vld [vmem:[#allocation1] sm:$0x1]  }
   0xa   :  { %11 = vrot.lane.b32.xlu0 %v10_v1, %s22_s0  ;;  %8 = vst.msk [vmem:[#allocation0] sm:$0x1] %vm7_vm0, %v6_v2  }
  0x7c   :  { %v12_v3 = vpop.permute.xlu0 %11  }
  0x7d   :  { %14 = vst.msk [vmem:[#allocation0] sm:$0x1] %vm13_vm1, %v12_v3  }
  0x84   :  { %v18_v4 = vld [vmem:[#allocation0] sm:$0x1] }
  0x85   :  { %20 = vst [vmem:[%s40_s1] sm:$0x1] %v18_v4 }

// kernel: dis_block_forward.5
= control target key start
LH: loop header
LB: loop body
LE: loop exit
PB: predicated region body
PF: predicated region fallthrough
CT: control target
= control target key end

     0   :  { %s347_s12 = smov 0   ;;  %s380_s0 = inlined_call_operand.vmem [shape: f32[2,8,4,128], index: 0, kind: input, shape index: {}]   ;;  %s381_s1 = inlined_call_operand.vmem [shape: f32[1,128], index: 1, kind: input, shape index: {}]   ;;  %s382_s2 = inlined_call_operand.vmem [shape: f32[1,128], index: 2, kind: input, shape index: {}]   ;;  %s383_s3 = inlined_call_operand.vmem [shape: f32[2,8,4,128], index: 3, kind: output, shape index: {}]  }
   0x1 LB: > { %s296_s13 = sadd.s32 4294967295, %s325_s12   ;;  %p300_p0 = scmp.ge.s32.totalorder %s325_s12, 1  ;;  %s325_s12 = sphi %s347_s12, %s13_s12  }
   0x2   : > { %p137_p1 = scmp.lt.s32.totalorder %s325_s12, 3 }
   0x4   : > { %p138_p2 = pnand %p300_p0, %p137_p1 }
   0x5   : > { %p161_p3 = scmp.lt.s32.totalorder (!%p138_p2), %s296_s13, 1  ;;  %v305_v0 = vld [vmem:[%s381_s1] ss:$0 sm:$0xff] (!%p138_p2) }
   0x6   : > { %141 = sbr.rel (%p138_p2) target bundleno = 32 (0x20), region = 32  ;;  %v306_v1 = vld [vmem:[%s382_s2] ss:$0 sm:$0xff] (!%p138_p2) }
   0xd   : > { %s385_s13 = smov (!%p161_p3, %s296_s13), 1 }
   0xe   : > { %s309_s14 = sshll.u32 %s385_s13, 5 }
   0xf   : > { %s165_s19 = scalar_lea.vmem %s380_s0, %s309_s14  ;;  %s367_s24 = scalar_lea.vmem %s383_s3, %s309_s14 }
  0x10   : > { %v171_v2 = vld [vmem:[%s165_s19] sm:$0xf]  ;;  %v172_v3 = vld [vmem:[%s165_s19 + $0x4] sm:$0xf]  ;;  %v173_v4 = vld [vmem:[%s165_s19 + $0x8] sm:$0xf] }
  0x11   : > { %v186_v5 = vmul.f32 %v305_v0, %v171_v2  ;;  %v187_v6 = vmul.f32 %v305_v0, %v172_v3  ;;  %v188_v7 = vmul.f32 %v305_v0, %v173_v4  ;;  %v174_v8 = vld [vmem:[%s165_s19 + $0xc] sm:$0xf]  ;;  %v175_v9 = vld [vmem:[%s165_s19 + $0x10] sm:$0xf]  ;;  %v176_v10 = vld [vmem:[%s165_s19 + $0x14] sm:$0xf] }
  0x12   : > { %v189_v11 = vmul.f32 %v305_v0, %v174_v8  ;;  %v190_v12 = vmul.f32 %v305_v0, %v175_v9  ;;  %v191_v13 = vmul.f32 %v305_v0, %v176_v10  ;;  %v177_v14 = vld [vmem:[%s165_s19 + $0x18] sm:$0xf]  ;;  %v178_v15 = vld [vmem:[%s165_s19 + $0x1c] sm:$0xf] }
  0x13   : > { %v201_v16 = vadd.f32 %v306_v1, %v186_v5  ;;  %v202_v17 = vadd.f32 %v306_v1, %v187_v6  ;;  %v203_v18 = vadd.f32 %v306_v1, %v188_v7  ;;  %v192_v19 = vmul.f32 %v305_v0, %v177_v14 }
  0x14   : > { %v204_v20 = vadd.f32 %v306_v1, %v189_v11  ;;  %v205_v21 = vadd.f32 %v306_v1, %v190_v12  ;;  %v206_v22 = vadd.f32 %v306_v1, %v191_v13  ;;  %v193_v23 = vmul.f32 %v305_v0, %v178_v15 }
  0x15   : > { %vm209_vm0 = vcmp.ge.f32.partialorder %v201_v16, 0.0  ;;  %v217_v24 = vmul.f32 0.1, %v201_v16  ;;  %vm210_vm1 = vcmp.ge.f32.partialorder %v202_v17, 0.0  ;;  %v218_v25 = vmul.f32 0.1, %v202_v17 }
  0x16   : > { %vm211_vm2 = vcmp.ge.f32.partialorder %v203_v18, 0.0  ;;  %v219_v26 = vmul.f32 0.1, %v203_v18  ;;  %vm212_vm3 = vcmp.ge.f32.partialorder %v204_v20, 0.0  ;;  %v220_v27 = vmul.f32 0.1, %v204_v20 }
  0x17   : > { %v225_v28 = vsel %vm209_vm0, %v201_v16, %v217_v24  ;;  %v226_v29 = vsel %vm210_vm1, %v202_v17, %v218_v25  ;;  %vm213_vm4 = vcmp.ge.f32.partialorder %v205_v21, 0.0  ;;  %v221_v30 = vmul.f32 0.1, %v205_v21 }
  0x18   : > { %233 = vst [vmem:[%s367_s24] sm:$0xf] %v225_v28  ;;  %234 = vst [vmem:[%s367_s24 + $0x4] sm:$0xf] %v226_v29  ;;  %v227_v31 = vsel %vm211_vm2, %v203_v18, %v219_v26  ;;  %v228_v32 = vsel %vm212_vm3, %v204_v20, %v220_v27  ;;  %vm214_vm5 = vcmp.ge.f32.partialorder %v206_v22, 0.0  ;;  %v222_v33 = vmul.f32 0.1, %v206_v22 }
  0x19   : > { %235 = vst [vmem:[%s367_s24 + $0x8] sm:$0xf] %v227_v31  ;;  %236 = vst [vmem:[%s367_s24 + $0xc] sm:$0xf] %v228_v32  ;;  %v229_v34 = vsel %vm213_vm4, %v205_v21, %v221_v30  ;;  %v207_v35 = vadd.f32 %v306_v1, %v192_v19  ;;  %v208_v36 = vadd.f32 %v306_v1, %v193_v23 }
  0x1a   : > { %237 = vst [vmem:[%s367_s24 + $0x10] sm:$0xf] %v229_v34  ;;  %v230_v37 = vsel %vm214_vm5, %v206_v22, %v222_v33 }
  0x1b   : > { %238 = vst [vmem:[%s367_s24 + $0x14] sm:$0xf] %v230_v37  ;;  %vm215_vm6 = vcmp.ge.f32.partialorder %v207_v35, 0.0  ;;  %v223_v38 = vmul.f32 0.1, %v207_v35  ;;  %vm216_vm7 = vcmp.ge.f32.partialorder %v208_v36, 0.0 }
  0x1c   : > { %v224_v39 = vmul.f32 0.1, %v208_v36 }
  0x1d   : > { %v231_v40 = vsel %vm215_vm6, %v207_v35, %v223_v38 }
  0x1e   : > { %v232_v41 = vsel %vm216_vm7, %v208_v36, %v224_v39  ;;  %239 = vst [vmem:[%s367_s24 + $0x18] sm:$0xf] %v231_v40 }
  0x1f   : > { %240 = vst [vmem:[%s367_s24 + $0x1c] sm:$0xf] %v232_v41 }
  0x20 PF: > { %s13_s12 = sadd.s32 1, %s325_s12  }
  0x21   : > { %p10_p4 = scmp.ge.s32.totalorder %s13_s12, 4  }
  0x23   :  { %12 = sbr.rel (!%p10_p4) target bundleno = 1 (0x1), region = 62 }

// kernel: dis_block_forward.3
= control target key start
LH: loop header
LB: loop body
LE: loop exit
PB: predicated region body
PF: predicated region fallthrough
CT: control target
= control target key end

     0   :  { %s2799_s12 = smov 0   ;;  %s2801_s13 = smov 0   ;;  %s3286_s0 = inlined_call_operand.vmem [shape: bf16[2,18,9,128], index: 0, kind: input, shape index: {}]   ;;  %s3287_s1 = inlined_call_operand.vmem [shape: bf16[3,256,128], index: 1, kind: input, shape index: {}]   ;;  %s3288_s2 = inlined_call_operand.vmem [shape: bf16[2,16,8,128], index: 2, kind: output, shape index: {0}]   ;;  %s3289_s3 = inlined_call_operand.vmem [shape: f32[2,1,2,128], index: 3, kind: output, shape index: {1}]  }
   0x1   :  { %s2803_s14 = smov 0  }
   0x2 LB: > { %s26_s15 = sadd.s32 1, %s2773_s13  ;;  %p2075_p0 = scmp.ge.s32.totalorder %s2777_s14, 1  ;;  %s2777_s14 = sphi %s2803_s14, %s14_s14   ;;  %s2773_s13 = sphi %s2801_s13, %s3291_s13   ;;  %s2769_s12 = sphi %s2799_s12, %s3290_s12  }
   0x3   : > { %p28_p1 = scmp.ge.s32.totalorder %s26_s15, 2  ;;  %p156_p2 = scmp.lt.s32.totalorder %s2777_s14, 3 }
   0x5   : > { %s3293_s15 = smov (%p28_p1, %s26_s15), 0  ;;  %p157_p3 = pnand %p2075_p0, %p156_p2 }
   0x6   : > { %v2635_v0 = vld [vmem:[%s3287_s1 + $0x40] sm:$0xff] (!%p157_p3)   ;;  %p191_p4 = scmp.lt.s32.totalorder (!%p157_p3), %s2769_s12, 1  ;;  %v2637_v2 = vld [vmem:[%s3287_s1 + $0x48] sm:$0xff] (!%p157_p3)   ;;  %v2639_v4 = vld [vmem:[%s3287_s1 + $0x50] sm:$0xff] (!%p157_p3)  }
   0x7   : > { %160 = sbr.rel (%p157_p3) target bundleno = 365 (0x16d), region = 28  ;;  %v2636_v1 = vld [vmem:[%s3287_s1] sm:$0xff] (!%p157_p3)   ;;  %2402 = vmatprep.subr.bf16.mxu0 (!%p157_p3), %v2635_v0  ;;  %2594 = vmatprep.subr.bf16.mxu1 (!%p157_p3), %v2635_v0  ;;  %v2638_v3 = vld [vmem:[%s3287_s1 + $0x8] sm:$0xff] (!%p157_p3)   ;;  %v2640_v5 = vld [vmem:[%s3287_s1 + $0x10] sm:$0xff] (!%p157_p3)  }
   0x8   : > { %2403 = vmatpush3.bf16.msra.mxu0 (!%p157_p3), %v2636_v1  ;;  %2602 = vmatpush3.bf16.msra.mxu1 (!%p157_p3), %v2636_v1  ;;  %v2641_v6 = vld [vmem:[%s3287_s1 + $0x58] sm:$0xff] (!%p157_p3)   ;;  %v2643_v8 = vld [vmem:[%s3287_s1 + $0x60] sm:$0xff] (!%p157_p3)   ;;  %v2645_v10 = vld [vmem:[%s3287_s1 + $0x68] sm:$0xff] (!%p157_p3)  }
   0x9   : > { %2404 = vmatprep.subr.bf16.mxu0 (!%p157_p3), %v2637_v2  ;;  %2595 = vmatprep.subr.bf16.mxu1 (!%p157_p3), %v2637_v2  ;;  %v2642_v7 = vld [vmem:[%s3287_s1 + $0x18] sm:$0xff] (!%p157_p3)   ;;  %v2644_v9 = vld [vmem:[%s3287_s1 + $0x20] sm:$0xff] (!%p157_p3)   ;;  %v2646_v22 = vld [vmem:[%s3287_s1 + $0x28] sm:$0xff] (!%p157_p3)  }
   0xa   : > { %v2647_v23 = vld [vmem:[%s3287_s1 + $0x70] sm:$0xff] (!%p157_p3)   ;;  %v2649_v39 = vld [vmem:[%s3287_s1 + $0x78] sm:$0xff] (!%p157_p3)   ;;  %v2657_v45 = vld [vmem:[%s3287_s1 + $0xc0] sm:$0xff] (!%p157_p3)  }
   0xb   : > { %v2648_v36 = vld [vmem:[%s3287_s1 + $0x30] sm:$0xff] (!%p157_p3)   ;;  %v2650_v42 = vld [vmem:[%s3287_s1 + $0x38] sm:$0xff] (!%p157_p3)   ;;  %v2658_v47 = vld [vmem:[%s3287_s1 + $0x140] sm:$0xff] (!%p157_p3)  }
   0xc   : > { %2405 = vmatpush3.bf16.msra.mxu0 (!%p157_p3), %v2638_v3  ;;  %2603 = vmatpush3.bf16.msra.mxu1 (!%p157_p3), %v2638_v3  ;;  %v2659_v51 = vld [vmem:[%s3287_s1 + $0x80] sm:$0xff] (!%p157_p3)   ;;  %v2661_v63 = vld [vmem:[%s3287_s1 + $0xc8] sm:$0xff] (!%p157_p3)  }
   0xd   : > { %2406 = vmatprep.subr.bf16.mxu0 (!%p157_p3), %v2639_v4  ;;  %2596 = vmatprep.subr.bf16.mxu1 (!%p157_p3), %v2639_v4  ;;  %v2660_v52 = vld [vmem:[%s3287_s1 + $0x100] sm:$0xff] (!%p157_p3)   ;;  %v2662_v0 = vld [vmem:[%s3287_s1 + $0x148] sm:$0xff] (!%p157_p3)  }
   0xe   : > { %s3295_s12 = smov (!%p191_p4, %s2769_s12), 1 }
   0xf   : > { %s2610_s30 = smul.u32 144, %s3295_s12 }
  0x10   : > { %2407 = vmatpush3.bf16.msra.mxu0 %v2640_v5  ;;  %2604 = vmatpush3.bf16.msra.mxu1 %v2640_v5 }
  0x11   : > { %2408 = vmatprep.subr.bf16.mxu0 %v2641_v6  ;;  %2597 = vmatprep.subr.bf16.mxu1 %v2641_v6  ;;  %s2850_s10 = scalar_lea.vmem %s3286_s0, %s2610_s30  ;;  %s2079_s30 = sshll.u32 %s3295_s12, 1 }
  0x12   : > { %v2859_v11 = vld [vmem:[%s2850_s10] sm:$0xf]  ;;  %v219_v12 = vld [vmem:[%s2850_s10 + $0x4] sm:$0x1]  ;;  %v2863_v13 = vld [vmem:[%s2850_s10 + $0x8] sm:$0xf]  ;;  %s212_s6 = scalar_lea.vmem %s3289_s3, %s2079_s30 }
  0x13   : > { %v221_v14 = vld [vmem:[%s2850_s10 + $0xc] sm:$0x1]  ;;  %v2080_v15 = vcombine.low %v2859_v11, %v219_v12  ;;  %v2868_v16 = vld [vmem:[%s2850_s10 + $0x40] sm:$0xf]  ;;  %v235_v17 = vld [vmem:[%s2850_s10 + $0x44] sm:$0x1]  ;;  %v2096_v57 = vcombine.low %v2859_v11, %v2863_v13 }
  0x14   : > { %2409 = vmatpush3.bf16.msra.mxu0 %v2642_v7  ;;  %2605 = vmatpush3.bf16.msra.mxu1 %v2642_v7  ;;  %v2081_v18 = vcombine.low %v2863_v13, %v221_v14  ;;  %v2873_v19 = vld [vmem:[%s2850_s10 + $0x48] sm:$0xf]  ;;  %v237_v20 = vld [vmem:[%s2850_s10 + $0x4c] sm:$0x1]  ;;  %v2088_v21 = vcombine.low %v2868_v16, %v235_v17  ;;  %v2900_v48 = vld [vmem:[%s2850_s10 + $0x10] sm:$0xf] }
  0x15   : > { %2410 = vmatprep.subr.bf16.mxu0 %v2643_v8  ;;  %2598 = vmatprep.subr.bf16.mxu1 %v2643_v8  ;;  %v331_v24 = vshrl.u32 %v2080_v15, 16  ;;  %v333_v25 = vshll.u32 %v2080_v15, 16  ;;  %v2089_v26 = vcombine.low %v2873_v19, %v237_v20  ;;  %v223_v49 = vld [vmem:[%s2850_s10 + $0x14] sm:$0x1]  ;;  %v2904_v50 = vld [vmem:[%s2850_s10 + $0x18] sm:$0xf]  ;;  %v2104_v58 = vcombine.low %v2868_v16, %v2873_v19 }
  0x16   : > { %v338_v27 = vshrl.u32 %v2081_v18, 16  ;;  %v340_v28 = vshll.u32 %v2081_v18, 16  ;;  %v387_v29 = vshrl.u32 %v2088_v21, 16  ;;  %v389_v30 = vshll.u32 %v2088_v21, 16  ;;  %v225_v53 = vld [vmem:[%s2850_s10 + $0x1c] sm:$0x1] }
  0x17   : > { %v335_v31 = vrot.slane %v333_v25, 1  ;;  %v394_v32 = vshrl.u32 %v2089_v26, 16  ;;  %v396_v33 = vshll.u32 %v2089_v26, 16  ;;  %v2082_v54 = vcombine.low %v2900_v48, %v223_v49  ;;  %v2915_v55 = vld [vmem:[%s2850_s10 + $0x50] sm:$0xf]  ;;  %v2663_v8 = vld [vmem:[%s3287_s1 + $0x88] sm:$0xff]  }
  0x18   : > { %2411 = vmatpush3.bf16.msra.mxu0 %v2644_v9  ;;  %2606 = vmatpush3.bf16.msra.mxu1 %v2644_v9  ;;  %v342_v34 = vrot.slane %v340_v28, 1  ;;  %v391_v35 = vrot.slane %v389_v30, 1  ;;  %v239_v56 = vld [vmem:[%s2850_s10 + $0x54] sm:$0x1]  ;;  %v2083_v59 = vcombine.low %v2904_v50, %v225_v53  ;;  %v240_v60 = vld [vmem:[%s2850_s10 + $0x58] sm:$0xf]  ;;  %v2098_v25 = vcombine.low %v2900_v48, %v2904_v50 }
  0x19   : > { %2412 = vmatprep.subr.bf16.mxu0 %v2645_v10  ;;  %2599 = vmatprep.subr.bf16.mxu1 %v2645_v10  ;;  %v336_v37 = vor.u32 %v335_v31, %v331_v24  ;;  %v398_v38 = vrot.slane %v396_v33, 1  ;;  %v241_v61 = vld [vmem:[%s2850_s10 + $0x5c] sm:$0x1]  ;;  %v2090_v62 = vcombine.low %v2915_v55, %v239_v56  ;;  %v345_v1 = vshrl.u32 %v2082_v54, 16  ;;  %v2664_v9 = vld [vmem:[%s3287_s1 + $0x108] sm:$0xff]   ;;  %v2671_v17 = vld [vmem:[%s3287_s1 + $0xd0] sm:$0xff]  }
  0x1a   : > { %v343_v40 = vor.u32 %v342_v34, %v338_v27  ;;  %v392_v41 = vor.u32 %v391_v35, %v387_v29  ;;  %v347_v2 = vshll.u32 %v2082_v54, 16  ;;  %v2091_v3 = vcombine.low %v240_v60, %v241_v61  ;;  %v2672_v20 = vld [vmem:[%s3287_s1 + $0x150] sm:$0xff]   ;;  %v2675_v27 = vld [vmem:[%s3287_s1 + $0xd8] sm:$0xff]   ;;  %v226_v30 = vld [vmem:[%s2850_s10 + $0x20] sm:$0xf] }
  0x1b   : > { %v399_v43 = vor.u32 %v398_v38, %v394_v32  ;;  %v352_v4 = vshrl.u32 %v2083_v59, 16  ;;  %v354_v5 = vshll.u32 %v2083_v59, 16  ;;  %v401_v6 = vshrl.u32 %v2090_v62, 16  ;;  %v2676_v29 = vld [vmem:[%s3287_s1 + $0x158] sm:$0xff]   ;;  %v227_v31 = vld [vmem:[%s2850_s10 + $0x24] sm:$0x1] }
  0x1c   : > { %2413 = vmatpush3.bf16.msra.mxu0 %v2646_v22  ;;  %2607 = vmatpush3.bf16.msra.mxu1 %v2646_v22  ;;  %v2097_v44 = vcombine.low %v336_v37, %v343_v40  ;;  %v403_v7 = vshll.u32 %v2090_v62, 16  ;;  %v349_v10 = vrot.slane %v347_v2, 1  ;;  %v408_v11 = vshrl.u32 %v2091_v3, 16  ;;  %v2673_v22 = vld [vmem:[%s3287_s1 + $0x90] sm:$0xff]   ;;  %v228_v32 = vld [vmem:[%s2850_s10 + $0x28] sm:$0xf] }
  0x1d   : > { %2414 = vmatprep.subr.bf16.mxu0 %v2647_v23  ;;  %2600 = vmatprep.subr.bf16.mxu1 %v2647_v23  ;;  %v2105_v46 = vcombine.low %v392_v41, %v399_v43  ;;  %v410_v12 = vshll.u32 %v2091_v3, 16  ;;  %v356_v13 = vrot.slane %v354_v5, 1  ;;  %v2674_v23 = vld [vmem:[%s3287_s1 + $0x110] sm:$0xff]   ;;  %v2106_v26 = vcombine.low %v2915_v55, %v240_v60  ;;  %v2677_v33 = vld [vmem:[%s3287_s1 + $0x98] sm:$0xff]   ;;  %v229_v35 = vld [vmem:[%s2850_s10 + $0x2c] sm:$0x1] }
  0x1e   : > { %650 = vmatprep.mubr.bf16.mxu0 %v2097_v44  ;;  %v405_v14 = vrot.slane %v403_v7, 1  ;;  %v350_v15 = vor.u32 %v349_v10, %v345_v1  ;;  %v2678_v34 = vld [vmem:[%s3287_s1 + $0x118] sm:$0xff]   ;;  %v242_v37 = vld [vmem:[%s2850_s10 + $0x60] sm:$0xf]  ;;  %v243_v38 = vld [vmem:[%s2850_s10 + $0x64] sm:$0x1]  ;;  %v2100_v1 = vcombine.low %v226_v30, %v228_v32 }
  0x1f   : > { %682 = vmatprep.mubr.bf16.mxu1 %v2105_v46  ;;  %v412_v16 = vrot.slane %v410_v12, 1  ;;  %v357_v18 = vor.u32 %v356_v13, %v352_v4  ;;  %v244_v40 = vld [vmem:[%s2850_s10 + $0x68] sm:$0xf]  ;;  %v245_v41 = vld [vmem:[%s2850_s10 + $0x6c] sm:$0x1]  ;;  %v2685_v46 = vld [vmem:[%s3287_s1 + $0xe0] sm:$0xff]  }
  0x20   : > { %2415 = vmatpush3.bf16.msra.mxu0 %v2648_v36  ;;  %2608 = vmatpush3.bf16.msra.mxu1 %v2648_v36  ;;  %v406_v19 = vor.u32 %v405_v14, %v401_v6  ;;  %v2084_v36 = vcombine.low %v226_v30, %v227_v31  ;;  %v2687_v55 = vld [vmem:[%s3287_s1 + $0xa0] sm:$0xff]   ;;  %v2690_v2 = vld [vmem:[%s3287_s1 + $0x168] sm:$0xff]   ;;  %v2108_v4 = vcombine.low %v242_v37, %v244_v40  ;;  %v232_v10 = vld [vmem:[%s2850_s10 + $0x38] sm:$0xf] }
  0x21   : > { %2416 = vmatprep.subr.bf16.mxu0 %v2649_v39  ;;  %2601 = vmatprep.subr.bf16.mxu1 %v2649_v39  ;;  %v413_v21 = vor.u32 %v412_v16, %v408_v11  ;;  %v2099_v24 = vcombine.low %v350_v15, %v357_v18  ;;  %v2085_v39 = vcombine.low %v228_v32, %v229_v35  ;;  %v2688_v60 = vld [vmem:[%s3287_s1 + $0x120] sm:$0xff]   ;;  %v2691_v5 = vld [vmem:[%s3287_s1 + $0xa8] sm:$0xff]   ;;  %v233_v11 = vld [vmem:[%s2850_s10 + $0x3c] sm:$0x1] }
  0x22   : > { %v359_v43 = vshrl.u32 %v2084_v36, 16  ;;  %v361_v44 = vshll.u32 %v2084_v36, 16  ;;  %v2692_v7 = vld [vmem:[%s3287_s1 + $0x128] sm:$0xff]   ;;  %v246_v13 = vld [vmem:[%s2850_s10 + $0x70] sm:$0xf]  ;;  %v2087_v15 = vcombine.low %v232_v10, %v233_v11 }
  0x23   : > { %v2107_v28 = vcombine.low %v406_v19, %v413_v21  ;;  %v366_v48 = vshrl.u32 %v2085_v39, 16  ;;  %v368_v49 = vshll.u32 %v2085_v39, 16  ;;  %v247_v14 = vld [vmem:[%s2850_s10 + $0x74] sm:$0x1]  ;;  %v248_v16 = vld [vmem:[%s2850_s10 + $0x78] sm:$0xf] }
  0x24   : > { %2417 = vmatpush3.bf16.msra.mxu0 %v2650_v42  ;;  %2609 = vmatpush3.bf16.msra.mxu1 %v2650_v42  ;;  %v2092_v42 = vcombine.low %v242_v37, %v243_v38  ;;  %v2094_v18 = vcombine.low %v246_v13, %v247_v14  ;;  %v2701_v31 = vld [vmem:[%s3287_s1 + $0xb0] sm:$0xff]   ;;  %v2703_v39 = vld [vmem:[%s3287_s1 + $0xf8] sm:$0xff]  }
  0x25   : > { %2466 = vmatprep.subr.bf16.mxu1 %v2657_v45  ;;  %2530 = vmatprep.subr.bf16.mxu0 %v2658_v47  ;;  %v2093_v45 = vcombine.low %v244_v40, %v245_v41  ;;  %v2686_v47 = vld [vmem:[%s3287_s1 + $0x160] sm:$0xff]   ;;  %v370_v56 = vrot.slane %v368_v49, 1  ;;  %v2702_v36 = vld [vmem:[%s3287_s1 + $0x130] sm:$0xff]   ;;  %v2129_v49 = vld [vmem:[%s2850_s10 + $0xc] sm:$0x1] }
  0x26   : > { %v415_v50 = vshrl.u32 %v2092_v42, 16 }
  0x27   : > { %651 = vmatmul.mubr.bf16.vlgmr.msra.gmra.mrb[0].mxu0 %v2096_v57  ;;  %683 = vmatmul.mubr.bf16.vlgmr.msra.gmra.mrb[0].mxu1 %v2104_v58  ;;  %v422_v53 = vshrl.u32 %v2093_v45, 16  ;;  %v424_v54 = vshll.u32 %v2093_v45, 16  ;;  %v371_v61 = vor.u32 %v370_v56, %v366_v48  ;;  %v2705_v45 = vld [vmem:[%s3287_s1 + $0xb8] sm:$0xff]   ;;  %v3030_v48 = vld [vmem:[%s2850_s10 + $0x8] sm:$0xf] }
  0x28   : > { %2467 = vmatpush3.bf16.msra.mxu1 %v2659_v51  ;;  %2531 = vmatpush3.bf16.msra.mxu0 %v2660_v52  ;;  %v417_v51 = vshll.u32 %v2092_v42, 16  ;;  %v363_v52 = vrot.slane %v361_v44, 1  ;;  %v2704_v42 = vld [vmem:[%s3287_s1 + $0x178] sm:$0xff]   ;;  %v2110_v44 = vcombine.low %v246_v13, %v248_v16 }
  0x29   : > { %2468 = vmatprep.subr.bf16.mxu1 %v2661_v63  ;;  %2532 = vmatprep.subr.bf16.mxu0 %v2662_v0  ;;  %v426_v59 = vrot.slane %v424_v54, 1  ;;  %v2689_v63 = vld [vmem:[%s3287_s1 + $0xe8] sm:$0xff]   ;;  %v2241_v54 = vld [vmem:[%s2850_s10 + $0x14] sm:$0x1]  ;;  %v3044_v56 = vld [vmem:[%s2850_s10 + $0x18] sm:$0xf] }
  0x2a   : > { %658 = vmatprep.mubr.bf16.mxu0 %v2099_v24  ;;  %690 = vmatprep.mubr.bf16.mxu1 %v2107_v28  ;;  %v419_v57 = vrot.slane %v417_v51, 1  ;;  %v364_v58 = vor.u32 %v363_v52, %v359_v43  ;;  %v380_v24 = vshrl.u32 %v2087_v15, 16  ;;  %v2131_v51 = vld [vmem:[%s2850_s10 + $0x14] sm:$0x1]  ;;  %v2160_v52 = vcombine.low %v3030_v48, %v2129_v49  ;;  %v2251_v49 = vld [vmem:[%s2850_s10 + $0x3c] sm:$0x1] }
  0x2b   : > { %v427_v0 = vor.u32 %v426_v59, %v422_v53  ;;  %v3039_v53 = vld [vmem:[%s2850_s10 + $0x10] sm:$0xf]  ;;  %v3049_v59 = vld [vmem:[%s2850_s10 + $0x18] sm:$0xf] }
  0x2c   : > { %2469 = vmatpush3.bf16.msra.mxu1 %v2663_v8  ;;  %2533 = vmatpush3.bf16.msra.mxu0 %v2664_v9  ;;  %v420_v62 = vor.u32 %v419_v57, %v415_v50  ;;  %v2101_v3 = vcombine.low %v364_v58, %v371_v61  ;;  %v230_v8 = vld [vmem:[%s2850_s10 + $0x30] sm:$0xf]  ;;  %v231_v9 = vld [vmem:[%s2850_s10 + $0x34] sm:$0x1]  ;;  %v2243_v57 = vld [vmem:[%s2850_s10 + $0x1c] sm:$0x1]  ;;  %v2272_v58 = vcombine.low %v3039_v53, %v2241_v54 }
  0x2d   : > { %2470 = vmatprep.subr.bf16.mxu1 %v2671_v17  ;;  %2534 = vmatprep.subr.bf16.mxu0 %v2672_v20  ;;  %v2086_v12 = vcombine.low %v230_v8, %v231_v9  ;;  %v249_v17 = vld [vmem:[%s2850_s10 + $0x7c] sm:$0x1]  ;;  %v2102_v41 = vcombine.low %v230_v8, %v232_v10  ;;  %v3034_v50 = vld [vmem:[%s2850_s10 + $0x10] sm:$0xf]  ;;  %v850_v61 = vshll.u32 %v2160_v52, 16 }
  0x2e   : > { %v2109_v6 = vcombine.low %v420_v62, %v427_v0  ;;  %v2095_v21 = vcombine.low %v248_v16, %v249_v17  ;;  %v2273_v62 = vcombine.low %v3044_v56, %v2243_v57  ;;  %v3054_v0 = vld [vmem:[%s2850_s10 + $0x20] sm:$0xf]  ;;  %v2208_v13 = vcombine.low %v3030_v48, %v3034_v50  ;;  %v3066_v16 = vld [vmem:[%s2850_s10 + $0x28] sm:$0xf]  ;;  %v3088_v48 = vld [vmem:[%s2850_s10 + $0x38] sm:$0xf] }
  0x2f   : > { %659 = vmatmul.mubr.bf16.gmra.mrb[4].mxu0 %v2098_v25  ;;  %691 = vmatmul.mubr.bf16.gmra.mrb[4].mxu1 %v2106_v26  ;;  %v373_v19 = vshrl.u32 %v2086_v12, 16  ;;  %v375_v20 = vshll.u32 %v2086_v12, 16  ;;  %v382_v25 = vshll.u32 %v2087_v15, 16  ;;  %v429_v26 = vshrl.u32 %v2094_v18, 16  ;;  %v3059_v10 = vld [vmem:[%s2850_s10 + $0x20] sm:$0xf] }
  0x30   : > { %2471 = vmatpush3.bf16.msra.mxu1 %v2673_v22  ;;  %2535 = vmatpush3.bf16.msra.mxu0 %v2674_v23  ;;  %v2699_v22 = vld [vmem:[%s3287_s1 + $0xf0] sm:$0xff]   ;;  %v438_v30 = vshll.u32 %v2095_v21, 16  ;;  %v1407_v8 = vshll.u32 %v2273_v62, 16  ;;  %v2245_v15 = vld [vmem:[%s2850_s10 + $0x24] sm:$0x1] }
  0x31   : > { %2472 = vmatprep.subr.bf16.mxu1 %v2675_v27  ;;  %2536 = vmatprep.subr.bf16.mxu0 %v2676_v29  ;;  %v2700_v23 = vld [vmem:[%s3287_s1 + $0x170] sm:$0xff]   ;;  %v431_v27 = vshll.u32 %v2094_v18, 16  ;;  %v377_v28 = vrot.slane %v375_v20, 1  ;;  %v436_v29 = vshrl.u32 %v2095_v21, 16  ;;  %v384_v32 = vrot.slane %v382_v25, 1 }
  0x32   : > { %666 = vmatprep.mubr.bf16.mxu0 %v2101_v3  ;;  %698 = vmatprep.mubr.bf16.mxu1 %v2109_v6  ;;  %v440_v35 = vrot.slane %v438_v30, 1  ;;  %v1398_v3 = vshrl.u32 %v2272_v58, 16  ;;  %v852_v6 = vrot.slane %v850_v61, 1  ;;  %v1409_v18 = vrot.slane %v1407_v8, 1  ;;  %v2247_v21 = vld [vmem:[%s2850_s10 + $0x2c] sm:$0x1] }
  0x33   : > { %v385_v37 = vor.u32 %v384_v32, %v380_v24  ;;  %v2274_v30 = vcombine.low %v3059_v10, %v2245_v15  ;;  %v3076_v32 = vld [vmem:[%s2850_s10 + $0x30] sm:$0xf]  ;;  %v3093_v54 = vld [vmem:[%s2850_s10 + $0x38] sm:$0xf]  ;;  %v3097_v61 = vld [vmem:[%s2850_s10 + $0x40] sm:$0xf] }
  0x34   : > { %2473 = vmatpush3.bf16.msra.mxu1 %v2677_v33  ;;  %2537 = vmatpush3.bf16.msra.mxu0 %v2678_v34  ;;  %v433_v33 = vrot.slane %v431_v27, 1  ;;  %v378_v34 = vor.u32 %v377_v28, %v373_v19  ;;  %v441_v40 = vor.u32 %v440_v35, %v436_v29  ;;  %v2137_v27 = vld [vmem:[%s2850_s10 + $0x2c] sm:$0x1]  ;;  %v2320_v35 = vcombine.low %v3039_v53, %v3044_v56 }
  0x35   : > { %2474 = vmatprep.subr.bf16.mxu1 %v2685_v46  ;;  %2538 = vmatprep.subr.bf16.mxu0 %v2686_v47  ;;  %v2706_v47 = vld [vmem:[%s3287_s1 + $0x138] sm:$0xff]  }
  0x36   : > { %v434_v38 = vor.u32 %v433_v33, %v429_v26  ;;  %v2103_v43 = vcombine.low %v378_v34, %v385_v37  ;;  %v3070_v26 = vld [vmem:[%s2850_s10 + $0x28] sm:$0xf]  ;;  %v2139_v33 = vld [vmem:[%s2850_s10 + $0x34] sm:$0x1] }
  0x37   : > { %667 = vmatmul.mubr.bf16.gmra.mrb[8].mxu0 %v2100_v1  ;;  %699 = vmatmul.mubr.bf16.gmra.mrb[8].mxu1 %v2108_v4  ;;  %v1400_v4 = vshll.u32 %v2272_v58, 16  ;;  %v2164_v37 = vcombine.low %v3070_v26, %v2137_v27 }
  0x38   : > { %2475 = vmatpush3.bf16.msra.mxu1 %v2687_v55  ;;  %2539 = vmatpush3.bf16.msra.mxu0 %v2688_v60  ;;  %v2111_v46 = vcombine.low %v434_v38, %v441_v40  ;;  %v2161_v55 = vcombine.low %v3034_v50, %v2131_v51  ;;  %v848_v60 = vshrl.u32 %v2160_v52, 16  ;;  %v3083_v38 = vld [vmem:[%s2850_s10 + $0x30] sm:$0xf] }
  0x39   : > { %2476 = vmatprep.subr.bf16.mxu1 %v2689_v63  ;;  %2540 = vmatprep.subr.bf16.mxu0 %v2690_v2  ;;  %v2133_v63 = vld [vmem:[%s2850_s10 + $0x1c] sm:$0x1]  ;;  %v1402_v12 = vrot.slane %v1400_v4, 1  ;;  %v876_v51 = vshrl.u32 %v2164_v37, 16  ;;  %v878_v52 = vshll.u32 %v2164_v37, 16 }
  0x3a   : > { %674 = vmatprep.mubr.bf16.mxu0 %v2103_v43  ;;  %706 = vmatprep.mubr.bf16.mxu1 %v2111_v46  ;;  %v855_v1 = vshrl.u32 %v2161_v55, 16  ;;  %v857_v2 = vshll.u32 %v2161_v55, 16  ;;  %v2162_v9 = vcombine.low %v3049_v59, %v2133_v63  ;;  %v853_v17 = vor.u32 %v852_v6, %v848_v60  ;;  %v2141_v55 = vld [vmem:[%s2850_s10 + $0x3c] sm:$0x1]  ;;  %v3102_v4 = vld [vmem:[%s2850_s10 + $0x40] sm:$0xf] }
  0x3b   : > { %v1414_v43 = vshll.u32 %v2274_v30, 16 }
  0x3c   : > { %2477 = vmatpush3.bf16.msra.mxu1 %v2691_v5  ;;  %2541 = vmatpush3.bf16.msra.mxu0 %v2692_v7  ;;  %v2135_v5 = vld [vmem:[%s2850_s10 + $0x24] sm:$0x1]  ;;  %v1405_v7 = vshrl.u32 %v2273_v62, 16  ;;  %v859_v11 = vrot.slane %v857_v2, 1  ;;  %v862_v19 = vshrl.u32 %v2162_v9, 16  ;;  %v864_v20 = vshll.u32 %v2162_v9, 16 }
  0x3d   : > { %2478 = vmatprep.subr.bf16.mxu1 %v2699_v22  ;;  %2542 = vmatprep.subr.bf16.mxu0 %v2700_v23  ;;  %v2163_v14 = vcombine.low %v3054_v0, %v2135_v5  ;;  %v1403_v23 = vor.u32 %v1402_v12, %v1398_v3  ;;  %v1416_v50 = vrot.slane %v1414_v43, 1  ;;  %v2143_v62 = vld [vmem:[%s2850_s10 + $0x44] sm:$0x1]  ;;  %v2277_v2 = vcombine.low %v3088_v48, %v2251_v49  ;;  %v2255_v12 = vld [vmem:[%s2850_s10 + $0x4c] sm:$0x1] }
  0x3e   : > { %v860_v22 = vor.u32 %v859_v11, %v855_v1  ;;  %v1410_v28 = vor.u32 %v1409_v18, %v1405_v7  ;;  %v866_v29 = vrot.slane %v864_v20, 1  ;;  %v880_v1 = vrot.slane %v878_v52, 1  ;;  %v2253_v5 = vld [vmem:[%s2850_s10 + $0x44] sm:$0x1]  ;;  %v3108_v11 = vld [vmem:[%s2850_s10 + $0x48] sm:$0xf] }
  0x3f   : > { %675 = vmatmul.mubr.bf16.gmra.mrb[12].mxu0 %v2102_v41  ;;  %707 = vmatmul.mubr.bf16.gmra.mrb[12].mxu1 %v2110_v44  ;;  %v869_v24 = vshrl.u32 %v2163_v14, 16  ;;  %v871_v25 = vshll.u32 %v2163_v14, 16  ;;  %v2210_v7 = vcombine.low %v3049_v59, %v3054_v0  ;;  %v1433_v15 = vshrl.u32 %v2277_v2, 16 }
  0x40   : > { %2479 = vmatpush3.bf16.msra.mxu1 %v2701_v31  ;;  %2543 = vmatpush3.bf16.msra.mxu0 %v2702_v36  ;;  %v2275_v31 = vcombine.low %v3066_v16, %v2247_v21  ;;  %v2209_v34 = vcombine.low %v853_v17, %v860_v22  ;;  %v2321_v40 = vcombine.low %v1403_v23, %v1410_v28  ;;  %v1435_v17 = vshll.u32 %v2277_v2, 16  ;;  %v3150_v2 = vld [vmem:[%s2850_s10 + $0x60] sm:$0xf] }
  0x41   : > { %2480 = vmatprep.subr.bf16.mxu1 %v2703_v39  ;;  %2544 = vmatprep.subr.bf16.mxu0 %v2704_v42  ;;  %v873_v36 = vrot.slane %v871_v25, 1  ;;  %v2249_v39 = vld [vmem:[%s2850_s10 + $0x34] sm:$0x1]  ;;  %v867_v41 = vor.u32 %v866_v29, %v862_v19  ;;  %v1412_v42 = vshrl.u32 %v2274_v30, 16  ;;  %v881_v14 = vor.u32 %v880_v1, %v876_v51  ;;  %v3122_v29 = vld [vmem:[%s2850_s10 + $0x50] sm:$0xf] }
  0x42   : > { %1168 = vmatprep.mubr.bf16.mxu1 %v2209_v34  ;;  %v1421_v46 = vshll.u32 %v2275_v31, 16  ;;  %1718 = vmatprep.mubr.bf16.mxu0 %v2321_v40  ;;  %v2276_v53 = vcombine.low %v3083_v38, %v2249_v39  ;;  %v2166_v59 = vcombine.low %v3093_v54, %v2141_v55  ;;  %v1437_v0 = vrot.slane %v1435_v17, 1  ;;  %v2147_v30 = vld [vmem:[%s2850_s10 + $0x54] sm:$0x1]  ;;  %v3130_v39 = vld [vmem:[%s2850_s10 + $0x58] sm:$0xf] }
  0x43   : > { %v874_v44 = vor.u32 %v873_v36, %v869_v24  ;;  %v1417_v63 = vor.u32 %v1416_v50, %v1412_v42  ;;  %v2167_v21 = vcombine.low %v3097_v61, %v2143_v62  ;;  %v2278_v22 = vcombine.low %v3102_v4, %v2253_v5  ;;  %v2151_v1 = vld [vmem:[%s2850_s10 + $0x64] sm:$0x1]  ;;  %v2263_v17 = vld [vmem:[%s2850_s10 + $0x6c] sm:$0x1] }
  0x44   : > { %2481 = vmatpush3.bf16.msra.mxu1 %v2705_v45  ;;  %2545 = vmatpush3.bf16.msra.mxu0 %v2706_v47  ;;  %v1419_v45 = vshrl.u32 %v2275_v31, 16  ;;  %v2165_v47 = vcombine.low %v3076_v32, %v2139_v33  ;;  %v1423_v57 = vrot.slane %v1421_v46, 1  ;;  %v1426_v3 = vshrl.u32 %v2276_v53, 16  ;;  %v3126_v31 = vld [vmem:[%s2850_s10 + $0x50] sm:$0xf] }
  0x45   : > { %v2211_v56 = vcombine.low %v867_v41, %v874_v44  ;;  %v1428_v9 = vshll.u32 %v2276_v53, 16  ;;  %v2279_v23 = vcombine.low %v3108_v11, %v2255_v12  ;;  %v890_v27 = vshrl.u32 %v2166_v59, 16  ;;  %v2257_v33 = vld [vmem:[%s2850_s10 + $0x54] sm:$0x1]  ;;  %v2259_v44 = vld [vmem:[%s2850_s10 + $0x5c] sm:$0x1] }
  0x46   : > { %v883_v58 = vshrl.u32 %v2165_v47, 16  ;;  %v885_v60 = vshll.u32 %v2165_v47, 16  ;;  %v1424_v6 = vor.u32 %v1423_v57, %v1419_v45  ;;  %v892_v28 = vshll.u32 %v2166_v59, 16 }
  0x47   : > { %1169 = vmatmul.mubr.bf16.vlgmr.msra.gmra.mrb[16].mxu1 %v2208_v13  ;;  %1719 = vmatmul.mubr.bf16.vlgmr.msra.gmra.mrb[16].mxu0 %v2320_v35  ;;  %v2322_v13 = vcombine.low %v3059_v10, %v3066_v16  ;;  %v1430_v20 = vrot.slane %v1428_v9, 1  ;;  %v3118_v10 = vld [vmem:[%s2850_s10 + $0x48] sm:$0xf]  ;;  %v2145_v16 = vld [vmem:[%s2850_s10 + $0x4c] sm:$0x1]  ;;  %v1438_v34 = vor.u32 %v1437_v0, %v1433_v15  ;;  %v897_v35 = vshrl.u32 %v2167_v21, 16 }
  0x48   : > { %1176 = vmatprep.mubr.bf16.mxu1 %v2211_v56  ;;  %v887_v8 = vrot.slane %v885_v60, 1  ;;  %v2323_v18 = vcombine.low %v1417_v63, %v1424_v6  ;;  %v899_v36 = vshll.u32 %v2167_v21, 16  ;;  %v1440_v37 = vshrl.u32 %v2278_v22, 16  ;;  %v3156_v9 = vld [vmem:[%s2850_s10 + $0x68] sm:$0xf] }
  0x49   : > { %v1431_v25 = vor.u32 %v1430_v20, %v1426_v3  ;;  %v894_v40 = vrot.slane %v892_v28, 1  ;;  %v1442_v41 = vshll.u32 %v2278_v22, 16  ;;  %v1447_v42 = vshrl.u32 %v2279_v23, 16 }
  0x4a   : > { %v888_v19 = vor.u32 %v887_v8, %v883_v58  ;;  %1726 = vmatprep.mubr.bf16.mxu0 %v2323_v18  ;;  %v1449_v43 = vshll.u32 %v2279_v23, 16  ;;  %v2212_v46 = vcombine.low %v3070_v26, %v3076_v32  ;;  %v2324_v47 = vcombine.low %v3083_v38, %v3088_v48  ;;  %v3142_v32 = vld [vmem:[%s2850_s10 + $0x58] sm:$0xf]  ;;  %v2149_v38 = vld [vmem:[%s2850_s10 + $0x5c] sm:$0x1] }
  0x4b   : > { %v2325_v45 = vcombine.low %v1431_v25, %v1438_v34  ;;  %v901_v49 = vrot.slane %v899_v36, 1  ;;  %v895_v50 = vor.u32 %v894_v40, %v890_v27  ;;  %v1444_v51 = vrot.slane %v1442_v41, 1  ;;  %v3146_v48 = vld [vmem:[%s2850_s10 + $0x60] sm:$0xf]  ;;  %v2261_v8 = vld [vmem:[%s2850_s10 + $0x64] sm:$0x1] }
  0x4c   : > { %v2213_v24 = vcombine.low %v881_v14, %v888_v19  ;;  %v1451_v52 = vrot.slane %v1449_v43, 1  ;;  %v2168_v53 = vcombine.low %v3118_v10, %v2145_v16  ;;  %v2169_v56 = vcombine.low %v3122_v29, %v2147_v30  ;;  %v3166_v16 = vld [vmem:[%s2850_s10 + $0x68] sm:$0xf]  ;;  %v2155_v34 = vld [vmem:[%s2850_s10 + $0x74] sm:$0x1] }
  0x4d   : > { %v902_v55 = vor.u32 %v901_v49, %v897_v35  ;;  %v2280_v57 = vcombine.low %v3126_v31, %v2257_v33  ;;  %v2281_v26 = vcombine.low %v3130_v39, %v2259_v44  ;;  %v1445_v58 = vor.u32 %v1444_v51, %v1440_v37  ;;  %v3170_v33 = vld [vmem:[%s2850_s10 + $0x70] sm:$0xf]  ;;  %v3178_v43 = vld [vmem:[%s2850_s10 + $0x78] sm:$0xf]  ;;  %v2267_v49 = vld [vmem:[%s2850_s10 + $0x7c] sm:$0x1] }
  0x4e   : > { %v1452_v60 = vor.u32 %v1451_v52, %v1447_v42  ;;  %v904_v62 = vshrl.u32 %v2168_v53, 16  ;;  %v906_v63 = vshll.u32 %v2168_v53, 16  ;;  %v2214_v5 = vcombine.low %v3093_v54, %v3097_v61  ;;  %v3174_v35 = vld [vmem:[%s2850_s10 + $0x70] sm:$0xf]  ;;  %v2265_v42 = vld [vmem:[%s2850_s10 + $0x74] sm:$0x1] }
  0x4f   : > { %1177 = vmatmul.mubr.bf16.gmra.mrb[20].mxu1 %v2210_v7  ;;  %1727 = vmatmul.mubr.bf16.gmra.mrb[20].mxu0 %v2322_v13  ;;  %v2215_v3 = vcombine.low %v895_v50, %v902_v55  ;;  %v911_v6 = vshrl.u32 %v2169_v56, 16  ;;  %v913_v7 = vshll.u32 %v2169_v56, 16  ;;  %v1454_v14 = vshrl.u32 %v2280_v57, 16 }
  0x50   : > { %1184 = vmatprep.mubr.bf16.mxu1 %v2213_v24  ;;  %1734 = vmatprep.mubr.bf16.mxu0 %v2325_v45  ;;  %v2327_v12 = vcombine.low %v1445_v58, %v1452_v60  ;;  %v908_v13 = vrot.slane %v906_v63, 1  ;;  %v1456_v15 = vshll.u32 %v2280_v57, 16  ;;  %v2326_v18 = vcombine.low %v3102_v4, %v3108_v11  ;;  %v2153_v24 = vld [vmem:[%s2850_s10 + $0x6c] sm:$0x1]  ;;  %v3186_v60 = vld [vmem:[%s2850_s10 + $0x78] sm:$0xf] }
  0x51   : > { %v915_v19 = vrot.slane %v913_v7, 1  ;;  %v1461_v20 = vshrl.u32 %v2281_v26, 16  ;;  %v1463_v59 = vshll.u32 %v2281_v26, 16  ;;  %v2170_v0 = vcombine.low %v3142_v32, %v2149_v38  ;;  %v3190_v63 = vld [vmem:[%s2850_s10 + $0x80] sm:$0xf] }
  0x52   : > { %v909_v54 = vor.u32 %v908_v13, %v904_v62  ;;  %v1458_v61 = vrot.slane %v1456_v15, 1  ;;  %v2171_v21 = vcombine.low %v3146_v48, %v2151_v1  ;;  %v2282_v4 = vcombine.low %v3150_v2, %v2261_v8  ;;  %v2157_v62 = vld [vmem:[%s2850_s10 + $0x7c] sm:$0x1]  ;;  %v3194_v7 = vld [vmem:[%s2850_s10 + $0x80] sm:$0xf] }
  0x53   : > { %v916_v22 = vor.u32 %v915_v19, %v911_v6  ;;  %v1465_v23 = vrot.slane %v1463_v59, 1  ;;  %v2283_v11 = vcombine.low %v3156_v9, %v2263_v17  ;;  %v918_v27 = vshrl.u32 %v2170_v0, 16  ;;  %v2159_v6 = vld [vmem:[%s2850_s10 + $0x84] sm:$0x1]  ;;  %v2270_v15 = vld [vmem:[%s2850_s10 + $0x88] sm:$0xf] }
  0x54   : > { %v1459_v25 = vor.u32 %v1458_v61, %v1454_v14  ;;  %v920_v28 = vshll.u32 %v2170_v0, 16  ;;  %v925_v30 = vshrl.u32 %v2171_v21, 16  ;;  %v927_v40 = vshll.u32 %v2171_v21, 16  ;;  %v2269_v14 = vld [vmem:[%s2850_s10 + $0x84] sm:$0x1] }
  0x55   : > { %v2217_v36 = vcombine.low %v909_v54, %v916_v22  ;;  %v1466_v37 = vor.u32 %v1465_v23, %v1461_v20  ;;  %v1468_v41 = vshrl.u32 %v2282_v4, 16  ;;  %v1470_v45 = vshll.u32 %v2282_v4, 16  ;;  %v2271_v59 = vld [vmem:[%s2850_s10 + $0x8c] sm:$0x1]  ;;  %s2354_s10 = sshll.u32 %s3295_s12, 6 }
  0x56   : > { %v922_v44 = vrot.slane %v920_v28, 1  ;;  %v929_v51 = vrot.slane %v927_v40, 1  ;;  %v2172_v56 = vcombine.low %v3166_v16, %v2153_v24  ;;  %v2173_v26 = vcombine.low %v3170_v33, %v2155_v34  ;;  %s3249_s29 = scalar_lea.vmem %s3288_s2, %s2354_s10 }
  0x57   : > { %1185 = vmatmul.mubr.bf16.gmra.mrb[24].mxu1 %v2212_v46  ;;  %1735 = vmatmul.mubr.bf16.gmra.mrb[24].mxu0 %v2324_v47  ;;  %v1475_v46 = vshrl.u32 %v2283_v11, 16  ;;  %v1477_v47 = vshll.u32 %v2283_v11, 16  ;;  %v2329_v50 = vcombine.low %v1459_v25, %v1466_v37  ;;  %v1472_v53 = vrot.slane %v1470_v45, 1 }
  0x58   : > { %1192 = vmatprep.mubr.bf16.mxu1 %v2215_v3  ;;  %1742 = vmatprep.mubr.bf16.mxu0 %v2327_v12  ;;  %v923_v52 = vor.u32 %v922_v44, %v918_v27  ;;  %v930_v57 = vor.u32 %v929_v51, %v925_v30  ;;  %v2284_v38 = vcombine.low %v3174_v35, %v2265_v42  ;;  %v941_v13 = vshll.u32 %v2173_v26, 16 }
  0x59   : > { %v1479_v55 = vrot.slane %v1477_v47, 1  ;;  %v2285_v58 = vcombine.low %v3178_v43, %v2267_v49  ;;  %v1473_v1 = vor.u32 %v1472_v53, %v1468_v41  ;;  %v2216_v8 = vcombine.low %v3118_v10, %v3122_v29 }
  0x5a   : > { %v2328_v12 = vcombine.low %v3126_v31, %v3130_v39  ;;  %v2219_v17 = vcombine.low %v923_v52, %v930_v57  ;;  %v939_v19 = vshrl.u32 %v2173_v26, 16  ;;  %v1484_v20 = vshll.u32 %v2284_v38, 16 }
  0x5b   : > { %v1480_v3 = vor.u32 %v1479_v55, %v1475_v46  ;;  %v1482_v0 = vshrl.u32 %v2284_v38, 16  ;;  %v1491_v21 = vshll.u32 %v2285_v58, 16  ;;  %v943_v22 = vrot.slane %v941_v13, 1 }
  0x5c   : > { %v1489_v23 = vshrl.u32 %v2285_v58, 16  ;;  %v2174_v4 = vcombine.low %v3186_v60, %v2157_v62  ;;  %v2175_v10 = vcombine.low %v3190_v63, %v2159_v6  ;;  %v1486_v29 = vrot.slane %v1484_v20, 1 }
  0x5d   : > { %v2331_v54 = vcombine.low %v1473_v1, %v1480_v3  ;;  %v1493_v31 = vrot.slane %v1491_v21, 1  ;;  %v2286_v39 = vcombine.low %v3194_v7, %v2269_v14  ;;  %v2287_v11 = vcombine.low %v2270_v15, %v2271_v59 }
  0x5e   : > { %v944_v25 = vor.u32 %v943_v22, %v939_v19  ;;  %v948_v27 = vshll.u32 %v2174_v4, 16  ;;  %v955_v28 = vshll.u32 %v2175_v10, 16  ;;  %v1487_v30 = vor.u32 %v1486_v29, %v1482_v0 }
  0x5f   : > { %1193 = vmatmul.mubr.bf16.gmra.mrb[28].mxu1 %v2214_v5  ;;  %1743 = vmatmul.mubr.bf16.gmra.mrb[28].mxu0 %v2326_v18  ;;  %v934_v5 = vshll.u32 %v2172_v56, 16  ;;  %v932_v18 = vshrl.u32 %v2172_v56, 16  ;;  %v1494_v34 = vor.u32 %v1493_v31, %v1489_v23  ;;  %v1505_v37 = vshll.u32 %v2287_v11, 16 }
  0x60   : > { %1200 = vmatprep.mubr.bf16.mxu1 %v2217_v36  ;;  %1750 = vmatprep.mubr.bf16.mxu0 %v2329_v50  ;;  %v1498_v36 = vshll.u32 %v2286_v39, 16  ;;  %v2218_v40 = vcombine.low %v3142_v32, %v3146_v48  ;;  %v2330_v41 = vcombine.low %v3150_v2, %v3156_v9  ;;  %v946_v42 = vshrl.u32 %v2174_v4, 16 }
  0x61   : > { %v936_v61 = vrot.slane %v934_v5, 1  ;;  %v953_v44 = vshrl.u32 %v2175_v10, 16  ;;  %v950_v46 = vrot.slane %v948_v27, 1  ;;  %v957_v47 = vrot.slane %v955_v28, 1 }
  0x62   : > { %v1496_v49 = vshrl.u32 %v2286_v39, 16  ;;  %v2333_v50 = vcombine.low %v1487_v30, %v1494_v34  ;;  %v1500_v51 = vrot.slane %v1498_v36, 1  ;;  %v1503_v52 = vshrl.u32 %v2287_v11, 16 }
  0x63   : > { %v937_v24 = vor.u32 %v936_v61, %v932_v18  ;;  %v1507_v53 = vrot.slane %v1505_v37, 1  ;;  %v951_v55 = vor.u32 %v950_v46, %v946_v42  ;;  %v958_v56 = vor.u32 %v957_v47, %v953_v44 }
  0x64   : > { %v1501_v32 = vor.u32 %v1500_v51, %v1496_v49  ;;  %v2220_v2 = vcombine.low %v3166_v16, %v3170_v33  ;;  %v2332_v9 = vcombine.low %v3174_v35, %v3178_v43  ;;  %v2222_v38 = vcombine.low %v3186_v60, %v3190_v63 }
  0x65   : > { %v2221_v45 = vcombine.low %v937_v24, %v944_v25  ;;  %v1508_v48 = vor.u32 %v1507_v53, %v1503_v52  ;;  %v2223_v57 = vcombine.low %v951_v55, %v958_v56  ;;  %v2334_v58 = vcombine.low %v3194_v7, %v2270_v15 }
  0x67   : > { %1201 = vmatmul.mubr.bf16.gmra.mrb[32].mxu1 %v2216_v8  ;;  %1751 = vmatmul.mubr.bf16.gmra.mrb[32].mxu0 %v2328_v12  ;;  %v2335_v26 = vcombine.low %v1501_v32, %v1508_v48 }
  0x68   : > { %1208 = vmatprep.mubr.bf16.mxu1 %v2219_v17  ;;  %1758 = vmatprep.mubr.bf16.mxu0 %v2331_v54 }
  0x6f   : > { %1209 = vmatmul.mubr.bf16.gmra.mrb[36].mxu1 %v2218_v40  ;;  %1759 = vmatmul.mubr.bf16.gmra.mrb[36].mxu0 %v2330_v41 }
  0x70   : > { %1216 = vmatprep.mubr.bf16.mxu1 %v2221_v45  ;;  %1766 = vmatprep.mubr.bf16.mxu0 %v2333_v50 }
  0x77   : > { %1217 = vmatmul.mubr.bf16.gmra.mrb[40].mxu1 %v2220_v2  ;;  %1767 = vmatmul.mubr.bf16.gmra.mrb[40].mxu0 %v2332_v9 }
  0x78   : > { %1224 = vmatprep.mubr.bf16.mxu1 %v2223_v57  ;;  %1774 = vmatprep.mubr.bf16.mxu0 %v2335_v26 }
  0x7f   : > { %1225 = vmatmul.mubr.bf16.gmra.mrb[44].mxu1 %v2222_v38  ;;  %1775 = vmatmul.mubr.bf16.gmra.mrb[44].mxu0 %v2334_v58 }
  0xfa   : > { %v2418_v62 = vpop.f32.mrb[0].mxu0  ;;  %v2442_v1 = vpop.f32.mrb[0].mxu1 }
  0xfb   : > { %v2419_v3 = vpop.f32.mrb[1].mxu0  ;;  %v2443_v16 = vpop.f32.mrb[1].mxu1 }
  0xfc   : > { %v2420_v33 = vadd.f32 %v2419_v3, %v2418_v62  ;;  %v3217_v5 = vadd.f32 %v2443_v16, %v2442_v1  ;;  %v2421_v35 = vpop.f32.mrb[2].mxu0  ;;  %v2445_v43 = vpop.f32.mrb[2].mxu1 }
  0xfd   : > { %v2422_v6 = vpop.f32.mrb[3].mxu0  ;;  %v2446_v8 = vpop.f32.mrb[3].mxu1 }
  0xfe   : > { %v2423_v12 = vadd.f32 %v2422_v6, %v2421_v35  ;;  %v3219_v13 = vadd.f32 %v2446_v8, %v2445_v43 }
 0x102   : > { %v2424_v14 = vpop.f32.mrb[4].mxu0  ;;  %v2448_v60 = vpop.f32.mrb[4].mxu1 }
 0x103   : > { %v2425_v63 = vpop.f32.mrb[5].mxu0  ;;  %v2449_v7 = vpop.f32.mrb[5].mxu1 }
 0x104   : > { %v3221_v15 = vadd.f32 %v2425_v63, %v2424_v14  ;;  %v3223_v17 = vadd.f32 %v2449_v7, %v2448_v60  ;;  %v2427_v18 = vpop.f32.mrb[6].mxu0  ;;  %v2451_v19 = vpop.f32.mrb[6].mxu1 }
 0x105   : > { %v2428_v20 = vpop.f32.mrb[7].mxu0  ;;  %v2452_v59 = vpop.f32.mrb[7].mxu1 }
 0x106   : > { %v3225_v54 = vadd.f32 %v2428_v20, %v2427_v18  ;;  %v3227_v61 = vadd.f32 %v2452_v59, %v2451_v19 }
 0x10a   : > { %v2430_v0 = vpop.f32.mrb[8].mxu0  ;;  %v2454_v21 = vpop.f32.mrb[8].mxu1 }
 0x10b   : > { %v2431_v22 = vpop.f32.mrb[9].mxu0  ;;  %v2455_v4 = vpop.f32.mrb[9].mxu1 }
 0x10c   : > { %v3229_v23 = vadd.f32 %v2431_v22, %v2430_v0  ;;  %v2433_v10 = vpop.f32.mrb[10].mxu0  ;;  %v3231_v29 = vadd.f32 %v2455_v4, %v2454_v21  ;;  %v2457_v31 = vpop.f32.mrb[10].mxu1 }
 0x10d   : > { %v2434_v39 = vpop.f32.mrb[11].mxu0  ;;  %v2458_v24 = vpop.f32.mrb[11].mxu1 }
 0x10e   : > { %v3233_v11 = vadd.f32 %v2434_v39, %v2433_v10  ;;  %v3235_v25 = vadd.f32 %v2458_v24, %v2457_v31 }
 0x112   : > { %v2436_v27 = vpop.f32.mrb[12].mxu0  ;;  %v2460_v28 = vpop.f32.mrb[12].mxu1 }
 0x113   : > { %v2437_v30 = vpop.f32.mrb[13].mxu0  ;;  %v2461_v36 = vpop.f32.mrb[13].mxu1 }
 0x114   : > { %v3237_v34 = vadd.f32 %v2437_v30, %v2436_v27  ;;  %v2439_v37 = vpop.f32.mrb[14].mxu0  ;;  %v3239_v40 = vadd.f32 %v2461_v36, %v2460_v28  ;;  %v2463_v41 = vpop.f32.mrb[14].mxu1 }
 0x115   : > { %v2440_v42 = vpop.f32.mrb[15].mxu0  ;;  %v2464_v45 = vpop.f32.mrb[15].mxu1 }
 0x116   : > { %v3241_v44 = vadd.f32 %v2440_v42, %v2439_v37  ;;  %v3243_v46 = vadd.f32 %v2464_v45, %v2463_v41 }
 0x11a   : > { %v2482_v47 = vpop.f32.mrb[16].mxu1  ;;  %v2546_v49 = vpop.f32.mrb[16].mxu0 }
 0x11b   : > { %v2483_v50 = vpop.f32.mrb[17].mxu1  ;;  %v2547_v52 = vpop.f32.mrb[17].mxu0 }
 0x11c   : > { %v2484_v51 = vadd.f32 %v2483_v50, %v2482_v47  ;;  %v2485_v53 = vpop.f32.mrb[18].mxu1  ;;  %v2548_v55 = vadd.f32 %v2547_v52, %v2546_v49  ;;  %v2549_v56 = vpop.f32.mrb[18].mxu0 }
 0x11d   : > { %v2486_v32 = vpop.f32.mrb[19].mxu1  ;;  %v2550_v9 = vpop.f32.mrb[19].mxu0 }
 0x11e   : > { %v1249_v48 = vadd.f32 %v2484_v51, %v2420_v33  ;;  %v2487_v2 = vadd.f32 %v2486_v32, %v2485_v53  ;;  %v2551_v57 = vadd.f32 %v2550_v9, %v2549_v56 }
 0x120   : > { %v1799_v26 = vadd.f32 %v2548_v55, %v1249_v48  ;;  %v1250_v38 = vadd.f32 %v2487_v2, %v2423_v12 }
 0x122   : > { %v1800_v58 = vadd.f32 %v2551_v57, %v1250_v38  ;;  %v2488_v62 = vpop.f32.mrb[20].mxu1  ;;  %v1901_v1 = vmul.f32 %v1799_v26, %v1799_v26  ;;  %v2552_v3 = vpop.f32.mrb[20].mxu0 }
 0x123   : > { %v2489_v16 = vpop.f32.mrb[21].mxu1  ;;  %v2553_v8 = vpop.f32.mrb[21].mxu0 }
 0x124   : > { %v2358_v35 = vpack.c.bf16 %v1800_v58, %v1799_v26  ;;  %v1879_v43 = vadd.f32 %v1800_v58, %v1799_v26  ;;  %v1902_v33 = vmul.f32 %v1800_v58, %v1800_v58  ;;  %v2490_v6 = vadd.f32 %v2489_v16, %v2488_v62  ;;  %v2491_v14 = vpop.f32.mrb[22].mxu1  ;;  %v2555_v12 = vpop.f32.mrb[22].mxu0 }
 0x125   : > { %v2554_v60 = vadd.f32 %v2553_v8, %v2552_v3  ;;  %v2492_v63 = vpop.f32.mrb[23].mxu1  ;;  %v2556_v20 = vpop.f32.mrb[23].mxu0 }
 0x126   : > { %2359 = vst [vmem:[%s3249_s29] sm:$0xff] %v2358_v35   ;;  %v1917_v7 = vadd.f32 %v1902_v33, %v1901_v1  ;;  %v1251_v18 = vadd.f32 %v2490_v6, %v3221_v15  ;;  %v2493_v19 = vadd.f32 %v2492_v63, %v2491_v14  ;;  %v2557_v59 = vadd.f32 %v2556_v20, %v2555_v12 }
 0x128   : > { %v1801_v0 = vadd.f32 %v2554_v60, %v1251_v18  ;;  %v1252_v21 = vadd.f32 %v2493_v19, %v3225_v54 }
 0x12a   : > { %v1880_v22 = vadd.f32 %v1879_v43, %v1801_v0  ;;  %v1903_v4 = vmul.f32 %v1801_v0, %v1801_v0  ;;  %v1802_v10 = vadd.f32 %v2557_v59, %v1252_v21  ;;  %v2494_v31 = vpop.f32.mrb[24].mxu1  ;;  %v2558_v39 = vpop.f32.mrb[24].mxu0 }
 0x12b   : > { %v2495_v24 = vpop.f32.mrb[25].mxu1  ;;  %v2559_v37 = vpop.f32.mrb[25].mxu0 }
 0x12c   : > { %v1918_v27 = vadd.f32 %v1917_v7, %v1903_v4  ;;  %v2363_v28 = vpack.c.bf16 %v1802_v10, %v1801_v0  ;;  %v1881_v30 = vadd.f32 %v1880_v22, %v1802_v10  ;;  %v1904_v36 = vmul.f32 %v1802_v10, %v1802_v10  ;;  %v2497_v41 = vpop.f32.mrb[26].mxu1  ;;  %v2561_v45 = vpop.f32.mrb[26].mxu0 }
 0x12d   : > { %v2496_v15 = vadd.f32 %v2495_v24, %v2494_v31  ;;  %v2560_v42 = vadd.f32 %v2559_v37, %v2558_v39  ;;  %v2498_v47 = vpop.f32.mrb[27].mxu1  ;;  %v2562_v50 = vpop.f32.mrb[27].mxu0 }
 0x12e   : > { %2395 = vst [vmem:[%s3249_s29 + $0x8] sm:$0xff] %v2363_v28   ;;  %v1919_v49 = vadd.f32 %v1918_v27, %v1904_v36  ;;  %v2499_v54 = vadd.f32 %v2498_v47, %v2497_v41  ;;  %v2563_v52 = vadd.f32 %v2562_v50, %v2561_v45 }
 0x12f   : > { %v1253_v51 = vadd.f32 %v2496_v15, %v3229_v23 }
 0x130   : > { %v1254_v53 = vadd.f32 %v2499_v54, %v3233_v11 }
 0x131   : > { %v1803_v55 = vadd.f32 %v2560_v42, %v1253_v51 }
 0x132   : > { %v1804_v56 = vadd.f32 %v2563_v52, %v1254_v53  ;;  %v2500_v32 = vpop.f32.mrb[28].mxu1  ;;  %v2564_v9 = vpop.f32.mrb[28].mxu0 }
 0x133   : > { %v1882_v48 = vadd.f32 %v1881_v30, %v1803_v55  ;;  %v1905_v2 = vmul.f32 %v1803_v55, %v1803_v55  ;;  %v2501_v57 = vpop.f32.mrb[29].mxu1  ;;  %v2565_v62 = vpop.f32.mrb[29].mxu0 }
 0x134   : > { %v2368_v26 = vpack.c.bf16 %v1804_v56, %v1803_v55  ;;  %v1906_v38 = vmul.f32 %v1804_v56, %v1804_v56  ;;  %v2502_v58 = vadd.f32 %v2501_v57, %v2500_v32  ;;  %v2503_v1 = vpop.f32.mrb[30].mxu1  ;;  %v2566_v35 = vadd.f32 %v2565_v62, %v2564_v9  ;;  %v2567_v23 = vpop.f32.mrb[30].mxu0 }
 0x135   : > { %v1920_v3 = vadd.f32 %v1919_v49, %v1905_v2  ;;  %v1883_v16 = vadd.f32 %v1882_v48, %v1804_v56  ;;  %v2504_v43 = vpop.f32.mrb[31].mxu1  ;;  %v2568_v6 = vpop.f32.mrb[31].mxu0 }
 0x136   : > { %2396 = vst [vmem:[%s3249_s29 + $0x10] sm:$0xff] %v2368_v26   ;;  %v1255_v11 = vadd.f32 %v2502_v58, %v3237_v34  ;;  %v2505_v33 = vadd.f32 %v2504_v43, %v2503_v1  ;;  %v2569_v14 = vadd.f32 %v2568_v6, %v2567_v23 }
 0x137   : > { %v1921_v8 = vadd.f32 %v1920_v3, %v1906_v38 }
 0x138   : > { %v1805_v60 = vadd.f32 %v2566_v35, %v1255_v11  ;;  %v1256_v12 = vadd.f32 %v2505_v33, %v3241_v44 }
 0x13a   : > { %v1884_v63 = vadd.f32 %v1883_v16, %v1805_v60  ;;  %v1907_v7 = vmul.f32 %v1805_v60, %v1805_v60  ;;  %v1806_v18 = vadd.f32 %v2569_v14, %v1256_v12  ;;  %v2506_v19 = vpop.f32.mrb[32].mxu1  ;;  %v2570_v20 = vpop.f32.mrb[32].mxu0 }
 0x13b   : > { %v2507_v59 = vpop.f32.mrb[33].mxu1  ;;  %v2571_v10 = vpop.f32.mrb[33].mxu0 }
 0x13c   : > { %v1922_v0 = vadd.f32 %v1921_v8, %v1907_v7  ;;  %v2373_v21 = vpack.c.bf16 %v1806_v18, %v1805_v60  ;;  %v1885_v22 = vadd.f32 %v1884_v63, %v1806_v18  ;;  %v1908_v4 = vmul.f32 %v1806_v18, %v1806_v18  ;;  %v2509_v34 = vpop.f32.mrb[34].mxu1  ;;  %v2573_v24 = vpop.f32.mrb[34].mxu0 }
 0x13d   : > { %v2508_v31 = vadd.f32 %v2507_v59, %v2506_v19  ;;  %v2572_v39 = vadd.f32 %v2571_v10, %v2570_v20  ;;  %v2510_v27 = vpop.f32.mrb[35].mxu1  ;;  %v2574_v30 = vpop.f32.mrb[35].mxu0 }
 0x13e   : > { %2397 = vst [vmem:[%s3249_s29 + $0x18] sm:$0xff] %v2373_v21   ;;  %v1923_v28 = vadd.f32 %v1922_v0, %v1908_v4  ;;  %v2511_v44 = vadd.f32 %v2510_v27, %v2509_v34  ;;  %v2575_v37 = vadd.f32 %v2574_v30, %v2573_v24 }
 0x13f   : > { %v1257_v36 = vadd.f32 %v2508_v31, %v3217_v5 }
 0x140   : > { %v1258_v41 = vadd.f32 %v2511_v44, %v3219_v13 }
 0x141   : > { %v1807_v15 = vadd.f32 %v2572_v39, %v1257_v36 }
 0x142   : > { %v1808_v42 = vadd.f32 %v2575_v37, %v1258_v41  ;;  %v2512_v45 = vpop.f32.mrb[36].mxu1  ;;  %v2576_v54 = vpop.f32.mrb[36].mxu0 }
 0x143   : > { %v1886_v47 = vadd.f32 %v1885_v22, %v1807_v15  ;;  %v1909_v49 = vmul.f32 %v1807_v15, %v1807_v15  ;;  %v2513_v50 = vpop.f32.mrb[37].mxu1  ;;  %v2577_v55 = vpop.f32.mrb[37].mxu0 }
 0x144   : > { %v2378_v51 = vpack.c.bf16 %v1808_v42, %v1807_v15  ;;  %v1910_v52 = vmul.f32 %v1808_v42, %v1808_v42  ;;  %v2514_v53 = vadd.f32 %v2513_v50, %v2512_v45  ;;  %v2515_v56 = vpop.f32.mrb[38].mxu1  ;;  %v2578_v2 = vadd.f32 %v2577_v55, %v2576_v54  ;;  %v2579_v5 = vpop.f32.mrb[38].mxu0 }
 0x145   : > { %v1924_v32 = vadd.f32 %v1923_v28, %v1909_v49  ;;  %v1887_v48 = vadd.f32 %v1886_v47, %v1808_v42  ;;  %v2516_v9 = vpop.f32.mrb[39].mxu1  ;;  %v2580_v26 = vpop.f32.mrb[39].mxu0 }
 0x146   : > { %2398 = vst [vmem:[%s3249_s29 + $0x20] sm:$0xff] %v2378_v51   ;;  %v1259_v13 = vadd.f32 %v2514_v53, %v3223_v17  ;;  %v2517_v57 = vadd.f32 %v2516_v9, %v2515_v56  ;;  %v2581_v58 = vadd.f32 %v2580_v26, %v2579_v5 }
 0x147   : > { %v1925_v38 = vadd.f32 %v1924_v32, %v1910_v52 }
 0x148   : > { %v1809_v62 = vadd.f32 %v2578_v2, %v1259_v13  ;;  %v1260_v1 = vadd.f32 %v2517_v57, %v3227_v61 }
 0x14a   : > { %v1888_v3 = vadd.f32 %v1887_v48, %v1809_v62  ;;  %v1911_v16 = vmul.f32 %v1809_v62, %v1809_v62  ;;  %v1810_v35 = vadd.f32 %v2581_v58, %v1260_v1  ;;  %v2518_v23 = vpop.f32.mrb[40].mxu1  ;;  %v2582_v43 = vpop.f32.mrb[40].mxu0 }
 0x14b   : > { %v2519_v11 = vpop.f32.mrb[41].mxu1  ;;  %v2583_v60 = vpop.f32.mrb[41].mxu0 }
 0x14c   : > { %v1926_v33 = vadd.f32 %v1925_v38, %v1911_v16  ;;  %v2383_v6 = vpack.c.bf16 %v1810_v35, %v1809_v62  ;;  %v1889_v8 = vadd.f32 %v1888_v3, %v1810_v35  ;;  %v1912_v14 = vmul.f32 %v1810_v35, %v1810_v35  ;;  %v2521_v17 = vpop.f32.mrb[42].mxu1  ;;  %v2585_v7 = vpop.f32.mrb[42].mxu0 }
 0x14d   : > { %v2520_v12 = vadd.f32 %v2519_v11, %v2518_v23  ;;  %v2584_v63 = vadd.f32 %v2583_v60, %v2582_v43  ;;  %v2522_v18 = vpop.f32.mrb[43].mxu1  ;;  %v2586_v20 = vpop.f32.mrb[43].mxu0 }
 0x14e   : > { %2399 = vst [vmem:[%s3249_s29 + $0x28] sm:$0xff] %v2383_v6   ;;  %v1927_v19 = vadd.f32 %v1926_v33, %v1912_v14  ;;  %v2523_v61 = vadd.f32 %v2522_v18, %v2521_v17  ;;  %v2587_v0 = vadd.f32 %v2586_v20, %v2585_v7 }
 0x14f   : > { %v1261_v59 = vadd.f32 %v2520_v12, %v3231_v29 }
 0x150   : > { %v1262_v21 = vadd.f32 %v2523_v61, %v3235_v25 }
 0x151   : > { %v1811_v22 = vadd.f32 %v2584_v63, %v1261_v59 }
 0x152   : > { %v1812_v4 = vadd.f32 %v2587_v0, %v1262_v21  ;;  %v2524_v10 = vpop.f32.mrb[44].mxu1  ;;  %v2588_v39 = vpop.f32.mrb[44].mxu0 }
 0x153   : > { %v1890_v34 = vadd.f32 %v1889_v8, %v1811_v22  ;;  %v1913_v31 = vmul.f32 %v1811_v22, %v1811_v22  ;;  %v2525_v24 = vpop.f32.mrb[45].mxu1  ;;  %v2589_v30 = vpop.f32.mrb[45].mxu0 }
 0x154   : > { %v2388_v27 = vpack.c.bf16 %v1812_v4, %v1811_v22  ;;  %v1914_v28 = vmul.f32 %v1812_v4, %v1812_v4  ;;  %v2526_v44 = vadd.f32 %v2525_v24, %v2524_v10  ;;  %v2527_v36 = vpop.f32.mrb[46].mxu1  ;;  %v2590_v15 = vadd.f32 %v2589_v30, %v2588_v39  ;;  %v2591_v29 = vpop.f32.mrb[46].mxu0 }
 0x155   : > { %v1928_v37 = vadd.f32 %v1927_v19, %v1913_v31  ;;  %v1891_v41 = vadd.f32 %v1890_v34, %v1812_v4  ;;  %v2528_v42 = vpop.f32.mrb[47].mxu1  ;;  %v2592_v47 = vpop.f32.mrb[47].mxu0 }
 0x156   : > { %2400 = vst [vmem:[%s3249_s29 + $0x30] sm:$0xff] %v2388_v27   ;;  %v1263_v25 = vadd.f32 %v2526_v44, %v3239_v40  ;;  %v2529_v45 = vadd.f32 %v2528_v42, %v2527_v36  ;;  %v2593_v54 = vadd.f32 %v2592_v47, %v2591_v29 }
 0x157   : > { %v1929_v49 = vadd.f32 %v1928_v37, %v1914_v28 }
 0x158   : > { %v1813_v50 = vadd.f32 %v2590_v15, %v1263_v25  ;;  %v1264_v51 = vadd.f32 %v2529_v45, %v3243_v46 }
 0x15a   : > { %v1892_v52 = vadd.f32 %v1891_v41, %v1813_v50  ;;  %v1915_v53 = vmul.f32 %v1813_v50, %v1813_v50  ;;  %v1814_v55 = vadd.f32 %v2593_v54, %v1264_v51 }
 0x15c   : > { %v1930_v56 = vadd.f32 %v1929_v49, %v1915_v53  ;;  %v2393_v32 = vpack.c.bf16 %v1814_v55, %v1813_v50  ;;  %v1893_v48 = vadd.f32 %v1892_v52, %v1814_v55  ;;  %v1916_v2 = vmul.f32 %v1814_v55, %v1814_v55 }
 0x15e   : > { %2401 = vst [vmem:[%s3249_s29 + $0x38] sm:$0xff] %v2393_v32   ;;  %v1894_v5 = vrot.slane %v1893_v48, 4  ;;  %v1931_v9 = vadd.f32 %v1930_v56, %v1916_v2 }
 0x160   : > { %v1895_v13 = vadd.f32 %v1894_v5, %v1893_v48  ;;  %v1932_v40 = vrot.slane %v1931_v9, 4 }
 0x162   : > { %v1896_v57 = vrot.slane %v1895_v13, 2  ;;  %v1933_v26 = vadd.f32 %v1932_v40, %v1931_v9 }
 0x164   : > { %v1897_v38 = vadd.f32 %v1896_v57, %v1895_v13  ;;  %v1934_v58 = vrot.slane %v1933_v26, 2 }
 0x166   : > { %v1898_v62 = vrot.slane %v1897_v38, 1  ;;  %v1935_v1 = vadd.f32 %v1934_v58, %v1933_v26 }
 0x168   : > { %v1899_v46 = vadd.f32 %v1898_v62, %v1897_v38  ;;  %v1936_v3 = vrot.slane %v1935_v1, 1 }
 0x16a   : > { %1900 = vst [vmem:[%s212_s6] sm:$0x1] %v1899_v46  ;;  %v1937_v16 = vadd.f32 %v1936_v3, %v1935_v1 }
 0x16c   : > { %1938 = vst [vmem:[%s212_s6 + $0x1] sm:$0x1] %v1937_v16 }
 0x16d PF: > { %s14_s14 = sadd.s32 1, %s2777_s14   ;;  %s3290_s12 = smov %s2773_s13 }
 0x16e   : > { %p11_p5 = scmp.ge.s32.totalorder %s14_s14, 4   ;;  %s3291_s13 = smov %s3293_s15 }
 0x170   :  { %13 = sbr.rel (!%p11_p5) target bundleno = 2 (0x2), region = 75 }

// kernel: dis_block_forward.4
= control target key start
LH: loop header
LB: loop body
LE: loop exit
PB: predicated region body
PF: predicated region fallthrough
CT: control target
= control target key end

     0   :  { %s2403_s18 = smov 0   ;;  %s3091_s0 = inlined_call_operand.vmem [shape: bf16[2,8,2,8,128], index: 0, kind: input, shape index: {}]   ;;  %s3092_s1 = inlined_call_operand.vmem [shape: f32[1,128], index: 1, kind: input, shape index: {}]   ;;  %s3093_s2 = inlined_call_operand.vmem [shape: f32[1,128], index: 2, kind: input, shape index: {}]   ;;  %s3094_s3 = inlined_call_operand.vmem [shape: bf16[4,256,64], index: 3, kind: input, shape index: {}]   ;;  %s3095_s4 = inlined_call_operand.vmem [shape: f32[2,8,8,64], index: 4, kind: output, shape index: {0}]   ;;  %s3096_s5 = inlined_call_operand.vmem [shape: f32[2,2,64], index: 5, kind: output, shape index: {1}]  }
   0x1 LB: > { %s1921_s19 = sadd.s32 4294967295, %s2370_s18   ;;  %p1925_p0 = scmp.ge.s32.totalorder %s2370_s18, 1  ;;  %s2370_s18 = sphi %s2403_s18, %s16_s18  }
   0x2   : > { %p190_p1 = scmp.lt.s32.totalorder %s2370_s18, 3 }
   0x4   : > { %p191_p2 = pnand %p1925_p0, %p190_p1 }
   0x5   : > { %p222_p3 = scmp.lt.s32.totalorder (!%p191_p2), %s1921_s19, 1  ;;  %v2300_v0 = vld [vmem:[%s3094_s3 + $0xc0] sm:$0xff] (!%p191_p2)   ;;  %v2302_v3 = vld [vmem:[%s3094_s3 + $0xc8] sm:$0xff] (!%p191_p2)   ;;  %v2306_v28 = vld [vmem:[%s3094_s3 + $0xd0] sm:$0xff] (!%p191_p2)   ;;  %s2372_s28 = smov (!%p191_p2), 64   ;;  %vm495_vm6 = vcmask (!%p191_p2), 1043456  }
   0x6   : > { %194 = sbr.rel (%p191_p2) target bundleno = 518 (0x206), region = 36  ;;  %2131 = vmatprep.subr.bf16.mxu0 (!%p191_p2), %v2300_v0  ;;  %v2301_v1 = vld [vmem:[%s3094_s3 + $0x80] sm:$0xff] (!%p191_p2)   ;;  %v2304_v20 = vld [vmem:[%s3094_s3 + $0x88] sm:$0xff] (!%p191_p2)   ;;  %v2308_v40 = vld [vmem:[%s3094_s3 + $0x90] sm:$0xff] (!%p191_p2)   ;;  %vm496_vm7 = vsmask.f32 (!%p191_p2), 3328 }
   0x7   : > { %v2423_v2 = vld [vmem:[%s3092_s1] ss:$0 sm:$0xff] (!%p191_p2)  ;;  %2132 = vmatpush3.bf16.msra.mxu0 (!%p191_p2), %v2301_v1  ;;  %v2307_v32 = vld [vmem:[%s3094_s3 + $0x148] sm:$0xff] (!%p191_p2)   ;;  %v2310_v50 = vld [vmem:[%s3094_s3 + $0xd8] sm:$0xff] (!%p191_p2)  }
   0x8   : > { %v2303_v4 = vld [vmem:[%s3094_s3 + $0x140] sm:$0xff] (!%p191_p2)   ;;  %2133 = vmatprep.subr.bf16.mxu0 (!%p191_p2), %v2302_v3  ;;  %v2309_v45 = vld [vmem:[%s3094_s3 + $0x108] sm:$0xff] (!%p191_p2)   ;;  %v2311_v57 = vld [vmem:[%s3094_s3 + $0x150] sm:$0xff] (!%p191_p2)  }
   0x9   : > { %2171 = vmatprep.subr.bf16.mxu1 (!%p191_p2), %v2303_v4  ;;  %v2447_v13 = vld [vmem:[%s3093_s2] ss:$0 sm:$0xff] (!%p191_p2)  ;;  %v2312_v58 = vld [vmem:[%s3094_s3 + $0x98] sm:$0xff] (!%p191_p2)   ;;  %vm2560_vm8 = vmand (!%p191_p2), %vm495_vm6, %vm496_vm7  ;;  %vm554_vm6 = vcmask (!%p191_p2), 523264   ;;  %vm1803_vm7 = vcmask (!%p191_p2), 516096  }
   0xa   : > { %v2305_v23 = vld [vmem:[%s3094_s3 + $0x100] sm:$0xff] (!%p191_p2)  }
   0xb   : > { %2134 = vmatpush3.bf16.msra.mxu0 (!%p191_p2), %v2304_v20  ;;  %2172 = vmatpush3.bf16.msra.mxu1 (!%p191_p2), %v2305_v23  ;;  %v2316_v23 = vld [vmem:[%s3094_s3 + $0xa0] sm:$0xff] (!%p191_p2)  }
   0xc   : > { %2135 = vmatprep.subr.bf16.mxu0 (!%p191_p2), %v2306_v28  ;;  %2173 = vmatprep.subr.bf16.mxu1 (!%p191_p2), %v2307_v32 }
   0xd   : > { %s3102_s19 = smov (!%p222_p3, %s1921_s19), 1 }
   0xe   : > { %s2129_s24 = sshll.u32 %s3102_s19, 6 }
   0xf   : > { %s2433_s6 = scalar_lea.vmem %s3091_s0, %s2129_s24  ;;  %2136 = vmatpush3.bf16.msra.mxu0 %v2308_v40  ;;  %2174 = vmatpush3.bf16.msra.mxu1 %v2309_v45  ;;  %v2319_v40 = vld [vmem:[%s3094_s3 + $0x160] sm:$0xff]   ;;  %v2320_v45 = vld [vmem:[%s3094_s3 + $0xa8] sm:$0xff]   ;;  %s3043_s30 = scalar_lea.vmem %s3095_s4, %s2129_s24 }
  0x10   : > { %v239_v5 = vld [vmem:[%s2433_s6] sm:$0xff]   ;;  %v240_v6 = vld [vmem:[%s2433_s6 + $0x8] sm:$0xff]   ;;  %v242_v7 = vld [vmem:[%s2433_s6 + $0x18] sm:$0xff]   ;;  %2137 = vmatprep.subr.bf16.mxu0 %v2310_v50  ;;  %2175 = vmatprep.subr.bf16.mxu1 %v2311_v57  ;;  %s1930_s24 = sshll.u32 %s3102_s19, 1 }
  0x11   : > { %v247_v8 = vunpack.c.l.bf16 %v239_v5  ;;  %v324_v9 = vunpack.c.h.bf16 %v239_v5  ;;  %v248_v10 = vunpack.c.l.bf16 %v240_v6  ;;  %v325_v11 = vunpack.c.h.bf16 %v240_v6  ;;  %v2442_v12 = vld [vmem:[%s2433_s6 + $0x10] sm:$0xff]   ;;  %s235_s9 = scalar_lea.vmem %s3096_s5, %s1930_s24 }
  0x12   : > { %v250_v14 = vunpack.c.l.bf16 %v242_v7  ;;  %v249_v15 = vunpack.c.l.bf16 %v2442_v12  ;;  %v327_v31 = vunpack.c.h.bf16 %v242_v7  ;;  %v326_v49 = vunpack.c.h.bf16 %v2442_v12 }
  0x13   : > { %v261_v16 = vmul.f32 %v2423_v2, %v247_v8  ;;  %v332_v17 = vmul.f32 %v2423_v2, %v324_v9  ;;  %v262_v18 = vmul.f32 %v2423_v2, %v248_v10  ;;  %v333_v19 = vmul.f32 %v2423_v2, %v325_v11  ;;  %2138 = vmatpush3.bf16.msra.mxu0 %v2312_v58  ;;  %v2313_v9 = vld [vmem:[%s3094_s3 + $0x110] sm:$0xff]   ;;  %v2323_v58 = vld [vmem:[%s3094_s3 + $0x168] sm:$0xff]  }
  0x14   : > { %v264_v21 = vmul.f32 %v2423_v2, %v250_v14  ;;  %v263_v22 = vmul.f32 %v2423_v2, %v249_v15  ;;  %v335_v53 = vmul.f32 %v2423_v2, %v327_v31  ;;  %v334_v3 = vmul.f32 %v2423_v2, %v326_v49  ;;  %v2314_v14 = vld [vmem:[%s3094_s3 + $0xe0] sm:$0xff]   ;;  %v2315_v15 = vld [vmem:[%s3094_s3 + $0x158] sm:$0xff]   ;;  %2176 = vmatpush3.bf16.msra.mxu1 %v2313_v9 }
  0x15   : > { %v275_v24 = vadd.f32 %v2447_v13, %v261_v16  ;;  %v340_v25 = vadd.f32 %v2447_v13, %v332_v17  ;;  %v276_v26 = vadd.f32 %v2447_v13, %v262_v18  ;;  %v341_v27 = vadd.f32 %v2447_v13, %v333_v19  ;;  %2139 = vmatprep.subr.bf16.mxu0 %v2314_v14  ;;  %v2317_v31 = vld [vmem:[%s3094_s3 + $0x118] sm:$0xff]   ;;  %v2626_v14 = vld [vmem:[%s2433_s6 + $0x30] sm:$0xff]  }
  0x16   : > { %v278_v29 = vadd.f32 %v2447_v13, %v264_v21  ;;  %v277_v30 = vadd.f32 %v2447_v13, %v263_v22  ;;  %v343_v12 = vadd.f32 %v2447_v13, %v335_v53  ;;  %v342_v17 = vadd.f32 %v2447_v13, %v334_v3  ;;  %v244_v22 = vld [vmem:[%s2433_s6 + $0x28] sm:$0xff]   ;;  %2177 = vmatprep.subr.bf16.mxu1 %v2315_v15  ;;  %v2321_v53 = vld [vmem:[%s3094_s3 + $0x120] sm:$0xff]  }
  0x17   : > { %vm283_vm0 = vcmp.ge.f32.partialorder %v275_v24, 0.0  ;;  %v291_v33 = vmul.f32 0.1, %v275_v24  ;;  %vm348_vm1 = vcmp.ge.f32.partialorder %v340_v25, 0.0  ;;  %v356_v34 = vmul.f32 0.1, %v340_v25  ;;  %2140 = vmatpush3.bf16.msra.mxu0 %v2316_v23 }
  0x18   : > { %vm284_vm2 = vcmp.ge.f32.partialorder %v276_v26, 0.0  ;;  %v292_v35 = vmul.f32 0.1, %v276_v26  ;;  %vm349_vm3 = vcmp.ge.f32.partialorder %v341_v27, 0.0  ;;  %v357_v36 = vmul.f32 0.1, %v341_v27  ;;  %2178 = vmatpush3.bf16.msra.mxu1 %v2317_v31 }
  0x19   : > { %v299_v37 = vsel %vm283_vm0, %v275_v24, %v291_v33  ;;  %v364_v38 = vsel %vm348_vm1, %v340_v25, %v356_v34  ;;  %vm286_vm4 = vcmp.ge.f32.partialorder %v278_v29, 0.0  ;;  %v294_v39 = vmul.f32 0.1, %v278_v29  ;;  %v2318_v34 = vld [vmem:[%s3094_s3 + $0xe8] sm:$0xff]   ;;  %2179 = vmatprep.subr.bf16.mxu1 %v2319_v40 }
  0x1a   : > { %v2477_v41 = vpack.c.bf16 %v299_v37, %v299_v37  ;;  %v2479_v42 = vpack.c.bf16 %v364_v38, %v364_v38  ;;  %v300_v43 = vsel %vm284_vm2, %v276_v26, %v292_v35  ;;  %v365_v44 = vsel %vm349_vm3, %v341_v27, %v357_v36  ;;  %v2549_v26 = vld [vmem:[%s2433_s6 + $0x20] sm:$0xff]   ;;  %2141 = vmatprep.subr.bf16.mxu0 %v2318_v34 }
  0x1b   : > { %v2484_v46 = vpack.c.bf16 %v300_v43, %v300_v43  ;;  %v2486_v47 = vpack.c.bf16 %v365_v44, %v365_v44  ;;  %v302_v48 = vsel %vm286_vm4, %v278_v29, %v294_v39  ;;  %vm285_vm5 = vcmp.ge.f32.partialorder %v277_v30, 0.0  ;;  %2142 = vmatpush3.bf16.msra.mxu0 %v2320_v45  ;;  %v2331_v45 = vld [vmem:[%s3094_s3 + $0x138] sm:$0xff]  }
  0x1c   : > { %514 = vrot.lane.b32.xlu1 %v2477_v41, %s2372_s28  ;;  %981 = vrot.lane.b32.xlu0 %v2479_v42, %s2372_s28  ;;  %v381_v51 = vshrl.u32 %v2477_v41, 16  ;;  %v384_v52 = vshll.u32 %v2477_v41, 16  ;;  %v854_v56 = vshrl.u32 %v2479_v42, 16  ;;  %v2511_v61 = vpack.c.bf16 %v302_v48, %v302_v48  ;;  %v2322_v41 = vld [vmem:[%s3094_s3 + $0xf0] sm:$0xff]  }
  0x1d   : > { %v388_v54 = vshrl.u32 %v2484_v46, 16  ;;  %v861_v55 = vshrl.u32 %v2486_v47, 16  ;;  %v391_v60 = vshll.u32 %v2484_v46, 16  ;;  %v293_v62 = vmul.f32 0.1, %v277_v30  ;;  %2180 = vmatpush3.bf16.msra.mxu1 %v2321_v53  ;;  %2143 = vmatprep.subr.bf16.mxu0 %v2322_v41 }
  0x1e   : > { %v383_v59 = vrot.slane %v381_v51, 7  ;;  %v864_v0 = vshll.u32 %v2486_v47, 16  ;;  %v857_v1 = vshll.u32 %v2479_v42, 16  ;;  %v402_v6 = vshrl.u32 %v2511_v61, 16  ;;  %2181 = vmatprep.subr.bf16.mxu1 %v2323_v58 }
  0x1f   : > { %v390_v63 = vrot.slane %v388_v54, 7  ;;  %v863_v5 = vrot.slane %v861_v55, 7  ;;  %v856_v7 = vrot.slane %v854_v56, 7  ;;  %v301_v8 = vsel %vm285_vm5, %v277_v30, %v293_v62  ;;  %v2324_v62 = vld [vmem:[%s3094_s3 + $0xb0] sm:$0xff]  }
  0x20   : > { %516 = vrot.lane.b32.xlu1 %v2484_v46, %s2372_s28  ;;  %v386_v4 = vor.u32 %v384_v52, %v383_v59  ;;  %v2528_v11 = vpack.c.bf16 %v301_v8, %v301_v8  ;;  %v473_v16 = vrot.slane %v391_v60, 1  ;;  %v404_v19 = vrot.slane %v402_v6, 7  ;;  %2144 = vmatpush3.bf16.msra.mxu0 %v2324_v62 }
  0x21   : > { %v393_v10 = vor.u32 %v391_v60, %v390_v63  ;;  %v866_v18 = vor.u32 %v864_v0, %v863_v5  ;;  %v405_v20 = vshll.u32 %v2511_v61, 16  ;;  %v859_v24 = vor.u32 %v857_v1, %v856_v7 }
  0x22   : > { %436 = vrot.lane.b32.xlu0 %v386_v4, %s2372_s28  ;;  %v395_v21 = vshrl.u32 %v2528_v11, 16  ;;  %v471_v25 = vrot.slane %v384_v52, 1  ;;  %v398_v28 = vshll.u32 %v2528_v11, 16  ;;  %v943_v29 = vrot.slane %v864_v0, 1  ;;  %v2325_v4 = vld [vmem:[%s3094_s3 + $0x128] sm:$0xff]  }
  0x23   : > { %v359_v30 = vmul.f32 0.1, %v343_v12  ;;  %vm351_vm9 = vcmp.ge.f32.partialorder %v343_v12, 0.0  ;;  %v358_v33 = vmul.f32 0.1, %v342_v17  ;;  %v407_v35 = vor.u32 %v405_v20, %v404_v19  ;;  %2182 = vmatpush3.bf16.msra.mxu1 %v2325_v4 }
  0x24   : > { %983 = vrot.lane.b32.xlu1 %v2486_v47, %s2372_s28  ;;  %v397_v27 = vrot.slane %v395_v21, 7  ;;  %v474_v36 = vor.u32 %v473_v16, %v388_v54  ;;  %v941_v37 = vrot.slane %v857_v1, 1  ;;  %v252_v38 = vunpack.c.l.bf16 %v244_v22 }
  0x25   : > { %v251_v39 = vunpack.c.l.bf16 %v2549_v26  ;;  %v367_v44 = vsel %vm351_vm9, %v343_v12, %v359_v30  ;;  %vm350_vm10 = vcmp.ge.f32.partialorder %v342_v17, 0.0  ;;  %v472_v46 = vor.u32 %v471_v25, %v381_v51 }
  0x26   : > { %438 = vrot.lane.b32.xlu0 %v393_v10, %s2372_s28  ;;  %v400_v43 = vor.u32 %v398_v28, %v397_v27  ;;  %v266_v48 = vmul.f32 %v2423_v2, %v252_v38  ;;  %v499_v49 = vsel %vm2560_vm8, %v474_v36, 0  ;;  %v944_v50 = vor.u32 %v943_v29, %v861_v55  ;;  %v2330_v36 = vld [vmem:[%s3094_s3 + $0x178] sm:$0xff]  }
  0x27   : > { %v329_v52 = vunpack.c.h.bf16 %v244_v22  ;;  %v942_v51 = vor.u32 %v941_v37, %v854_v56  ;;  %v2592_v54 = vpack.c.bf16 %v367_v44, %v367_v44  ;;  %v366_v57 = vsel %vm350_vm10, %v342_v17, %v358_v33  ;;  %v2604_v56 = vld [vmem:[%s2433_s6 + $0x38] sm:$0xff]  }
  0x28   : > { %911 = vrot.lane.b32.xlu1 %v866_v18, %s2372_s28  ;;  %v265_v47 = vmul.f32 %v2423_v2, %v251_v39  ;;  %v280_v55 = vadd.f32 %v2447_v13, %v266_v48  ;;  %v498_v59 = vsel %vm2560_vm8, %v472_v46, 0  ;;  %v477_v60 = vrot.slane %v405_v20, 1  ;;  %v2326_v17 = vld [vmem:[%s3094_s3 + $0xf8] sm:$0xff]  }
  0x29   : > { %v328_v42 = vunpack.c.h.bf16 %v2549_v26  ;;  %v966_v63 = vsel %vm2560_vm8, %v944_v50, 0  ;;  %v475_v0 = vrot.slane %v398_v28, 1  ;;  %v2612_v1 = vpack.c.bf16 %v366_v57, %v366_v57  ;;  %v2328_v22 = vld [vmem:[%s3094_s3 + $0xb8] sm:$0xff]   ;;  %2145 = vmatprep.subr.bf16.mxu0 %v2326_v17 }
  0x2a   : > { %909 = vrot.lane.b32.xlu0 %v859_v24, %s2372_s28  ;;  %v337_v3 = vmul.f32 %v2423_v2, %v329_v52  ;;  %v965_v5 = vsel %vm2560_vm8, %v942_v51, 0  ;;  %v875_v7 = vshrl.u32 %v2592_v54, 16  ;;  %v878_v8 = vshll.u32 %v2592_v54, 16  ;;  %2146 = vmatpush3.bf16.msra.mxu0 %v2328_v22 }
  0x2b   : > { %v279_v9 = vadd.f32 %v2447_v13, %v265_v47  ;;  %v296_v10 = vmul.f32 0.1, %v280_v55  ;;  %v254_v12 = vunpack.c.l.bf16 %v2604_v56  ;;  %v478_v15 = vor.u32 %v477_v60, %v402_v6  ;;  %v2327_v6 = vld [vmem:[%s3094_s3 + $0x170] sm:$0xff]  }
  0x2c   : > { %442 = vrot.lane.b32.xlu1 %v407_v35, %s2372_s28  ;;  %vm288_vm11 = vcmp.ge.f32.partialorder %v280_v55, 0.0  ;;  %v336_v16 = vmul.f32 %v2423_v2, %v328_v42  ;;  %v868_v18 = vshrl.u32 %v2612_v1, 16  ;;  %v871_v19 = vshll.u32 %v2612_v1, 16  ;;  %2183 = vmatprep.subr.bf16.mxu1 %v2327_v6  ;;  %v2329_v35 = vld [vmem:[%s3094_s3 + $0x130] sm:$0xff]  }
  0x2d   : > { %v345_v20 = vadd.f32 %v2447_v13, %v337_v3  ;;  %v476_v23 = vor.u32 %v475_v0, %v395_v21  ;;  %v295_v24 = vmul.f32 0.1, %v279_v9  ;;  %v268_v25 = vmul.f32 %v2423_v2, %v254_v12  ;;  %2184 = vmatpush3.bf16.msra.mxu1 %v2329_v35 }
  0x2e   : > { %440 = vrot.lane.b32.xlu0 %v400_v43, %s2372_s28  ;;  %v947_v26 = vrot.slane %v878_v8, 1  ;;  %v945_v27 = vrot.slane %v871_v19, 1  ;;  %v304_v28 = vsel %vm288_vm11, %v280_v55, %v296_v10  ;;  %vm287_vm12 = vcmp.ge.f32.partialorder %v279_v9, 0.0  ;;  %2185 = vmatprep.subr.bf16.mxu1 %v2330_v36 }
  0x2f   : > { %v501_v29 = vsel %vm2560_vm8, %v478_v15, 0  ;;  %v877_v30 = vrot.slane %v875_v7, 7  ;;  %v344_v31 = vadd.f32 %v2447_v13, %v336_v16  ;;  %v253_v21 = vunpack.c.l.bf16 %v2626_v14 }
  0x30   : > { %540 = vrot.lane.b32.xlu1 %v499_v49, %s2372_s28  ;;  %v361_v33 = vmul.f32 0.1, %v345_v20  ;;  %v331_v34 = vunpack.c.h.bf16 %v2604_v56  ;;  %v500_v37 = vsel %vm2560_vm8, %v476_v23, 0  ;;  %v2664_v38 = vpack.c.bf16 %v304_v28, %v304_v28 }
  0x31   : > { %v303_v39 = vsel %vm287_vm12, %v279_v9, %v295_v24  ;;  %vm353_vm13 = vcmp.ge.f32.partialorder %v345_v20, 0.0  ;;  %v948_v40 = vor.u32 %v947_v26, %v875_v7  ;;  %v946_v43 = vor.u32 %v945_v27, %v868_v18  ;;  %2186 = vmatpush3.bf16.msra.mxu1 %v2331_v45 }
  0x32   : > { %538 = vrot.lane.b32.xlu0 %v498_v59, %s2372_s28  ;;  %v2669_v44 = vadd.f32 %v2447_v13, %v268_v25  ;;  %v880_v46 = vor.u32 %v878_v8, %v877_v30  ;;  %v360_v48 = vmul.f32 0.1, %v344_v31  ;;  %v267_v49 = vmul.f32 %v2423_v2, %v253_v21 }
  0x33   : > { %v2676_v50 = vpack.c.bf16 %v303_v39, %v303_v39  ;;  %vm352_vm14 = vcmp.ge.f32.partialorder %v344_v31, 0.0  ;;  %v339_v52 = vmul.f32 %v2423_v2, %v331_v34  ;;  %v416_v53 = vshrl.u32 %v2664_v38, 16 }
  0x34   : > { %1007 = vrot.lane.b32.xlu1 %v966_v63, %s2372_s28  ;;  %v2681_v41 = vadd.f32 %v2447_v13, %v267_v49  ;;  %v330_v51 = vunpack.c.h.bf16 %v2626_v14  ;;  %v968_v47 = vsel %vm2560_vm8, %v948_v40, 0  ;;  %v967_v55 = vsel %vm2560_vm8, %v946_v43, 0 }
  0x35   : > { %v347_v58 = vadd.f32 %v2447_v13, %v339_v52  ;;  %v419_v59 = vshll.u32 %v2664_v38, 16  ;;  %v368_v42 = vsel %vm352_vm14, %v344_v31, %v360_v48  ;;  %v409_v62 = vshrl.u32 %v2676_v50, 16 }
  0x36   : > { %1005 = vrot.lane.b32.xlu0 %v965_v5, %s2372_s28  ;;  %v338_v56 = vmul.f32 %v2423_v2, %v330_v51  ;;  %v418_v0 = vrot.slane %v416_v53, 7  ;;  %v412_v3 = vshll.u32 %v2676_v50, 16  ;;  %v2699_v5 = vpack.c.bf16 %v368_v42, %v368_v42 }
  0x37   : > { %vm355_vm15 = vcmp.ge.f32.partialorder %v347_v58, 0.0  ;;  %v363_v63 = vmul.f32 0.1, %v347_v58  ;;  %v481_v8 = vrot.slane %v419_v59, 1  ;;  %v411_v10 = vrot.slane %v409_v62, 7 }
  0x38   : > { %520 = vrot.lane.b32.xlu1 %v2511_v61, %s2372_s28  ;;  %v870_v61 = vrot.slane %v868_v18, 7  ;;  %v346_v4 = vadd.f32 %v2447_v13, %v338_v56  ;;  %v479_v15 = vrot.slane %v412_v3, 1  ;;  %v882_v16 = vshrl.u32 %v2699_v5, 16 }
  0x39   : > { %v371_v7 = vsel %vm355_vm15, %v347_v58, %v363_v63  ;;  %v885_v17 = vshll.u32 %v2699_v5, 16  ;;  %v421_v22 = vor.u32 %v419_v59, %v418_v0  ;;  %vm290_vm1 = vcmp.ge.f32.partialorder %v2669_v44, 0.0 }
  0x3a   : > { %518 = vrot.lane.b32.xlu0 %v2528_v11, %s2372_s28  ;;  %v369_v11 = vsel %vm353_vm13, %v345_v20, %v361_v33  ;;  %v873_v57 = vor.u32 %v871_v19, %v870_v61  ;;  %v2702_v2 = vpack.c.bf16 %v371_v7, %v371_v7  ;;  %vm354_vm0 = vcmp.ge.f32.partialorder %v346_v4, 0.0 }
  0x3b   : > { %v2691_v60 = vpack.c.bf16 %v369_v11, %v369_v11  ;;  %v362_v14 = vmul.f32 0.1, %v346_v4  ;;  %v414_v24 = vor.u32 %v412_v3, %v411_v10  ;;  %v298_v25 = vmul.f32 0.1, %v2669_v44 }
  0x3c   : > { %544 = vrot.lane.b32.xlu1 %v501_v29, %s2372_s28  ;;  %v906_v13 = vshll.u32 %v2702_v2, 16  ;;  %v903_v20 = vshrl.u32 %v2702_v2, 16  ;;  %v2332_v29 = vld [vmem:[%s3094_s3 + $0x40] sm:$0xff]   ;;  %v482_v30 = vor.u32 %v481_v8, %v416_v53  ;;  %v297_v31 = vmul.f32 0.1, %v2681_v41 }
  0x3d   : > { %v889_v9 = vshrl.u32 %v2691_v60, 16  ;;  %v892_v12 = vshll.u32 %v2691_v60, 16  ;;  %v370_v18 = vsel %vm354_vm0, %v346_v4, %v362_v14  ;;  %2211 = vmatprep.subr.bf16.mxu0 %v2332_v29  ;;  %v480_v33 = vor.u32 %v479_v15, %v409_v62 }
  0x3e   : > { %542 = vrot.lane.b32.xlu0 %v500_v37, %s2372_s28  ;;  %v2713_v6 = vpack.c.bf16 %v370_v18, %v370_v18  ;;  %v884_v34 = vrot.slane %v882_v16, 7  ;;  %v503_v36 = vsel %vm2560_vm8, %v482_v30, 0  ;;  %vm289_vm2 = vcmp.ge.f32.partialorder %v2681_v41, 0.0  ;;  %v2334_v30 = vld [vmem:[%s3094_s3 + $0x48] sm:$0xff]  }
  0x3f   : > { %v891_v19 = vrot.slane %v889_v9, 7  ;;  %v306_v37 = vsel %vm290_vm1, %v2669_v44, %v298_v25  ;;  %v502_v39 = vsel %vm2560_vm8, %v480_v33, 0  ;;  %v305_v61 = vsel %vm289_vm2, %v2681_v41, %v297_v31  ;;  %v2338_v44 = vld [vmem:[%s3094_s3 + $0x1c0] sm:$0xff]  }
  0x40   : > { %915 = vrot.lane.b32.xlu1 %v880_v46, %s2372_s28  ;;  %v896_v26 = vshrl.u32 %v2713_v6, 16  ;;  %v951_v40 = vrot.slane %v892_v12, 1  ;;  %v314_v43 = vpack.c.bf16 %v306_v37, %v306_v37  ;;  %v887_v45 = vor.u32 %v885_v17, %v884_v34  ;;  %2251 = vmatprep.subr.bf16.mxu1 %v2338_v44 }
  0x41   : > { %v313_v46 = vpack.c.bf16 %v305_v61, %v305_v61  ;;  %v949_v48 = vrot.slane %v885_v17, 1  ;;  %v905_v63 = vrot.slane %v903_v20, 7  ;;  %vm460_vm3 = vcmask 1040384   ;;  %v2340_v61 = vld [vmem:[%s3094_s3 + $0x180] sm:$0xff]  }
  0x42   : > { %913 = vrot.lane.b32.xlu0 %v873_v57, %s2372_s28  ;;  %v430_v49 = vshrl.u32 %v314_v43, 16  ;;  %v433_v41 = vshll.u32 %v314_v43, 16  ;;  %v898_v3 = vrot.slane %v896_v26, 7  ;;  %vm461_vm4 = vsmask.f32 256 }
  0x43   : > { %v423_v11 = vshrl.u32 %v313_v46, 16  ;;  %v950_v52 = vor.u32 %v949_v48, %v882_v16  ;;  %vm2798_vm5 = vmand %vm460_vm3, %vm461_vm4 }
  0x44   : > { %987 = vrot.lane.b32.xlu1 %v2592_v54, %s2372_s28  ;;  %v955_v54 = vrot.slane %v906_v13, 1  ;;  %v432_v53 = vrot.slane %v430_v49, 7  ;;  %v485_v59 = vrot.slane %v433_v41, 1 }
  0x45   : > { %v425_v57 = vrot.slane %v423_v11, 7 }
  0x46   : > { %985 = vrot.lane.b32.xlu0 %v2612_v1, %s2372_s28  ;;  %v899_v1 = vshll.u32 %v2713_v6, 16  ;;  %v2722_v23 = vor.u32 %v955_v54, %v903_v20  ;;  %v435_v58 = vor.u32 %v433_v41, %v432_v53  ;;  %v486_v56 = vor.u32 %v485_v59, %v430_v49  ;;  %v2346_v53 = vld [vmem:[%s3094_s3 + $0x1d0] sm:$0xff]  }
  0x48   : > { %1011 = vrot.lane.b32.xlu1 %v968_v47, %s2372_s28  ;;  %v972_v27 = vsel %vm2560_vm8, %v2722_v23, 0  ;;  %v953_v28 = vrot.slane %v899_v1, 1  ;;  %v426_v47 = vshll.u32 %v313_v46, 16  ;;  %v505_v0 = vsel %vm2560_vm8, %v486_v56, 0 }
  0x49   : > { %v901_v7 = vor.u32 %v899_v1, %v898_v3 }
  0x4a   : > { %1009 = vrot.lane.b32.xlu0 %v967_v55, %s2372_s28  ;;  %v954_v21 = vor.u32 %v953_v28, %v896_v26  ;;  %v969_v55 = vsel %vm2560_vm8, %v950_v52, 0  ;;  %v483_v42 = vrot.slane %v426_v47, 1  ;;  %v2339_v52 = vld [vmem:[%s3094_s3 + $0x58] sm:$0xff]  }
  0x4c   : > { %446 = vrot.lane.b32.xlu1 %v421_v22, %s2372_s28  ;;  %v971_v35 = vsel %vm2560_vm8, %v954_v21, 0  ;;  %v484_v62 = vor.u32 %v483_v42, %v423_v11  ;;  %v2344_v11 = vld [vmem:[%s3094_s3 + $0x188] sm:$0xff]   ;;  %v2348_v42 = vld [vmem:[%s3094_s3 + $0x190] sm:$0xff]  }
  0x4e   : > { %444 = vrot.lane.b32.xlu0 %v414_v24, %s2372_s28  ;;  %v504_v4 = vsel %vm2560_vm8, %v484_v62, 0  ;;  %v2343_v62 = vld [vmem:[%s3094_s3 + $0x60] sm:$0xff]  }
  0x50   : > { %524 = vrot.lane.b32.xlu1 %v2664_v38, %s2372_s28  ;;  %v894_v38 = vor.u32 %v892_v12, %v891_v19 }
  0x52   : > { %522 = vrot.lane.b32.xlu0 %v2676_v50, %s2372_s28  ;;  %v952_v50 = vor.u32 %v951_v40, %v889_v9  ;;  %v2336_v40 = vld [vmem:[%s3094_s3 + $0x50] sm:$0xff]  }
  0x54   : > { %548 = vrot.lane.b32.xlu1 %v503_v36, %s2372_s28  ;;  %v970_v51 = vsel %vm2560_vm8, %v952_v50, 0  ;;  %v2337_v50 = vld [vmem:[%s3094_s3 + $0x10] sm:$0xff]  }
  0x56   : > { %546 = vrot.lane.b32.xlu0 %v502_v39, %s2372_s28  ;;  %v2335_v39 = vld [vmem:[%s3094_s3 + $0x8] sm:$0xff]  }
  0x58   : > { %919 = vrot.lane.b32.xlu1 %v894_v38, %s2372_s28 }
  0x5a   : > { %917 = vrot.lane.b32.xlu0 %v887_v45, %s2372_s28 }
  0x5c   : > { %991 = vrot.lane.b32.xlu1 %v2691_v60, %s2372_s28  ;;  %v428_v60 = vor.u32 %v426_v47, %v425_v57 }
  0x5e   : > { %989 = vrot.lane.b32.xlu0 %v2699_v5, %s2372_s28  ;;  %v908_v5 = vor.u32 %v906_v13, %v905_v63  ;;  %v2350_v63 = vld [vmem:[%s3094_s3 + $0x1d8] sm:$0xff]  }
  0x60   : > { %1015 = vrot.lane.b32.xlu1 %v970_v51, %s2372_s28 }
  0x62   : > { %1013 = vrot.lane.b32.xlu0 %v969_v55, %s2372_s28 }
  0x64   : > { %450 = vrot.lane.b32.xlu1 %v435_v58, %s2372_s28 }
  0x66   : > { %448 = vrot.lane.b32.xlu0 %v428_v60, %s2372_s28  ;;  %v2341_v60 = vld [vmem:[%s3094_s3 + $0x18] sm:$0xff]  }
  0x68   : > { %528 = vrot.lane.b32.xlu1 %v314_v43, %s2372_s28  ;;  %v2342_v43 = vld [vmem:[%s3094_s3 + $0x1c8] sm:$0xff]  }
  0x6a   : > { %526 = vrot.lane.b32.xlu0 %v313_v46, %s2372_s28 }
  0x6c   : > { %552 = vrot.lane.b32.xlu1 %v505_v0, %s2372_s28 }
  0x6e   : > { %550 = vrot.lane.b32.xlu0 %v504_v4, %s2372_s28  ;;  %v2345_v4 = vld [vmem:[%s3094_s3 + $0x20] sm:$0xff]  }
  0x70   : > { %923 = vrot.lane.b32.xlu1 %v908_v5, %s2372_s28  ;;  %v2352_v5 = vld [vmem:[%s3094_s3 + $0x198] sm:$0xff]  }
  0x72   : > { %921 = vrot.lane.b32.xlu0 %v901_v7, %s2372_s28  ;;  %v2347_v7 = vld [vmem:[%s3094_s3 + $0x68] sm:$0xff]  }
  0x74   : > { %995 = vrot.lane.b32.xlu1 %v2702_v2, %s2372_s28 }
  0x76   : > { %993 = vrot.lane.b32.xlu0 %v2713_v6, %s2372_s28 }
  0x78   : > { %1019 = vrot.lane.b32.xlu1 %v972_v27, %s2372_s28  ;;  %v2333_v27 = vld [vmem:[%s3094_s3] sm:$0xff]  }
  0x7a   : > { %1017 = vrot.lane.b32.xlu0 %v971_v35, %s2372_s28 }
  0x8e   : > { %v515_v8 = vpop.permute.xlu1 %514  ;;  %v982_v9 = vpop.permute.xlu0 %981 }
  0x92   : > { %v517_v10 = vpop.permute.xlu1 %516 }
  0x94   : > { %v437_v12 = vpop.permute.xlu0 %436 }
  0x95   : > { %v463_v20 = vsel %vm2798_vm5, 0, %v437_v12  ;;  %v2349_v12 = vld [vmem:[%s3094_s3 + $0x28] sm:$0xff]  }
  0x96   : > { %v984_v14 = vpop.permute.xlu1 %983  ;;  %v557_v24 = vsel %vm554_vm6, %v463_v20, %v515_v8 }
  0x98   : > { %v439_v15 = vpop.permute.xlu0 %438 }
  0x99   : > { %v464_v18 = vsel %vm2798_vm5, 0, %v439_v15 }
  0x9a   : > { %v912_v13 = vpop.permute.xlu1 %911  ;;  %v2807_v6 = vsel %vm554_vm6, %v464_v18, %v517_v10 }
  0x9b   : > { %v1973_v28 = vcombine.low %v557_v24, %v2807_v6  ;;  %v934_v29 = vsel %vm2798_vm5, 0, %v912_v13  ;;  %v2353_v24 = vld [vmem:[%s3094_s3 + $0x30] sm:$0xff]  }
  0x9c   : > { %v910_v16 = vpop.permute.xlu0 %909  ;;  %v1026_v35 = vsel %vm554_vm6, %v934_v29, %v984_v14 }
  0x9d   : > { %v933_v22 = vsel %vm2798_vm5, 0, %v910_v16  ;;  %v2351_v16 = vld [vmem:[%s3094_s3 + $0x70] sm:$0xff]  }
  0x9e   : > { %v443_v2 = vpop.permute.xlu1 %442  ;;  %v1023_v31 = vsel %vm554_vm6, %v933_v22, %v982_v9 }
  0x9f   : > { %v2838_v38 = vcombine.low %v1023_v31, %v1026_v35  ;;  %v466_v51 = vsel %vm2798_vm5, 0, %v443_v2  ;;  %v2358_v2 = vld [vmem:[%s3094_s3 + $0x1e8] sm:$0xff]   ;;  %v2357_v31 = vld [vmem:[%s3094_s3 + $0x38] sm:$0xff]  }
  0xa0   : > { %v441_v32 = vpop.permute.xlu0 %440 }
  0xa1   : > { %v465_v45 = vsel %vm2798_vm5, 0, %v441_v32 }
  0xa2   : > { %v541_v19 = vpop.permute.xlu1 %540 }
  0xa3   : > { %v2813_v23 = vsel %vm554_vm6, %v517_v10, %v541_v19 }
  0xa4   : > { %v539_v54 = vpop.permute.xlu0 %538 }
  0xa5   : > { %v580_v1 = vsel %vm554_vm6, %v515_v8, %v539_v54  ;;  %v2354_v8 = vld [vmem:[%s3094_s3 + $0x1e0] sm:$0xff]  }
  0xa6   : > { %v1008_v25 = vpop.permute.xlu1 %1007  ;;  %v1974_v26 = vcombine.low %v580_v1, %v2813_v23 }
  0xa7   : > { %v1048_v33 = vsel %vm554_vm6, %v984_v14, %v1008_v25  ;;  %v2356_v14 = vld [vmem:[%s3094_s3 + $0x1a0] sm:$0xff]   ;;  %v2359_v25 = vld [vmem:[%s3094_s3 + $0x1a8] sm:$0xff]  }
  0xa8   : > { %804 = vmatprep.mubr.bf16.mxu0 %v1974_v26  ;;  %v1006_v21 = vpop.permute.xlu0 %1005 }
  0xa9   : > { %v1046_v34 = vsel %vm554_vm6, %v982_v9, %v1006_v21  ;;  %805 = vmatmul.mubr.bf16.vlgmr.msra.gmra.mrb[0].mxu0 %v1973_v28  ;;  %v2360_v28 = vld [vmem:[%s3094_s3 + $0x1f0] sm:$0xff]  }
  0xaa   : > { %v521_v36 = vpop.permute.xlu1 %520  ;;  %v2830_v37 = vcombine.low %v1046_v34, %v1048_v33  ;;  %2212 = vmatpush3.bf16.msra.mxu0 %v2333_v27  ;;  %v2355_v27 = vld [vmem:[%s3094_s3 + $0x78] sm:$0xff]   ;;  %v2361_v21 = vld [vmem:[%s3094_s3 + $0x1b0] sm:$0xff]  }
  0xab   : > { %2213 = vmatprep.subr.bf16.mxu0 %v2334_v30  ;;  %v2876_v55 = vsel %vm554_vm6, %v466_v51, %v521_v36  ;;  %v2362_v33 = vld [vmem:[%s3094_s3 + $0x1f8] sm:$0xff]  }
  0xac   : > { %1270 = vmatprep.mubr.bf16.mxu1 %v2830_v37  ;;  %v519_v46 = vpop.permute.xlu0 %518 }
  0xad   : > { %v2850_v48 = vsel %vm554_vm6, %v465_v45, %v519_v46  ;;  %1271 = vmatmul.mubr.bf16.vlgmr.msra.gmra.mrb[0].mxu1 %v2838_v38 }
  0xae   : > { %v2103_v44 = vcombine.low %v2807_v6, %v2850_v48  ;;  %v545_v49 = vpop.permute.xlu1 %544  ;;  %2214 = vmatpush3.bf16.msra.mxu0 %v2335_v39  ;;  %2252 = vmatpush3.bf16.msra.mxu1 %v2340_v61  ;;  %v1975_v56 = vcombine.low %v2850_v48, %v2876_v55 }
  0xaf   : > { %2215 = vmatprep.subr.bf16.mxu0 %v2336_v40  ;;  %2253 = vmatprep.subr.bf16.mxu1 %v2342_v43  ;;  %v2870_v57 = vsel %vm554_vm6, %v521_v36, %v545_v49  ;;  %v2363_v36 = vld [vmem:[%s3094_s3 + $0x1b8] sm:$0xff]  }
  0xb0   : > { %v543_v41 = vpop.permute.xlu0 %542 }
  0xb1   : > { %v2873_v47 = vsel %vm554_vm6, %v519_v46, %v543_v41 }
  0xb2   : > { %v1976_v58 = vcombine.low %v2873_v47, %v2870_v57  ;;  %v916_v59 = vpop.permute.xlu1 %915  ;;  %2216 = vmatpush3.bf16.msra.mxu0 %v2337_v50  ;;  %2254 = vmatpush3.bf16.msra.mxu1 %v2344_v11 }
  0xb3   : > { %2217 = vmatprep.subr.bf16.mxu0 %v2339_v52  ;;  %2255 = vmatprep.subr.bf16.mxu1 %v2346_v53  ;;  %v936_v15 = vsel %vm2798_vm5, 0, %v916_v59 }
  0xb4   : > { %812 = vmatprep.mubr.bf16.mxu0 %v1976_v58  ;;  %v914_v0 = vpop.permute.xlu0 %913 }
  0xb5   : > { %813 = vmatmul.mubr.bf16.gmra.mrb[4].mxu0 %v1975_v56  ;;  %v935_v13 = vsel %vm2798_vm5, 0, %v914_v0 }
  0xb6   : > { %v988_v3 = vpop.permute.xlu1 %987  ;;  %2218 = vmatpush3.bf16.msra.mxu0 %v2341_v60  ;;  %2256 = vmatpush3.bf16.msra.mxu1 %v2348_v42 }
  0xb7   : > { %2219 = vmatprep.subr.bf16.mxu0 %v2343_v62  ;;  %2257 = vmatprep.subr.bf16.mxu1 %v2350_v63  ;;  %v1032_v54 = vsel %vm554_vm6, %v936_v15, %v988_v3 }
  0xb8   : > { %v986_v9 = vpop.permute.xlu0 %985 }
  0xb9   : > { %v1029_v32 = vsel %vm554_vm6, %v935_v13, %v986_v9 }
  0xba   : > { %v1012_v10 = vpop.permute.xlu1 %1011  ;;  %2220 = vmatpush3.bf16.msra.mxu0 %v2345_v4  ;;  %2258 = vmatpush3.bf16.msra.mxu1 %v2352_v5  ;;  %v2934_v26 = vcombine.low %v1029_v32, %v1032_v54 }
  0xbb   : > { %2221 = vmatprep.subr.bf16.mxu0 %v2347_v7  ;;  %2259 = vmatprep.subr.bf16.mxu1 %v2354_v8  ;;  %v1052_v19 = vsel %vm554_vm6, %v988_v3, %v1012_v10 }
  0xbc   : > { %v1010_v18 = vpop.permute.xlu0 %1009 }
  0xbd   : > { %v1050_v20 = vsel %vm554_vm6, %v986_v9, %v1010_v18 }
  0xbe   : > { %v2926_v22 = vcombine.low %v1050_v20, %v1052_v19  ;;  %v447_v1 = vpop.permute.xlu1 %446  ;;  %2222 = vmatpush3.bf16.msra.mxu0 %v2349_v12  ;;  %2260 = vmatpush3.bf16.msra.mxu1 %v2356_v14 }
  0xbf   : > { %2223 = vmatprep.subr.bf16.mxu0 %v2351_v16  ;;  %2261 = vmatprep.subr.bf16.mxu1 %v2358_v2  ;;  %v468_v39 = vsel %vm2798_vm5, 0, %v447_v1 }
  0xc0   : > { %1278 = vmatprep.mubr.bf16.mxu1 %v2926_v22  ;;  %v445_v29 = vpop.permute.xlu0 %444 }
  0xc1   : > { %1279 = vmatmul.mubr.bf16.gmra.mrb[4].mxu1 %v2934_v26  ;;  %v467_v61 = vsel %vm2798_vm5, 0, %v445_v29 }
  0xc2   : > { %v525_v30 = vpop.permute.xlu1 %524  ;;  %2224 = vmatpush3.bf16.msra.mxu0 %v2353_v24  ;;  %2262 = vmatpush3.bf16.msra.mxu1 %v2359_v25 }
  0xc3   : > { %2225 = vmatprep.subr.bf16.mxu0 %v2355_v27  ;;  %2263 = vmatprep.subr.bf16.mxu1 %v2360_v28  ;;  %v2970_v49 = vsel %vm554_vm6, %v468_v39, %v525_v30 }
  0xc4   : > { %v523_v34 = vpop.permute.xlu0 %522 }
  0xc5   : > { %v2961_v40 = vsel %vm554_vm6, %v467_v61, %v523_v34 }
  0xc6   : > { %v549_v35 = vpop.permute.xlu1 %548  ;;  %2226 = vmatpush3.bf16.msra.mxu0 %v2357_v31  ;;  %2264 = vmatpush3.bf16.msra.mxu1 %v2361_v21  ;;  %v1977_v52 = vcombine.low %v2961_v40, %v2970_v49 }
  0xc7   : > { %2265 = vmatprep.subr.bf16.mxu1 %v2362_v33  ;;  %v2964_v45 = vsel %vm554_vm6, %v525_v30, %v549_v35  ;;  %v2104_v35 = vcombine.low %v2813_v23, %v2873_v47  ;;  %v2105_v23 = vcombine.low %v2876_v55, %v2961_v40 }
  0xc8   : > { %v547_v43 = vpop.permute.xlu0 %546 }
  0xc9   : > { %v2967_v46 = vsel %vm554_vm6, %v523_v34, %v547_v43 }
  0xca   : > { %v1978_v50 = vcombine.low %v2967_v46, %v2964_v45  ;;  %v920_v11 = vpop.permute.xlu1 %919  ;;  %2266 = vmatpush3.bf16.msra.mxu1 %v2363_v36  ;;  %v2106_v17 = vcombine.low %v2870_v57, %v2967_v46 }
  0xcb   : > { %v938_v59 = vsel %vm2798_vm5, 0, %v920_v11 }
  0xcc   : > { %820 = vmatprep.mubr.bf16.mxu0 %v1978_v50  ;;  %v918_v53 = vpop.permute.xlu0 %917 }
  0xcd   : > { %821 = vmatmul.mubr.bf16.gmra.mrb[8].mxu0 %v1977_v52  ;;  %v937_v60 = vsel %vm2798_vm5, 0, %v918_v53 }
  0xce   : > { %v992_v41 = vpop.permute.xlu1 %991 }
  0xcf   : > { %v1038_v0 = vsel %vm554_vm6, %v938_v59, %v992_v41 }
  0xd0   : > { %v990_v51 = vpop.permute.xlu0 %989 }
  0xd1   : > { %v1035_v42 = vsel %vm554_vm6, %v937_v60, %v990_v51 }
  0xd2   : > { %v1016_v58 = vpop.permute.xlu1 %1015  ;;  %v2033_v5 = vcombine.low %v1035_v42, %v1038_v0 }
  0xd3   : > { %v1056_v62 = vsel %vm554_vm6, %v992_v41, %v1016_v58 }
  0xd4   : > { %v1014_v56 = vpop.permute.xlu0 %1013 }
  0xd5   : > { %v1054_v63 = vsel %vm554_vm6, %v990_v51, %v1014_v56 }
  0xd6   : > { %v2034_v3 = vcombine.low %v1054_v63, %v1056_v62  ;;  %v451_v4 = vpop.permute.xlu1 %450 }
  0xd7   : > { %v470_v12 = vsel %vm2798_vm5, 0, %v451_v4 }
  0xd8   : > { %1286 = vmatprep.mubr.bf16.mxu1 %v2034_v3  ;;  %v449_v7 = vpop.permute.xlu0 %448 }
  0xd9   : > { %1287 = vmatmul.mubr.bf16.gmra.mrb[8].mxu1 %v2033_v5  ;;  %v469_v14 = vsel %vm2798_vm5, 0, %v449_v7 }
  0xda   : > { %v529_v8 = vpop.permute.xlu1 %528 }
  0xdb   : > { %v578_v32 = vsel %vm554_vm6, %v470_v12, %v529_v8 }
  0xdc   : > { %v527_v9 = vpop.permute.xlu0 %526  ;;  %v2109_v6 = vcombine.low %v578_v32, %v578_v32 }
  0xdd   : > { %v575_v15 = vsel %vm554_vm6, %v469_v14, %v527_v9 }
  0xde   : > { %v553_v10 = vpop.permute.xlu1 %552  ;;  %v1979_v20 = vcombine.low %v575_v15, %v578_v32 }
  0xdf   : > { %v594_v16 = vsel %vm554_vm6, %v529_v8, %v553_v10 }
  0xe0   : > { %v551_v13 = vpop.permute.xlu0 %550  ;;  %v2110_v57 = vcombine.low %v594_v16, %v594_v16 }
  0xe1   : > { %v592_v2 = vsel %vm554_vm6, %v527_v9, %v551_v13 }
  0xe2   : > { %v1980_v18 = vcombine.low %v592_v2, %v594_v16  ;;  %v924_v19 = vpop.permute.xlu1 %923  ;;  %v2108_v47 = vcombine.low %v2964_v45, %v592_v2 }
  0xe3   : > { %v940_v27 = vsel %vm2798_vm5, 0, %v924_v19 }
  0xe4   : > { %828 = vmatprep.mubr.bf16.mxu0 %v1980_v18  ;;  %v922_v54 = vpop.permute.xlu0 %921 }
  0xe5   : > { %829 = vmatmul.mubr.bf16.gmra.mrb[12].mxu0 %v1979_v20  ;;  %v939_v28 = vsel %vm2798_vm5, 0, %v922_v54 }
  0xe6   : > { %v996_v1 = vpop.permute.xlu1 %995  ;;  %1490 = vmatprep.mubr.bf16.mxu0 %v2830_v37 }
  0xe7   : > { %v1044_v33 = vsel %vm554_vm6, %v940_v27, %v996_v1 }
  0xe8   : > { %v994_v24 = vpop.permute.xlu0 %993 }
  0xe9   : > { %v1041_v29 = vsel %vm554_vm6, %v939_v28, %v994_v24 }
  0xea   : > { %v1020_v25 = vpop.permute.xlu1 %1019  ;;  %v2035_v34 = vcombine.low %v1041_v29, %v1044_v33 }
  0xeb   : > { %v1060_v31 = vsel %vm554_vm6, %v996_v1, %v1020_v25 }
  0xec   : > { %v1018_v30 = vpop.permute.xlu0 %1017 }
  0xed   : > { %v1058_v21 = vsel %vm554_vm6, %v994_v24, %v1018_v30  ;;  %1491 = vmatmul.mubr.bf16.vlgmr.msra.gmra.mrb[16].mxu0 %v2838_v38 }
  0xee   : > { %v2036_v37 = vcombine.low %v1058_v21, %v1060_v31  ;;  %1498 = vmatprep.mubr.bf16.mxu0 %v2926_v22  ;;  %v2054_v38 = vcombine.low %v1058_v21, %v1058_v21  ;;  %v2053_v22 = vcombine.low %v1041_v29, %v1041_v29 }
  0xf0   : > { %1294 = vmatprep.mubr.bf16.mxu1 %v2036_v37 }
  0xf1   : > { %1295 = vmatmul.mubr.bf16.gmra.mrb[12].mxu1 %v2035_v34 }
  0xf2   : > { %1720 = vmatprep.mubr.bf16.mxu1 %v2104_v35 }
  0xf5   : > { %1499 = vmatmul.mubr.bf16.gmra.mrb[20].mxu0 %v2934_v26  ;;  %v2107_v26 = vcombine.low %v2970_v49, %v575_v15 }
  0xf6   : > { %1506 = vmatprep.mubr.bf16.mxu0 %v2034_v3 }
  0xf9   : > { %1721 = vmatmul.mubr.bf16.vlgmr.msra.gmra.mrb[16].mxu1 %v2103_v44 }
  0xfa   : > { %1728 = vmatprep.mubr.bf16.mxu1 %v2106_v17 }
  0xfd   : > { %1507 = vmatmul.mubr.bf16.gmra.mrb[24].mxu0 %v2033_v5 }
  0xfe   : > { %1514 = vmatprep.mubr.bf16.mxu0 %v2054_v38 }
 0x101   : > { %1729 = vmatmul.mubr.bf16.gmra.mrb[20].mxu1 %v2105_v23 }
 0x102   : > { %1736 = vmatprep.mubr.bf16.mxu1 %v2108_v47 }
 0x105   : > { %1515 = vmatmul.mubr.bf16.gmra.mrb[28].mxu0 %v2053_v22 }
 0x109   : > { %1737 = vmatmul.mubr.bf16.gmra.mrb[24].mxu1 %v2107_v26 }
 0x10a   : > { %1744 = vmatprep.mubr.bf16.mxu1 %v2110_v57 }
 0x111   : > { %1745 = vmatmul.mubr.bf16.gmra.mrb[28].mxu1 %v2109_v6 }
 0x17c   : > { %v2147_v48 = vpop.f32.mrb[0].mxu0 }
 0x17d   : > { %v2148_v44 = vpop.f32.mrb[1].mxu0 }
 0x17e   : > { %v2149_v36 = vadd.f32 %v2148_v44, %v2147_v48  ;;  %v2150_v39 = vpop.f32.mrb[2].mxu0 }
 0x17f   : > { %v2151_v61 = vpop.f32.mrb[3].mxu0 }
 0x180   : > { %837 = vst.msk [vmem:[#allocation2] sm:$0xff] %vm554_vm6, %v2149_v36  ;;  %v2152_v55 = vadd.f32 %v2151_v61, %v2150_v39  ;;  %v2187_v40 = vpop.f32.mrb[0].mxu1 }
 0x181   : > { %v2188_v43 = vpop.f32.mrb[1].mxu1 }
 0x182   : > { %838 = vst.msk [vmem:[#allocation2 + $0x8] sm:$0xff] %vm554_vm6, %v2152_v55  ;;  %v2189_v45 = vadd.f32 %v2188_v43, %v2187_v40  ;;  %v2190_v46 = vpop.f32.mrb[2].mxu1 }
 0x183   : > { %v2191_v49 = vpop.f32.mrb[3].mxu1 }
 0x184   : > { %v2192_v50 = vadd.f32 %v2191_v49, %v2190_v46 }
 0x187   : > { %v845_v11 = vld [vmem:[#allocation2] sm:$0xff] }
 0x188   : > { %v1303_v52 = vadd.f32 %v2189_v45, %v845_v11  ;;  %v2153_v53 = vpop.f32.mrb[4].mxu0 }
 0x189   : > { %v846_v41 = vld [vmem:[#allocation2 + $0x8] sm:$0xff]  ;;  %v2154_v51 = vpop.f32.mrb[5].mxu0 }
 0x18a   : > { %1311 = vst.msk [vmem:[#allocation2] sm:$0xff] %vm554_vm6, %v1303_v52  ;;  %v1304_v58 = vadd.f32 %v2192_v50, %v846_v41  ;;  %v2155_v59 = vadd.f32 %v2154_v51, %v2153_v53  ;;  %v2156_v60 = vpop.f32.mrb[6].mxu0 }
 0x18b   : > { %v2157_v42 = vpop.f32.mrb[7].mxu0 }
 0x18c   : > { %1312 = vst.msk [vmem:[#allocation2 + $0x8] sm:$0xff] %vm554_vm6, %v1304_v58  ;;  %839 = vst.msk [vmem:[#allocation2 + $0x10] sm:$0xff] %vm554_vm6, %v2155_v59  ;;  %v2158_v56 = vadd.f32 %v2157_v42, %v2156_v60 }
 0x18e   : > { %840 = vst.msk [vmem:[#allocation2 + $0x18] sm:$0xff] %vm554_vm6, %v2158_v56 }
 0x193   : > { %v847_v4 = vld [vmem:[#allocation2 + $0x10] sm:$0xff]  ;;  %v1319_v23 = vld [vmem:[#allocation2 + $0x8] sm:$0xff] }
 0x194   : > { %v2193_v62 = vpop.f32.mrb[4].mxu1 }
 0x195   : > { %v2194_v63 = vpop.f32.mrb[5].mxu1  ;;  %v848_v9 = vld [vmem:[#allocation2 + $0x18] sm:$0xff] }
 0x196   : > { %v2195_v0 = vadd.f32 %v2194_v63, %v2193_v62  ;;  %v2196_v3 = vpop.f32.mrb[6].mxu1 }
 0x197   : > { %v2197_v5 = vpop.f32.mrb[7].mxu1 }
 0x198   : > { %v1305_v7 = vadd.f32 %v2195_v0, %v847_v4  ;;  %v2198_v8 = vadd.f32 %v2197_v5, %v2196_v3  ;;  %v1536_v0 = vld [vmem:[#allocation2] sm:$0xff] }
 0x19a   : > { %1313 = vst.msk [vmem:[#allocation2 + $0x10] sm:$0xff] %vm554_vm6, %v1305_v7  ;;  %v1306_v10 = vadd.f32 %v2198_v8, %v848_v9 }
 0x19c   : > { %1314 = vst.msk [vmem:[#allocation2 + $0x18] sm:$0xff] %vm554_vm6, %v1306_v10 }
 0x1a0   : > { %v2159_v12 = vpop.f32.mrb[8].mxu0 }
 0x1a1   : > { %v2160_v14 = vpop.f32.mrb[9].mxu0  ;;  %v1320_v6 = vld [vmem:[#allocation2 + $0x10] sm:$0xff] }
 0x1a2   : > { %v2161_v15 = vadd.f32 %v2160_v14, %v2159_v12  ;;  %v2162_v13 = vpop.f32.mrb[10].mxu0 }
 0x1a3   : > { %v2163_v16 = vpop.f32.mrb[11].mxu0  ;;  %v1321_v53 = vld [vmem:[#allocation2 + $0x18] sm:$0xff] }
 0x1a4   : > { %841 = vst.msk [vmem:[#allocation2 + $0x20] sm:$0xff] %vm554_vm6, %v2161_v15  ;;  %v2164_v2 = vadd.f32 %v2163_v16, %v2162_v13 }
 0x1a6   : > { %842 = vst.msk [vmem:[#allocation2 + $0x28] sm:$0xff] %vm554_vm6, %v2164_v2 }
 0x1ab   : > { %v849_v54 = vld [vmem:[#allocation2 + $0x20] sm:$0xff] }
 0x1ac   : > { %v2199_v32 = vpop.f32.mrb[8].mxu1 }
 0x1ad   : > { %v2200_v18 = vpop.f32.mrb[9].mxu1  ;;  %v850_v27 = vld [vmem:[#allocation2 + $0x28] sm:$0xff] }
 0x1ae   : > { %v2201_v19 = vadd.f32 %v2200_v18, %v2199_v32  ;;  %v2202_v20 = vpop.f32.mrb[10].mxu1 }
 0x1af   : > { %v2203_v1 = vpop.f32.mrb[11].mxu1 }
 0x1b0   : > { %v1307_v24 = vadd.f32 %v2201_v19, %v849_v54  ;;  %v2204_v25 = vadd.f32 %v2203_v1, %v2202_v20 }
 0x1b2   : > { %1315 = vst.msk [vmem:[#allocation2 + $0x20] sm:$0xff] %vm554_vm6, %v1307_v24  ;;  %v1308_v28 = vadd.f32 %v2204_v25, %v850_v27 }
 0x1b4   : > { %1316 = vst.msk [vmem:[#allocation2 + $0x28] sm:$0xff] %vm554_vm6, %v1308_v28 }
 0x1b8   : > { %v2165_v29 = vpop.f32.mrb[12].mxu0 }
 0x1b9   : > { %v2166_v30 = vpop.f32.mrb[13].mxu0  ;;  %v1322_v60 = vld [vmem:[#allocation2 + $0x20] sm:$0xff] }
 0x1ba   : > { %v2167_v31 = vadd.f32 %v2166_v30, %v2165_v29  ;;  %v2168_v21 = vpop.f32.mrb[14].mxu0 }
 0x1bb   : > { %v2169_v33 = vpop.f32.mrb[15].mxu0  ;;  %v1323_v15 = vld [vmem:[#allocation2 + $0x28] sm:$0xff] }
 0x1bc   : > { %843 = vst.msk [vmem:[#allocation2 + $0x30] sm:$0xff] %vm554_vm6, %v2167_v31  ;;  %v2170_v37 = vadd.f32 %v2169_v33, %v2168_v21 }
 0x1be   : > { %844 = vst.msk [vmem:[#allocation2 + $0x38] sm:$0xff] %vm554_vm6, %v2170_v37 }
 0x1c0   : > { %v2227_v34 = vpop.f32.mrb[16].mxu0 }
 0x1c1   : > { %v2228_v35 = vpop.f32.mrb[17].mxu0 }
 0x1c2   : > { %v2229_v17 = vadd.f32 %v2228_v35, %v2227_v34  ;;  %v2230_v38 = vpop.f32.mrb[18].mxu0 }
 0x1c3   : > { %v2231_v47 = vpop.f32.mrb[19].mxu0  ;;  %v851_v61 = vld [vmem:[#allocation2 + $0x30] sm:$0xff] }
 0x1c4   : > { %v1522_v22 = vadd.f32 %v2229_v17, %v1319_v23  ;;  %v2232_v26 = vadd.f32 %v2231_v47, %v2230_v38  ;;  %v2205_v57 = vpop.f32.mrb[12].mxu1 }
 0x1c5   : > { %v2206_v48 = vpop.f32.mrb[13].mxu1  ;;  %v852_v46 = vld [vmem:[#allocation2 + $0x38] sm:$0xff] }
 0x1c6   : > { %1529 = vst.msk [vmem:[#allocation2 + $0x8] sm:$0xff] %vm554_vm6, %v1522_v22  ;;  %v1523_v44 = vadd.f32 %v2232_v26, %v1320_v6  ;;  %v2207_v36 = vadd.f32 %v2206_v48, %v2205_v57  ;;  %v2208_v39 = vpop.f32.mrb[14].mxu1 }
 0x1c7   : > { %v2209_v55 = vpop.f32.mrb[15].mxu1 }
 0x1c8   : > { %1530 = vst.msk [vmem:[#allocation2 + $0x10] sm:$0xff] %vm554_vm6, %v1523_v44  ;;  %v1309_v40 = vadd.f32 %v2207_v36, %v851_v61  ;;  %v2210_v43 = vadd.f32 %v2209_v55, %v2208_v39  ;;  %v2233_v45 = vpop.f32.mrb[20].mxu0 }
 0x1c9   : > { %v2234_v49 = vpop.f32.mrb[21].mxu0 }
 0x1ca   : > { %1317 = vst.msk [vmem:[#allocation2 + $0x30] sm:$0xff] %vm554_vm6, %v1309_v40  ;;  %v1310_v50 = vadd.f32 %v2210_v43, %v852_v46  ;;  %v2235_v11 = vadd.f32 %v2234_v49, %v2233_v45  ;;  %v2236_v52 = vpop.f32.mrb[22].mxu0 }
 0x1cb   : > { %v2237_v41 = vpop.f32.mrb[23].mxu0 }
 0x1cc   : > { %1318 = vst.msk [vmem:[#allocation2 + $0x38] sm:$0xff] %vm554_vm6, %v1310_v50  ;;  %v1524_v51 = vadd.f32 %v2235_v11, %v1321_v53  ;;  %v2238_v58 = vadd.f32 %v2237_v41, %v2236_v52  ;;  %v2267_v59 = vpop.f32.mrb[16].mxu1 }
 0x1cd   : > { %v2268_v42 = vpop.f32.mrb[17].mxu1  ;;  %v1537_v8 = vld [vmem:[#allocation2 + $0x8] sm:$0xff] }
 0x1ce   : > { %1531 = vst.msk [vmem:[#allocation2 + $0x18] sm:$0xff] %vm554_vm6, %v1524_v51  ;;  %v1525_v56 = vadd.f32 %v2238_v58, %v1322_v60  ;;  %v2269_v62 = vadd.f32 %v2268_v42, %v2267_v59  ;;  %v2270_v63 = vpop.f32.mrb[18].mxu1 }
 0x1cf   : > { %v2271_v3 = vpop.f32.mrb[19].mxu1  ;;  %v1538_v24 = vld [vmem:[#allocation2 + $0x10] sm:$0xff] }
 0x1d0   : > { %1532 = vst.msk [vmem:[#allocation2 + $0x20] sm:$0xff] %vm554_vm6, %v1525_v56  ;;  %v1752_v4 = vadd.f32 %v2269_v62, %v1536_v0  ;;  %v2272_v5 = vadd.f32 %v2271_v3, %v2270_v63  ;;  %v2239_v7 = vpop.f32.mrb[24].mxu0 }
 0x1d1   : > { %v2240_v9 = vpop.f32.mrb[25].mxu0  ;;  %v1324_v18 = vld [vmem:[#allocation2 + $0x30] sm:$0xff] }
 0x1d2   : > { %1759 = vst.msk [vmem:[#allocation2] sm:$0xff] %vm554_vm6, %v1752_v4  ;;  %v1753_v10 = vadd.f32 %v2272_v5, %v1537_v8  ;;  %v2241_v12 = vadd.f32 %v2240_v9, %v2239_v7  ;;  %v2242_v14 = vpop.f32.mrb[26].mxu0 }
 0x1d3   : > { %v2243_v13 = vpop.f32.mrb[27].mxu0  ;;  %v1325_v17 = vld [vmem:[#allocation2 + $0x38] sm:$0xff] }
 0x1d4   : > { %1760 = vst.msk [vmem:[#allocation2 + $0x8] sm:$0xff] %vm554_vm6, %v1753_v10  ;;  %v1526_v16 = vadd.f32 %v2241_v12, %v1323_v15  ;;  %v2244_v2 = vadd.f32 %v2243_v13, %v2242_v14  ;;  %v2273_v32 = vpop.f32.mrb[20].mxu1 }
 0x1d5   : > { %v2274_v19 = vpop.f32.mrb[21].mxu1  ;;  %v1539_v31 = vld [vmem:[#allocation2 + $0x18] sm:$0xff] }
 0x1d6   : > { %1533 = vst.msk [vmem:[#allocation2 + $0x28] sm:$0xff] %vm554_vm6, %v1526_v16  ;;  %v1527_v20 = vadd.f32 %v2244_v2, %v1324_v18  ;;  %v2275_v54 = vadd.f32 %v2274_v19, %v2273_v32  ;;  %v2276_v1 = vpop.f32.mrb[22].mxu1 }
 0x1d7   : > { %v2277_v25 = vpop.f32.mrb[23].mxu1  ;;  %v1540_v6 = vld [vmem:[#allocation2 + $0x20] sm:$0xff] }
 0x1d8   : > { %1534 = vst.msk [vmem:[#allocation2 + $0x30] sm:$0xff] %vm554_vm6, %v1527_v20  ;;  %v1754_v27 = vadd.f32 %v2275_v54, %v1538_v24  ;;  %v2278_v28 = vadd.f32 %v2277_v25, %v2276_v1  ;;  %v2245_v29 = vpop.f32.mrb[28].mxu0 }
 0x1d9   : > { %v1766_v30 = vld [vmem:[#allocation2] sm:$0xff]  ;;  %v2246_v21 = vpop.f32.mrb[29].mxu0 }
 0x1da   : > { %1774 = vst.msk [vmem:[%s3043_s30] sm:$0xff] %vm554_vm6, %v1766_v30  ;;  %1761 = vst.msk [vmem:[#allocation2 + $0x10] sm:$0xff] %vm554_vm6, %v1754_v27  ;;  %v1755_v33 = vadd.f32 %v2278_v28, %v1539_v31  ;;  %v2247_v37 = vadd.f32 %v2246_v21, %v2245_v29  ;;  %v2248_v34 = vpop.f32.mrb[30].mxu0  ;;  %v1805_v40 = vmul.f32 %v1766_v30, %v1766_v30  ;;  %v1782_v50 = vsel %vm554_vm6, %v1766_v30, 0.0 }
 0x1db   : > { %v1767_v35 = vld [vmem:[#allocation2 + $0x8] sm:$0xff]  ;;  %v2249_v38 = vpop.f32.mrb[31].mxu0 }
 0x1dc   : > { %1775 = vst.msk [vmem:[%s3043_s30 + $0x8] sm:$0xff] %vm554_vm6, %v1767_v35  ;;  %1762 = vst.msk [vmem:[#allocation2 + $0x18] sm:$0xff] %vm554_vm6, %v1755_v33  ;;  %v1528_v23 = vadd.f32 %v2247_v37, %v1325_v17  ;;  %v2279_v47 = vpop.f32.mrb[24].mxu1  ;;  %v1806_v44 = vmul.f32 %v1767_v35, %v1767_v35  ;;  %v1783_v43 = vsel %vm554_vm6, %v1767_v35, 0.0  ;;  %v1813_v59 = vsel %vm554_vm6, %v1805_v40, 0.0 }
 0x1dd   : > { %v2280_v22 = vpop.f32.mrb[25].mxu1  ;;  %v1541_v55 = vld [vmem:[#allocation2 + $0x28] sm:$0xff]  ;;  %v1784_v41 = vadd.f32 %v1783_v43, %v1782_v50 }
 0x1de   : > { %1535 = vst.msk [vmem:[#allocation2 + $0x38] sm:$0xff] %vm554_vm6, %v1528_v23  ;;  %v2281_v26 = vadd.f32 %v2280_v22, %v2279_v47  ;;  %v2282_v57 = vpop.f32.mrb[26].mxu1  ;;  %v1814_v11 = vsel %vm554_vm6, %v1806_v44, 0.0 }
 0x1df   : > { %v2283_v48 = vpop.f32.mrb[27].mxu1  ;;  %v1815_v63 = vadd.f32 %v1814_v11, %v1813_v59  ;;  %v1542_v3 = vld [vmem:[#allocation2 + $0x30] sm:$0xff] }
 0x1e0   : > { %v1756_v36 = vadd.f32 %v2281_v26, %v1540_v6  ;;  %v2284_v39 = vadd.f32 %v2283_v48, %v2282_v57 }
 0x1e1   : > { %v1768_v61 = vld [vmem:[#allocation2 + $0x10] sm:$0xff] }
 0x1e2   : > { %1776 = vst.msk [vmem:[%s3043_s30 + $0x10] sm:$0xff] %vm554_vm6, %v1768_v61  ;;  %v1807_v45 = vmul.f32 %v1768_v61, %v1768_v61  ;;  %1763 = vst.msk [vmem:[#allocation2 + $0x20] sm:$0xff] %vm554_vm6, %v1756_v36  ;;  %v1757_v46 = vadd.f32 %v2284_v39, %v1541_v55  ;;  %v1785_v52 = vsel %vm554_vm6, %v1768_v61, 0.0 }
 0x1e3   : > { %v1769_v49 = vld [vmem:[#allocation2 + $0x18] sm:$0xff]  ;;  %v1786_v0 = vadd.f32 %v1785_v52, %v1784_v41 }
 0x1e4   : > { %1777 = vst.msk [vmem:[%s3043_s30 + $0x18] sm:$0xff] %vm554_vm6, %v1769_v49  ;;  %1764 = vst.msk [vmem:[#allocation2 + $0x28] sm:$0xff] %vm554_vm6, %v1757_v46  ;;  %v2285_v53 = vpop.f32.mrb[28].mxu1  ;;  %v1816_v60 = vsel %vm554_vm6, %v1807_v45, 0.0  ;;  %v1808_v42 = vmul.f32 %v1769_v49, %v1769_v49  ;;  %v1787_v5 = vsel %vm554_vm6, %v1769_v49, 0.0 }
 0x1e5   : > { %v1773_v51 = vld [vmem:[#allocation2 + $0x38] sm:$0xff]  ;;  %v2286_v58 = vpop.f32.mrb[29].mxu1  ;;  %v1817_v8 = vadd.f32 %v1816_v60, %v1815_v63  ;;  %v1788_v15 = vadd.f32 %v1787_v5, %v1786_v0 }
 0x1e6   : > { %1781 = vst.msk [vmem:[%s3043_s30 + $0x38] sm:$0xff] %vm554_vm6, %v1773_v51  ;;  %v2287_v56 = vadd.f32 %v2286_v58, %v2285_v53  ;;  %v2288_v62 = vpop.f32.mrb[30].mxu1  ;;  %v1818_v10 = vsel %vm554_vm6, %v1808_v42, 0.0  ;;  %v1812_v25 = vmul.f32 %v1773_v51, %v1773_v51  ;;  %v1795_v31 = vsel %vm554_vm6, %v1773_v51, 0.0 }
 0x1e7   : > { %v2289_v4 = vpop.f32.mrb[31].mxu1  ;;  %v1819_v32 = vadd.f32 %v1818_v10, %v1817_v8 }
 0x1e8   : > { %v1758_v7 = vadd.f32 %v2287_v56, %v1542_v3  ;;  %v1826_v34 = vsel %vm554_vm6, %v1812_v25, 0.0 }
 0x1e9   : > { %v1770_v9 = vld [vmem:[#allocation2 + $0x20] sm:$0xff] }
 0x1ea   : > { %1778 = vst.msk [vmem:[%s3043_s30 + $0x20] sm:$0xff] %vm554_vm6, %v1770_v9  ;;  %v1789_v12 = vsel %vm554_vm6, %v1770_v9, 0.0  ;;  %v1809_v14 = vmul.f32 %v1770_v9, %v1770_v9  ;;  %1765 = vst.msk [vmem:[#allocation2 + $0x30] sm:$0xff] %vm554_vm6, %v1758_v7 }
 0x1eb   : > { %v1771_v13 = vld [vmem:[#allocation2 + $0x28] sm:$0xff]  ;;  %v1790_v18 = vadd.f32 %v1789_v12, %v1788_v15 }
 0x1ec   : > { %v1820_v16 = vsel %vm554_vm6, %v1809_v14, 0.0  ;;  %1779 = vst.msk [vmem:[%s3043_s30 + $0x28] sm:$0xff] %vm554_vm6, %v1771_v13  ;;  %v1810_v2 = vmul.f32 %v1771_v13, %v1771_v13  ;;  %v1791_v19 = vsel %vm554_vm6, %v1771_v13, 0.0 }
 0x1ed   : > { %v1821_v20 = vadd.f32 %v1820_v16, %v1819_v32  ;;  %v1792_v1 = vadd.f32 %v1791_v19, %v1790_v18 }
 0x1ee   : > { %v1822_v54 = vsel %vm554_vm6, %v1810_v2, 0.0 }
 0x1ef   : > { %v1823_v29 = vadd.f32 %v1822_v54, %v1821_v20 }
 0x1f1   : > { %v1772_v24 = vld [vmem:[#allocation2 + $0x30] sm:$0xff] }
 0x1f2   : > { %1780 = vst.msk [vmem:[%s3043_s30 + $0x30] sm:$0xff] %vm554_vm6, %v1772_v24  ;;  %v1793_v27 = vsel %vm554_vm6, %v1772_v24, 0.0  ;;  %v1811_v28 = vmul.f32 %v1772_v24, %v1772_v24 }
 0x1f3   : > { %v1794_v30 = vadd.f32 %v1793_v27, %v1792_v1 }
 0x1f4   : > { %v1824_v21 = vsel %vm554_vm6, %v1811_v28, 0.0 }
 0x1f5   : > { %v1796_v33 = vadd.f32 %v1795_v31, %v1794_v30  ;;  %v1825_v37 = vadd.f32 %v1824_v21, %v1823_v29 }
 0x1f7   : > { %v1797_v35 = vrot.slane %v1796_v33, 4  ;;  %v1827_v17 = vadd.f32 %v1826_v34, %v1825_v37 }
 0x1f9   : > { %v1798_v38 = vadd.f32 %v1797_v35, %v1796_v33  ;;  %v1828_v23 = vrot.slane %v1827_v17, 4 }
 0x1fb   : > { %v1799_v47 = vrot.slane %v1798_v38, 2  ;;  %v1829_v22 = vadd.f32 %v1828_v23, %v1827_v17 }
 0x1fd   : > { %v1800_v26 = vadd.f32 %v1799_v47, %v1798_v38  ;;  %v1830_v57 = vrot.slane %v1829_v22, 2 }
 0x1ff   : > { %v1801_v6 = vrot.slane %v1800_v26, 1  ;;  %v1831_v48 = vadd.f32 %v1830_v57, %v1829_v22 }
 0x201   : > { %v1802_v44 = vadd.f32 %v1801_v6, %v1800_v26  ;;  %v1832_v36 = vrot.slane %v1831_v48, 1 }
 0x203   : > { %1804 = vst.msk [vmem:[%s235_s9] sm:$0x1] %vm1803_vm7, %v1802_v44  ;;  %v1833_v39 = vadd.f32 %v1832_v36, %v1831_v48 }
 0x205   : > { %1834 = vst.msk [vmem:[%s235_s9 + $0x1] sm:$0x1] %vm1803_vm7, %v1833_v39 }
 0x206 PF: > { %s16_s18 = sadd.s32 1, %s2370_s18  }
 0x207   : > { %p13_p4 = scmp.ge.s32.totalorder %s16_s18, 4  }
 0x209   :  { %15 = sbr.rel (!%p13_p4) target bundleno = 1 (0x1), region = 82 }

</bundles_post_ra>
